<compile_context>
chip_gen: v7x
topology: tpu7x:2x2x1
jax: 0.10.0
libtpu: 0.0.40
codegen_flags: <defaults>
</compile_context>

<pallas_src>
import jax
import jax.numpy as jnp
from jax.experimental import pallas as pl
from jax.experimental.pallas import tpu as pltpu

NEG_SLOPE = 0.01          # nn.LeakyReLU() default negative_slope

# Model constants (from Model.input_shape = (46, 7, 11), channels = 64, out = 4)
C_IN = 46
H = 7
W = 11
WP = W + 2                # padded-W row stride of the "gapped" row layout (13)
NV = H * WP               # 91 gapped rows per image (w in {11,12} are junk cols)
NROW = 128                # rows of the circularly padded map (117 meaningful)
MROW = 96                 # conv-output row allocation (last valid row is 88)
CH = 64
OUT = 4
FLAT = H * W * CH         # 4928


def _lrelu(x):
    return jnp.where(x >= 0, x, NEG_SLOPE * x)


# ------------------------------ fused kernel ------------------------------ #
def _fused_kernel(x_ref, w1c_ref, w2c_ref, wl1_ref, bl1_ref, wl2_ref, bl2_ref,
                  wl3_ref, bl3_ref, o_ref, p_ref, y_ref, xflat_ref):
    # One grid step == one image (batch is the pallas grid axis).

    def build_padded(load_rows):
        """Build the circularly padded map P into p_ref (NROW x CH).

        Source rows r = h*WP + w (only w < W are real data; junk columns only
        ever land at wp in {0, WP-1} positions, which are overwritten by the
        W-wrap fix-ups below before anything reads them).
        Padded row q = hp*WP + wp holds source ((hp-1) mod H, (wp-1) mod W).
        """
        # Circular padding in H: three contiguous ref-to-ref block copies.
        p_ref[0:WP + 1, :] = load_rows(NV - WP - 1, NV)                # rows   0..13
        p_ref[WP + 1:WP + 1 + NV, :] = load_rows(0, NV)                # rows  14..104
        p_ref[WP + 1 + NV:NROW, :] = load_rows(0, NROW - WP - 1 - NV)  # rows 105..127
        # Circular padding in W: fix wp == 0 / wp == WP-1 of every row group
        # with ref-to-ref copies *within* p_ref (sources are interior rows
        # already holding valid data; sources are never fix-up targets).
        for hp in range(H + 2):
            base = WP * hp
            p_ref[base:base + 1, :] = p_ref[base + W:base + W + 1, :]
            p_ref[base + WP - 1:base + WP, :] = p_ref[base + 1:base + 2, :]

    def conv3x3(w_ref):
        """3x3 conv over the padded map in p_ref, fused LeakyReLU.

        9 accumulated MXU matmuls; tap (kh, kw) is just the row range
        [WP*kh + kw, WP*kh + kw + MROW) of p_ref.  Returns (MROW, CH) f32;
        rows r = h*WP + w (rows with w >= W and rows >= 89 are junk and are
        never read downstream).
        """
        acc = None
        for t in range(9):
            off = WP * (t // 3) + (t % 3)
            lhs = p_ref[off:off + MROW, :].astype(jnp.bfloat16)
            part = jnp.dot(lhs, w_ref[t], preferred_element_type=jnp.float32)
            acc = part if acc is None else acc + part
        return _lrelu(acc)

    # ---- conv1 (input channels 46..63 are zero-padded in the wrapper and the
    #      matching weight rows are zero, so they contribute exactly 0) -------
    build_padded(lambda a, b: x_ref[0, a:b, :])
    y_ref[...] = conv3x3(w1c_ref)

    # ---- conv2 ------------------------------------------------------------
    build_padded(lambda a, b: y_ref[a:b, :])
    y_ref[...] = conv3x3(w2c_ref)

    # ---- flatten: xflat[0, p*CH + c] = y2[h*WP + w, c], p = h*W + w --------
    # ln1's weight rows were permuted to this order at param-prep time.
    # Ref-to-ref row copies (the conv output was bulk-stored to y_ref above).
    for h in range(H):
        for w in range(W):
            p = h * W + w
            r = h * WP + w
            xflat_ref[0:1, CH * p:CH * (p + 1)] = y_ref[r:r + 1, :]

    # ---- fused linear stack (M = 1 per grid step) --------------------------
    xb = xflat_ref[...].astype(jnp.bfloat16)
    h1 = _lrelu(jnp.dot(xb, wl1_ref[...],
                        preferred_element_type=jnp.float32) + bl1_ref[...])
    h2 = _lrelu(jnp.dot(h1.astype(jnp.bfloat16), wl2_ref[...],
                        preferred_element_type=jnp.float32) + bl2_ref[...])
    h3 = _lrelu(jnp.dot(h2.astype(jnp.bfloat16), wl3_ref[...],
                        preferred_element_type=jnp.float32) + bl3_ref[...])
    o_ref[0] = h3


def _fused_forward(x_g, kp):
    B = x_g.shape[0]

    def const_spec(a):
        n = a.ndim
        return pl.BlockSpec(a.shape, lambda b, n=n: (0,) * n)

    weights = (kp["w1c"], kp["w2c"], kp["wl1"], kp["bl1"],
               kp["wl2"], kp["bl2"], kp["wl3"], kp["bl3"])

    out = pl.pallas_call(
        _fused_kernel,
        out_shape=jax.ShapeDtypeStruct((B, 1, OUT), jnp.float32),
        grid=(B,),
        in_specs=[pl.BlockSpec((1, NV, CH), lambda b: (b, 0, 0))]
                 + [const_spec(a) for a in weights],
        out_specs=pl.BlockSpec((1, 1, OUT), lambda b: (b, 0, 0)),
        scratch_shapes=[
            pltpu.VMEM((NROW, CH), jnp.float32),    # circularly padded map P
            pltpu.VMEM((MROW, CH), jnp.float32),    # conv output staging
            pltpu.VMEM((1, FLAT), jnp.float32),     # flattened conv2 output
        ],
        compiler_params=pltpu.CompilerParams(
            dimension_semantics=("parallel",)),     # both TCs on v7x
    )(x_g, *weights)
    return out.reshape(B, OUT)


# -------------------------- parameter preparation -------------------------- #
def prepare_params(params):
    """Static (one-time) re-layout of weights into the kernel's formats."""
    def conv_taps(w):  # (Cout, Cin, 3, 3) -> (9, CH, Cout) bf16, tap-major
        cout, cin = w.shape[0], w.shape[1]
        t = jnp.transpose(w, (2, 3, 1, 0)).reshape(9, cin, cout)
        if cin < CH:   # zero-pad input channels to CH (matches zero input cols)
            t = jnp.pad(t, ((0, 0), (0, CH - cin), (0, 0)))
        return t.astype(jnp.bfloat16)

    # Reorder ln1 rows from PyTorch flatten order (c, h, w) to kernel (h, w, c).
    wl1 = (params["ln1_w"].reshape(CH, H * W, CH)
           .transpose(1, 0, 2).reshape(H * W * CH, CH)).astype(jnp.bfloat16)
    return {
        "w1c": conv_taps(params["conv1"]),
        "w2c": conv_taps(params["conv2"]),
        "wl1": wl1,
        "bl1": params["ln1_b"].reshape(1, CH).astype(jnp.float32),
        "wl2": params["ln2_w"].astype(jnp.bfloat16),
        "bl2": params["ln2_b"].reshape(1, CH).astype(jnp.float32),
        "wl3": params["ln3_w"].astype(jnp.bfloat16),
        "bl3": params["ln3_b"].reshape(1, OUT).astype(jnp.float32),
    }


# ------------------------------- forward ----------------------------------- #
def model_forward(x_nchw, kparams):
    # Tiny wrapper glue on the ~14 KB input: NCHW -> (B, H*WP, CH) gapped row
    # layout; W padded 11->13 (junk columns, fixed inside the kernel) and
    # channels zero-padded 46->64 (pairs with zero weight rows).
    B = x_nchw.shape[0]
    x = jnp.transpose(x_nchw.astype(jnp.float32), (0, 2, 3, 1))      # (B,H,W,C)
    x = jnp.pad(x, ((0, 0), (0, 0), (0, WP - W), (0, CH - C_IN)))    # (B,H,WP,CH)
    x = x.reshape(B, NV, CH)
    return _fused_forward(x, kparams)


# --------------------------- deterministic params -------------------------- #
def init_params(key):
    ks = jax.random.split(key, 8)

    def u(k, shape, fan_in):
        bound = 1.0 / jnp.sqrt(fan_in)
        return jax.random.uniform(k, shape, jnp.float32, -bound, bound)

    return {
        "conv1": u(ks[0], (CH, C_IN, 3, 3), C_IN * 9),
        "conv2": u(ks[1], (CH, CH, 3, 3), CH * 9),
        # Linear weights stored as (in, out)  (PyTorch stores (out, in))
        "ln1_w": u(ks[2], (CH * H * W, CH), CH * H * W),
        "ln1_b": u(ks[3], (CH,), CH * H * W),
        "ln2_w": u(ks[4], (CH, CH), CH),
        "ln2_b": u(ks[5], (CH,), CH),
        "ln3_w": u(ks[6], (CH, OUT), CH),
        "ln3_b": u(ks[7], (OUT,), CH),
    }


# ------------------------------ pure-JAX ref -------------------------------- #
def reference_forward(x_nchw, params):
    def conv(x, w):
        xp = jnp.pad(x, ((0, 0), (0, 0), (1, 1), (1, 1)), mode="wrap")
        return jax.lax.conv_general_dilated(
            xp, w, (1, 1), "VALID",
            dimension_numbers=("NCHW", "OIHW", "NCHW"))

    x = x_nchw.astype(jnp.float32)
    x = _lrelu(conv(x, params["conv1"]))
    x = _lrelu(conv(x, params["conv2"]))
    B = x.shape[0]
    x = x.reshape(B, -1)                       # PyTorch Flatten: (C, H, W) order
    x = _lrelu(x @ params["ln1_w"] + params["ln1_b"])
    x = _lrelu(x @ params["ln2_w"] + params["ln2_b"])
    x = _lrelu(x @ params["ln3_w"] + params["ln3_b"])
    return x


if __name__ == "__main__":
    key = jax.random.PRNGKey(0)
    kx, kp = jax.random.split(key)
    # input consistent with Model.input_shape = (46, 7, 11), batch = 2
    x = jax.random.normal(kx, (2, C_IN, H, W), jnp.float32)
    params = init_params(kp)
    kparams = prepare_params(params)           # one-time static weight re-layout

    out = jax.block_until_ready(jax.jit(model_forward)(x, kparams))
    assert out.shape == (2, OUT), out.shape

    ref = jax.block_until_ready(reference_forward(x, params))
    # matmuls run with bf16 operands / f32 accumulation -> loosened tolerance
    assert jnp.allclose(out, ref, rtol=1e-2, atol=1e-2), (out, ref)

    print("KERNEL_OK")
</pallas_src>

<mosaic_0001>
module attributes {stable_mosaic.version = 11 : i64} {
  func.func @_fused_kernel(%arg0: i32, %arg1: memref<1x91x64xf32, #tpu.memory_space<vmem>>, %arg2: memref<9x64x64xbf16, #tpu.memory_space<vmem>>, %arg3: memref<9x64x64xbf16, #tpu.memory_space<vmem>>, %arg4: memref<4928x64xbf16, #tpu.memory_space<vmem>>, %arg5: memref<1x64xf32, #tpu.memory_space<vmem>>, %arg6: memref<64x64xbf16, #tpu.memory_space<vmem>>, %arg7: memref<1x64xf32, #tpu.memory_space<vmem>>, %arg8: memref<64x4xbf16, #tpu.memory_space<vmem>>, %arg9: memref<1x4xf32, #tpu.memory_space<vmem>>, %arg10: memref<1x1x4xf32, #tpu.memory_space<vmem>>, %arg11: memref<128x64xf32, #tpu.memory_space<vmem>>, %arg12: memref<96x64xf32, #tpu.memory_space<vmem>>, %arg13: memref<1x4928xf32, #tpu.memory_space<vmem>>) attributes {dimension_semantics = [#tpu.dimension_semantics<parallel>], iteration_bounds = array<i64: 2>, scalar_prefetch = 0 : i64, scratch_operands = 3 : i64, tpu.core_type = #tpu.core_type<tc>, window_params = [{transform_indices = @transform_0, window_bounds = array<i64: 1, 91, 64>}, {pipeline_mode = #tpu.pipeline_mode<synchronous>, transform_indices = @transform_1, window_bounds = array<i64: 9, 64, 64>}, {pipeline_mode = #tpu.pipeline_mode<synchronous>, transform_indices = @transform_2, window_bounds = array<i64: 9, 64, 64>}, {pipeline_mode = #tpu.pipeline_mode<synchronous>, transform_indices = @transform_3, window_bounds = array<i64: 4928, 64>}, {pipeline_mode = #tpu.pipeline_mode<synchronous>, transform_indices = @transform_4, window_bounds = array<i64: 1, 64>}, {pipeline_mode = #tpu.pipeline_mode<synchronous>, transform_indices = @transform_5, window_bounds = array<i64: 64, 64>}, {pipeline_mode = #tpu.pipeline_mode<synchronous>, transform_indices = @transform_6, window_bounds = array<i64: 1, 64>}, {pipeline_mode = #tpu.pipeline_mode<synchronous>, transform_indices = @transform_7, window_bounds = array<i64: 64, 4>}, {pipeline_mode = #tpu.pipeline_mode<synchronous>, transform_indices = @transform_8, window_bounds = array<i64: 1, 4>}, {transform_indices = @transform_9, window_bounds = array<i64: 1, 1, 4>}]} {
    %c0 = arith.constant 0 : index
    %c77 = arith.constant 77 : index
    %c0_0 = arith.constant 0 : index
    %0 = vector.load %arg1[%c0, %c77, %c0_0] : memref<1x91x64xf32, #tpu.memory_space<vmem>>, vector<1x14x64xf32>
    %1 = vector.shape_cast %0 : vector<1x14x64xf32> to vector<14x64xf32>
    %c0_1 = arith.constant 0 : index
    %c0_2 = arith.constant 0 : index
    %2 = vector.load %arg11[%c0_1, %c0_2] : memref<128x64xf32, #tpu.memory_space<vmem>>, vector<14x64xf32>
    tpu.vector_store %arg11[%c0_1, %c0_2], %1 {strides = array<i32>} : memref<128x64xf32, #tpu.memory_space<vmem>>, vector<14x64xf32>,
    %c0_3 = arith.constant 0 : index
    %c0_4 = arith.constant 0 : index
    %c0_5 = arith.constant 0 : index
    %3 = vector.load %arg1[%c0_3, %c0_4, %c0_5] : memref<1x91x64xf32, #tpu.memory_space<vmem>>, vector<1x91x64xf32>
    %4 = vector.shape_cast %3 : vector<1x91x64xf32> to vector<91x64xf32>
    %c14 = arith.constant 14 : index
    %c0_6 = arith.constant 0 : index
    %5 = vector.load %arg11[%c14, %c0_6] : memref<128x64xf32, #tpu.memory_space<vmem>>, vector<91x64xf32>
    tpu.vector_store %arg11[%c14, %c0_6], %4 {strides = array<i32>} : memref<128x64xf32, #tpu.memory_space<vmem>>, vector<91x64xf32>,
    %c0_7 = arith.constant 0 : index
    %c0_8 = arith.constant 0 : index
    %c0_9 = arith.constant 0 : index
    %6 = vector.load %arg1[%c0_7, %c0_8, %c0_9] : memref<1x91x64xf32, #tpu.memory_space<vmem>>, vector<1x23x64xf32>
    %7 = vector.shape_cast %6 : vector<1x23x64xf32> to vector<23x64xf32>
    %c105 = arith.constant 105 : index
    %c0_10 = arith.constant 0 : index
    %8 = vector.load %arg11[%c105, %c0_10] : memref<128x64xf32, #tpu.memory_space<vmem>>, vector<23x64xf32>
    tpu.vector_store %arg11[%c105, %c0_10], %7 {strides = array<i32>} : memref<128x64xf32, #tpu.memory_space<vmem>>, vector<23x64xf32>,
    %c11 = arith.constant 11 : index
    %c0_11 = arith.constant 0 : index
    %9 = vector.load %arg11[%c11, %c0_11] : memref<128x64xf32, #tpu.memory_space<vmem>>, vector<1x64xf32>
    %c0_12 = arith.constant 0 : index
    %c0_13 = arith.constant 0 : index
    %10 = vector.load %arg11[%c0_12, %c0_13] : memref<128x64xf32, #tpu.memory_space<vmem>>, vector<1x64xf32>
    tpu.vector_store %arg11[%c0_12, %c0_13], %9 {strides = array<i32>} : memref<128x64xf32, #tpu.memory_space<vmem>>, vector<1x64xf32>,
    %c1 = arith.constant 1 : index
    %c0_14 = arith.constant 0 : index
    %11 = vector.load %arg11[%c1, %c0_14] : memref<128x64xf32, #tpu.memory_space<vmem>>, vector<1x64xf32>
    %c12 = arith.constant 12 : index
    %c0_15 = arith.constant 0 : index
    %12 = vector.load %arg11[%c12, %c0_15] : memref<128x64xf32, #tpu.memory_space<vmem>>, vector<1x64xf32>
    tpu.vector_store %arg11[%c12, %c0_15], %11 {strides = array<i32>} : memref<128x64xf32, #tpu.memory_space<vmem>>, vector<1x64xf32>,
    %c24 = arith.constant 24 : index
    %c0_16 = arith.constant 0 : index
    %13 = vector.load %arg11[%c24, %c0_16] : memref<128x64xf32, #tpu.memory_space<vmem>>, vector<1x64xf32>
    %c13 = arith.constant 13 : index
    %c0_17 = arith.constant 0 : index
    %14 = vector.load %arg11[%c13, %c0_17] : memref<128x64xf32, #tpu.memory_space<vmem>>, vector<1x64xf32>
    tpu.vector_store %arg11[%c13, %c0_17], %13 {strides = array<i32>} : memref<128x64xf32, #tpu.memory_space<vmem>>, vector<1x64xf32>,
    %c14_18 = arith.constant 14 : index
    %c0_19 = arith.constant 0 : index
    %15 = vector.load %arg11[%c14_18, %c0_19] : memref<128x64xf32, #tpu.memory_space<vmem>>, vector<1x64xf32>
    %c25 = arith.constant 25 : index
    %c0_20 = arith.constant 0 : index
    %16 = vector.load %arg11[%c25, %c0_20] : memref<128x64xf32, #tpu.memory_space<vmem>>, vector<1x64xf32>
    tpu.vector_store %arg11[%c25, %c0_20], %15 {strides = array<i32>} : memref<128x64xf32, #tpu.memory_space<vmem>>, vector<1x64xf32>,
    %c37 = arith.constant 37 : index
    %c0_21 = arith.constant 0 : index
    %17 = vector.load %arg11[%c37, %c0_21] : memref<128x64xf32, #tpu.memory_space<vmem>>, vector<1x64xf32>
    %c26 = arith.constant 26 : index
    %c0_22 = arith.constant 0 : index
    %18 = vector.load %arg11[%c26, %c0_22] : memref<128x64xf32, #tpu.memory_space<vmem>>, vector<1x64xf32>
    tpu.vector_store %arg11[%c26, %c0_22], %17 {strides = array<i32>} : memref<128x64xf32, #tpu.memory_space<vmem>>, vector<1x64xf32>,
    %c27 = arith.constant 27 : index
    %c0_23 = arith.constant 0 : index
    %19 = vector.load %arg11[%c27, %c0_23] : memref<128x64xf32, #tpu.memory_space<vmem>>, vector<1x64xf32>
    %c38 = arith.constant 38 : index
    %c0_24 = arith.constant 0 : index
    %20 = vector.load %arg11[%c38, %c0_24] : memref<128x64xf32, #tpu.memory_space<vmem>>, vector<1x64xf32>
    tpu.vector_store %arg11[%c38, %c0_24], %19 {strides = array<i32>} : memref<128x64xf32, #tpu.memory_space<vmem>>, vector<1x64xf32>,
    %c50 = arith.constant 50 : index
    %c0_25 = arith.constant 0 : index
    %21 = vector.load %arg11[%c50, %c0_25] : memref<128x64xf32, #tpu.memory_space<vmem>>, vector<1x64xf32>
    %c39 = arith.constant 39 : index
    %c0_26 = arith.constant 0 : index
    %22 = vector.load %arg11[%c39, %c0_26] : memref<128x64xf32, #tpu.memory_space<vmem>>, vector<1x64xf32>
    tpu.vector_store %arg11[%c39, %c0_26], %21 {strides = array<i32>} : memref<128x64xf32, #tpu.memory_space<vmem>>, vector<1x64xf32>,
    %c40 = arith.constant 40 : index
    %c0_27 = arith.constant 0 : index
    %23 = vector.load %arg11[%c40, %c0_27] : memref<128x64xf32, #tpu.memory_space<vmem>>, vector<1x64xf32>
    %c51 = arith.constant 51 : index
    %c0_28 = arith.constant 0 : index
    %24 = vector.load %arg11[%c51, %c0_28] : memref<128x64xf32, #tpu.memory_space<vmem>>, vector<1x64xf32>
    tpu.vector_store %arg11[%c51, %c0_28], %23 {strides = array<i32>} : memref<128x64xf32, #tpu.memory_space<vmem>>, vector<1x64xf32>,
    %c63 = arith.constant 63 : index
    %c0_29 = arith.constant 0 : index
    %25 = vector.load %arg11[%c63, %c0_29] : memref<128x64xf32, #tpu.memory_space<vmem>>, vector<1x64xf32>
    %c52 = arith.constant 52 : index
    %c0_30 = arith.constant 0 : index
    %26 = vector.load %arg11[%c52, %c0_30] : memref<128x64xf32, #tpu.memory_space<vmem>>, vector<1x64xf32>
    tpu.vector_store %arg11[%c52, %c0_30], %25 {strides = array<i32>} : memref<128x64xf32, #tpu.memory_space<vmem>>, vector<1x64xf32>,
    %c53 = arith.constant 53 : index
    %c0_31 = arith.constant 0 : index
    %27 = vector.load %arg11[%c53, %c0_31] : memref<128x64xf32, #tpu.memory_space<vmem>>, vector<1x64xf32>
    %c64 = arith.constant 64 : index
    %c0_32 = arith.constant 0 : index
    %28 = vector.load %arg11[%c64, %c0_32] : memref<128x64xf32, #tpu.memory_space<vmem>>, vector<1x64xf32>
    tpu.vector_store %arg11[%c64, %c0_32], %27 {strides = array<i32>} : memref<128x64xf32, #tpu.memory_space<vmem>>, vector<1x64xf32>,
    %c76 = arith.constant 76 : index
    %c0_33 = arith.constant 0 : index
    %29 = vector.load %arg11[%c76, %c0_33] : memref<128x64xf32, #tpu.memory_space<vmem>>, vector<1x64xf32>
    %c65 = arith.constant 65 : index
    %c0_34 = arith.constant 0 : index
    %30 = vector.load %arg11[%c65, %c0_34] : memref<128x64xf32, #tpu.memory_space<vmem>>, vector<1x64xf32>
    tpu.vector_store %arg11[%c65, %c0_34], %29 {strides = array<i32>} : memref<128x64xf32, #tpu.memory_space<vmem>>, vector<1x64xf32>,
    %c66 = arith.constant 66 : index
    %c0_35 = arith.constant 0 : index
    %31 = vector.load %arg11[%c66, %c0_35] : memref<128x64xf32, #tpu.memory_space<vmem>>, vector<1x64xf32>
    %c77_36 = arith.constant 77 : index
    %c0_37 = arith.constant 0 : index
    %32 = vector.load %arg11[%c77_36, %c0_37] : memref<128x64xf32, #tpu.memory_space<vmem>>, vector<1x64xf32>
    tpu.vector_store %arg11[%c77_36, %c0_37], %31 {strides = array<i32>} : memref<128x64xf32, #tpu.memory_space<vmem>>, vector<1x64xf32>,
    %c89 = arith.constant 89 : index
    %c0_38 = arith.constant 0 : index
    %33 = vector.load %arg11[%c89, %c0_38] : memref<128x64xf32, #tpu.memory_space<vmem>>, vector<1x64xf32>
    %c78 = arith.constant 78 : index
    %c0_39 = arith.constant 0 : index
    %34 = vector.load %arg11[%c78, %c0_39] : memref<128x64xf32, #tpu.memory_space<vmem>>, vector<1x64xf32>
    tpu.vector_store %arg11[%c78, %c0_39], %33 {strides = array<i32>} : memref<128x64xf32, #tpu.memory_space<vmem>>, vector<1x64xf32>,
    %c79 = arith.constant 79 : index
    %c0_40 = arith.constant 0 : index
    %35 = vector.load %arg11[%c79, %c0_40] : memref<128x64xf32, #tpu.memory_space<vmem>>, vector<1x64xf32>
    %c90 = arith.constant 90 : index
    %c0_41 = arith.constant 0 : index
    %36 = vector.load %arg11[%c90, %c0_41] : memref<128x64xf32, #tpu.memory_space<vmem>>, vector<1x64xf32>
    tpu.vector_store %arg11[%c90, %c0_41], %35 {strides = array<i32>} : memref<128x64xf32, #tpu.memory_space<vmem>>, vector<1x64xf32>,
    %c102 = arith.constant 102 : index
    %c0_42 = arith.constant 0 : index
    %37 = vector.load %arg11[%c102, %c0_42] : memref<128x64xf32, #tpu.memory_space<vmem>>, vector<1x64xf32>
    %c91 = arith.constant 91 : index
    %c0_43 = arith.constant 0 : index
    %38 = vector.load %arg11[%c91, %c0_43] : memref<128x64xf32, #tpu.memory_space<vmem>>, vector<1x64xf32>
    tpu.vector_store %arg11[%c91, %c0_43], %37 {strides = array<i32>} : memref<128x64xf32, #tpu.memory_space<vmem>>, vector<1x64xf32>,
    %c92 = arith.constant 92 : index
    %c0_44 = arith.constant 0 : index
    %39 = vector.load %arg11[%c92, %c0_44] : memref<128x64xf32, #tpu.memory_space<vmem>>, vector<1x64xf32>
    %c103 = arith.constant 103 : index
    %c0_45 = arith.constant 0 : index
    %40 = vector.load %arg11[%c103, %c0_45] : memref<128x64xf32, #tpu.memory_space<vmem>>, vector<1x64xf32>
    tpu.vector_store %arg11[%c103, %c0_45], %39 {strides = array<i32>} : memref<128x64xf32, #tpu.memory_space<vmem>>, vector<1x64xf32>,
    %c115 = arith.constant 115 : index
    %c0_46 = arith.constant 0 : index
    %41 = vector.load %arg11[%c115, %c0_46] : memref<128x64xf32, #tpu.memory_space<vmem>>, vector<1x64xf32>
    %c104 = arith.constant 104 : index
    %c0_47 = arith.constant 0 : index
    %42 = vector.load %arg11[%c104, %c0_47] : memref<128x64xf32, #tpu.memory_space<vmem>>, vector<1x64xf32>
    tpu.vector_store %arg11[%c104, %c0_47], %41 {strides = array<i32>} : memref<128x64xf32, #tpu.memory_space<vmem>>, vector<1x64xf32>,
    %c105_48 = arith.constant 105 : index
    %c0_49 = arith.constant 0 : index
    %43 = vector.load %arg11[%c105_48, %c0_49] : memref<128x64xf32, #tpu.memory_space<vmem>>, vector<1x64xf32>
    %c116 = arith.constant 116 : index
    %c0_50 = arith.constant 0 : index
    %44 = vector.load %arg11[%c116, %c0_50] : memref<128x64xf32, #tpu.memory_space<vmem>>, vector<1x64xf32>
    tpu.vector_store %arg11[%c116, %c0_50], %43 {strides = array<i32>} : memref<128x64xf32, #tpu.memory_space<vmem>>, vector<1x64xf32>,
    %c0_51 = arith.constant 0 : index
    %c0_52 = arith.constant 0 : index
    %45 = vector.load %arg11[%c0_51, %c0_52] : memref<128x64xf32, #tpu.memory_space<vmem>>, vector<96x64xf32>
    %46 = arith.truncf %45 : vector<96x64xf32> to vector<96x64xbf16>
    %c0_53 = arith.constant 0 : index
    %c0_54 = arith.constant 0 : index
    %c0_55 = arith.constant 0 : index
    %47 = vector.load %arg2[%c0_53, %c0_54, %c0_55] : memref<9x64x64xbf16, #tpu.memory_space<vmem>>, vector<1x64x64xbf16>
    %48 = vector.shape_cast %47 : vector<1x64x64xbf16> to vector<64x64xbf16>
    %cst = arith.constant dense<0.000000e+00> : vector<96x64xf32>
    %49 = tpu.matmul %46, %48, %cst {dimension_numbers = #tpu.dot_dimension_numbers<[1], [0], [0], [1], [0, 0, 1, 1], [], []>} : vector<96x64xbf16>, vector<64x64xbf16>, vector<96x64xf32> -> vector<96x64xf32>
    %c1_56 = arith.constant 1 : index
    %c0_57 = arith.constant 0 : index
    %50 = vector.load %arg11[%c1_56, %c0_57] : memref<128x64xf32, #tpu.memory_space<vmem>>, vector<96x64xf32>
    %51 = arith.truncf %50 : vector<96x64xf32> to vector<96x64xbf16>
    %c1_58 = arith.constant 1 : index
    %c0_59 = arith.constant 0 : index
    %c0_60 = arith.constant 0 : index
    %52 = vector.load %arg2[%c1_58, %c0_59, %c0_60] : memref<9x64x64xbf16, #tpu.memory_space<vmem>>, vector<1x64x64xbf16>
    %53 = vector.shape_cast %52 : vector<1x64x64xbf16> to vector<64x64xbf16>
    %cst_61 = arith.constant dense<0.000000e+00> : vector<96x64xf32>
    %54 = tpu.matmul %51, %53, %cst_61 {dimension_numbers = #tpu.dot_dimension_numbers<[1], [0], [0], [1], [0, 0, 1, 1], [], []>} : vector<96x64xbf16>, vector<64x64xbf16>, vector<96x64xf32> -> vector<96x64xf32>
    %55 = arith.addf %49, %54 : vector<96x64xf32>
    %c2 = arith.constant 2 : index
    %c0_62 = arith.constant 0 : index
    %56 = vector.load %arg11[%c2, %c0_62] : memref<128x64xf32, #tpu.memory_space<vmem>>, vector<96x64xf32>
    %57 = arith.truncf %56 : vector<96x64xf32> to vector<96x64xbf16>
    %c2_63 = arith.constant 2 : index
    %c0_64 = arith.constant 0 : index
    %c0_65 = arith.constant 0 : index
    %58 = vector.load %arg2[%c2_63, %c0_64, %c0_65] : memref<9x64x64xbf16, #tpu.memory_space<vmem>>, vector<1x64x64xbf16>
    %59 = vector.shape_cast %58 : vector<1x64x64xbf16> to vector<64x64xbf16>
    %cst_66 = arith.constant dense<0.000000e+00> : vector<96x64xf32>
    %60 = tpu.matmul %57, %59, %cst_66 {dimension_numbers = #tpu.dot_dimension_numbers<[1], [0], [0], [1], [0, 0, 1, 1], [], []>} : vector<96x64xbf16>, vector<64x64xbf16>, vector<96x64xf32> -> vector<96x64xf32>
    %61 = arith.addf %55, %60 : vector<96x64xf32>
    %c13_67 = arith.constant 13 : index
    %c0_68 = arith.constant 0 : index
    %62 = vector.load %arg11[%c13_67, %c0_68] : memref<128x64xf32, #tpu.memory_space<vmem>>, vector<96x64xf32>
    %63 = arith.truncf %62 : vector<96x64xf32> to vector<96x64xbf16>
    %c3 = arith.constant 3 : index
    %c0_69 = arith.constant 0 : index
    %c0_70 = arith.constant 0 : index
    %64 = vector.load %arg2[%c3, %c0_69, %c0_70] : memref<9x64x64xbf16, #tpu.memory_space<vmem>>, vector<1x64x64xbf16>
    %65 = vector.shape_cast %64 : vector<1x64x64xbf16> to vector<64x64xbf16>
    %cst_71 = arith.constant dense<0.000000e+00> : vector<96x64xf32>
    %66 = tpu.matmul %63, %65, %cst_71 {dimension_numbers = #tpu.dot_dimension_numbers<[1], [0], [0], [1], [0, 0, 1, 1], [], []>} : vector<96x64xbf16>, vector<64x64xbf16>, vector<96x64xf32> -> vector<96x64xf32>
    %67 = arith.addf %61, %66 : vector<96x64xf32>
    %c14_72 = arith.constant 14 : index
    %c0_73 = arith.constant 0 : index
    %68 = vector.load %arg11[%c14_72, %c0_73] : memref<128x64xf32, #tpu.memory_space<vmem>>, vector<96x64xf32>
    %69 = arith.truncf %68 : vector<96x64xf32> to vector<96x64xbf16>
    %c4 = arith.constant 4 : index
    %c0_74 = arith.constant 0 : index
    %c0_75 = arith.constant 0 : index
    %70 = vector.load %arg2[%c4, %c0_74, %c0_75] : memref<9x64x64xbf16, #tpu.memory_space<vmem>>, vector<1x64x64xbf16>
    %71 = vector.shape_cast %70 : vector<1x64x64xbf16> to vector<64x64xbf16>
    %cst_76 = arith.constant dense<0.000000e+00> : vector<96x64xf32>
    %72 = tpu.matmul %69, %71, %cst_76 {dimension_numbers = #tpu.dot_dimension_numbers<[1], [0], [0], [1], [0, 0, 1, 1], [], []>} : vector<96x64xbf16>, vector<64x64xbf16>, vector<96x64xf32> -> vector<96x64xf32>
    %73 = arith.addf %67, %72 : vector<96x64xf32>
    %c15 = arith.constant 15 : index
    %c0_77 = arith.constant 0 : index
    %74 = vector.load %arg11[%c15, %c0_77] : memref<128x64xf32, #tpu.memory_space<vmem>>, vector<96x64xf32>
    %75 = arith.truncf %74 : vector<96x64xf32> to vector<96x64xbf16>
    %c5 = arith.constant 5 : index
    %c0_78 = arith.constant 0 : index
    %c0_79 = arith.constant 0 : index
    %76 = vector.load %arg2[%c5, %c0_78, %c0_79] : memref<9x64x64xbf16, #tpu.memory_space<vmem>>, vector<1x64x64xbf16>
    %77 = vector.shape_cast %76 : vector<1x64x64xbf16> to vector<64x64xbf16>
    %cst_80 = arith.constant dense<0.000000e+00> : vector<96x64xf32>
    %78 = tpu.matmul %75, %77, %cst_80 {dimension_numbers = #tpu.dot_dimension_numbers<[1], [0], [0], [1], [0, 0, 1, 1], [], []>} : vector<96x64xbf16>, vector<64x64xbf16>, vector<96x64xf32> -> vector<96x64xf32>
    %79 = arith.addf %73, %78 : vector<96x64xf32>
    %c26_81 = arith.constant 26 : index
    %c0_82 = arith.constant 0 : index
    %80 = vector.load %arg11[%c26_81, %c0_82] : memref<128x64xf32, #tpu.memory_space<vmem>>, vector<96x64xf32>
    %81 = arith.truncf %80 : vector<96x64xf32> to vector<96x64xbf16>
    %c6 = arith.constant 6 : index
    %c0_83 = arith.constant 0 : index
    %c0_84 = arith.constant 0 : index
    %82 = vector.load %arg2[%c6, %c0_83, %c0_84] : memref<9x64x64xbf16, #tpu.memory_space<vmem>>, vector<1x64x64xbf16>
    %83 = vector.shape_cast %82 : vector<1x64x64xbf16> to vector<64x64xbf16>
    %cst_85 = arith.constant dense<0.000000e+00> : vector<96x64xf32>
    %84 = tpu.matmul %81, %83, %cst_85 {dimension_numbers = #tpu.dot_dimension_numbers<[1], [0], [0], [1], [0, 0, 1, 1], [], []>} : vector<96x64xbf16>, vector<64x64xbf16>, vector<96x64xf32> -> vector<96x64xf32>
    %85 = arith.addf %79, %84 : vector<96x64xf32>
    %c27_86 = arith.constant 27 : index
    %c0_87 = arith.constant 0 : index
    %86 = vector.load %arg11[%c27_86, %c0_87] : memref<128x64xf32, #tpu.memory_space<vmem>>, vector<96x64xf32>
    %87 = arith.truncf %86 : vector<96x64xf32> to vector<96x64xbf16>
    %c7 = arith.constant 7 : index
    %c0_88 = arith.constant 0 : index
    %c0_89 = arith.constant 0 : index
    %88 = vector.load %arg2[%c7, %c0_88, %c0_89] : memref<9x64x64xbf16, #tpu.memory_space<vmem>>, vector<1x64x64xbf16>
    %89 = vector.shape_cast %88 : vector<1x64x64xbf16> to vector<64x64xbf16>
    %cst_90 = arith.constant dense<0.000000e+00> : vector<96x64xf32>
    %90 = tpu.matmul %87, %89, %cst_90 {dimension_numbers = #tpu.dot_dimension_numbers<[1], [0], [0], [1], [0, 0, 1, 1], [], []>} : vector<96x64xbf16>, vector<64x64xbf16>, vector<96x64xf32> -> vector<96x64xf32>
    %91 = arith.addf %85, %90 : vector<96x64xf32>
    %c28 = arith.constant 28 : index
    %c0_91 = arith.constant 0 : index
    %92 = vector.load %arg11[%c28, %c0_91] : memref<128x64xf32, #tpu.memory_space<vmem>>, vector<96x64xf32>
    %93 = arith.truncf %92 : vector<96x64xf32> to vector<96x64xbf16>
    %c8 = arith.constant 8 : index
    %c0_92 = arith.constant 0 : index
    %c0_93 = arith.constant 0 : index
    %94 = vector.load %arg2[%c8, %c0_92, %c0_93] : memref<9x64x64xbf16, #tpu.memory_space<vmem>>, vector<1x64x64xbf16>
    %95 = vector.shape_cast %94 : vector<1x64x64xbf16> to vector<64x64xbf16>
    %cst_94 = arith.constant dense<0.000000e+00> : vector<96x64xf32>
    %96 = tpu.matmul %93, %95, %cst_94 {dimension_numbers = #tpu.dot_dimension_numbers<[1], [0], [0], [1], [0, 0, 1, 1], [], []>} : vector<96x64xbf16>, vector<64x64xbf16>, vector<96x64xf32> -> vector<96x64xf32>
    %97 = arith.addf %91, %96 : vector<96x64xf32>
    %cst_95 = arith.constant 0.000000e+00 : f32
    %98 = vector.broadcast %cst_95 : f32 to vector<96x64xf32>
    %99 = arith.cmpf oge, %97, %98 : vector<96x64xf32>
    %cst_96 = arith.constant 0.00999999977 : f32
    %100 = vector.broadcast %cst_96 : f32 to vector<96x64xf32>
    %101 = arith.mulf %100, %97 : vector<96x64xf32>
    %102 = arith.select %99, %97, %101 : vector<96x64xi1>, vector<96x64xf32>
    %c0_97 = arith.constant 0 : index
    %c0_98 = arith.constant 0 : index
    %103 = vector.load %arg12[%c0_97, %c0_98] : memref<96x64xf32, #tpu.memory_space<vmem>>, vector<96x64xf32>
    tpu.vector_store %arg12[%c0_97, %c0_98], %102 {strides = array<i32>} : memref<96x64xf32, #tpu.memory_space<vmem>>, vector<96x64xf32>,
    %c77_99 = arith.constant 77 : index
    %c0_100 = arith.constant 0 : index
    %104 = vector.load %arg12[%c77_99, %c0_100] : memref<96x64xf32, #tpu.memory_space<vmem>>, vector<14x64xf32>
    %c0_101 = arith.constant 0 : index
    %c0_102 = arith.constant 0 : index
    %105 = vector.load %arg11[%c0_101, %c0_102] : memref<128x64xf32, #tpu.memory_space<vmem>>, vector<14x64xf32>
    tpu.vector_store %arg11[%c0_101, %c0_102], %104 {strides = array<i32>} : memref<128x64xf32, #tpu.memory_space<vmem>>, vector<14x64xf32>,
    %c0_103 = arith.constant 0 : index
    %c0_104 = arith.constant 0 : index
    %106 = vector.load %arg12[%c0_103, %c0_104] : memref<96x64xf32, #tpu.memory_space<vmem>>, vector<91x64xf32>
    %c14_105 = arith.constant 14 : index
    %c0_106 = arith.constant 0 : index
    %107 = vector.load %arg11[%c14_105, %c0_106] : memref<128x64xf32, #tpu.memory_space<vmem>>, vector<91x64xf32>
    tpu.vector_store %arg11[%c14_105, %c0_106], %106 {strides = array<i32>} : memref<128x64xf32, #tpu.memory_space<vmem>>, vector<91x64xf32>,
    %c0_107 = arith.constant 0 : index
    %c0_108 = arith.constant 0 : index
    %108 = vector.load %arg12[%c0_107, %c0_108] : memref<96x64xf32, #tpu.memory_space<vmem>>, vector<23x64xf32>
    %c105_109 = arith.constant 105 : index
    %c0_110 = arith.constant 0 : index
    %109 = vector.load %arg11[%c105_109, %c0_110] : memref<128x64xf32, #tpu.memory_space<vmem>>, vector<23x64xf32>
    tpu.vector_store %arg11[%c105_109, %c0_110], %108 {strides = array<i32>} : memref<128x64xf32, #tpu.memory_space<vmem>>, vector<23x64xf32>,
    %c11_111 = arith.constant 11 : index
    %c0_112 = arith.constant 0 : index
    %110 = vector.load %arg11[%c11_111, %c0_112] : memref<128x64xf32, #tpu.memory_space<vmem>>, vector<1x64xf32>
    %c0_113 = arith.constant 0 : index
    %c0_114 = arith.constant 0 : index
    %111 = vector.load %arg11[%c0_113, %c0_114] : memref<128x64xf32, #tpu.memory_space<vmem>>, vector<1x64xf32>
    tpu.vector_store %arg11[%c0_113, %c0_114], %110 {strides = array<i32>} : memref<128x64xf32, #tpu.memory_space<vmem>>, vector<1x64xf32>,
    %c1_115 = arith.constant 1 : index
    %c0_116 = arith.constant 0 : index
    %112 = vector.load %arg11[%c1_115, %c0_116] : memref<128x64xf32, #tpu.memory_space<vmem>>, vector<1x64xf32>
    %c12_117 = arith.constant 12 : index
    %c0_118 = arith.constant 0 : index
    %113 = vector.load %arg11[%c12_117, %c0_118] : memref<128x64xf32, #tpu.memory_space<vmem>>, vector<1x64xf32>
    tpu.vector_store %arg11[%c12_117, %c0_118], %112 {strides = array<i32>} : memref<128x64xf32, #tpu.memory_space<vmem>>, vector<1x64xf32>,
    %c24_119 = arith.constant 24 : index
    %c0_120 = arith.constant 0 : index
    %114 = vector.load %arg11[%c24_119, %c0_120] : memref<128x64xf32, #tpu.memory_space<vmem>>, vector<1x64xf32>
    %c13_121 = arith.constant 13 : index
    %c0_122 = arith.constant 0 : index
    %115 = vector.load %arg11[%c13_121, %c0_122] : memref<128x64xf32, #tpu.memory_space<vmem>>, vector<1x64xf32>
    tpu.vector_store %arg11[%c13_121, %c0_122], %114 {strides = array<i32>} : memref<128x64xf32, #tpu.memory_space<vmem>>, vector<1x64xf32>,
    %c14_123 = arith.constant 14 : index
    %c0_124 = arith.constant 0 : index
    %116 = vector.load %arg11[%c14_123, %c0_124] : memref<128x64xf32, #tpu.memory_space<vmem>>, vector<1x64xf32>
    %c25_125 = arith.constant 25 : index
    %c0_126 = arith.constant 0 : index
    %117 = vector.load %arg11[%c25_125, %c0_126] : memref<128x64xf32, #tpu.memory_space<vmem>>, vector<1x64xf32>
    tpu.vector_store %arg11[%c25_125, %c0_126], %116 {strides = array<i32>} : memref<128x64xf32, #tpu.memory_space<vmem>>, vector<1x64xf32>,
    %c37_127 = arith.constant 37 : index
    %c0_128 = arith.constant 0 : index
    %118 = vector.load %arg11[%c37_127, %c0_128] : memref<128x64xf32, #tpu.memory_space<vmem>>, vector<1x64xf32>
    %c26_129 = arith.constant 26 : index
    %c0_130 = arith.constant 0 : index
    %119 = vector.load %arg11[%c26_129, %c0_130] : memref<128x64xf32, #tpu.memory_space<vmem>>, vector<1x64xf32>
    tpu.vector_store %arg11[%c26_129, %c0_130], %118 {strides = array<i32>} : memref<128x64xf32, #tpu.memory_space<vmem>>, vector<1x64xf32>,
    %c27_131 = arith.constant 27 : index
    %c0_132 = arith.constant 0 : index
    %120 = vector.load %arg11[%c27_131, %c0_132] : memref<128x64xf32, #tpu.memory_space<vmem>>, vector<1x64xf32>
    %c38_133 = arith.constant 38 : index
    %c0_134 = arith.constant 0 : index
    %121 = vector.load %arg11[%c38_133, %c0_134] : memref<128x64xf32, #tpu.memory_space<vmem>>, vector<1x64xf32>
    tpu.vector_store %arg11[%c38_133, %c0_134], %120 {strides = array<i32>} : memref<128x64xf32, #tpu.memory_space<vmem>>, vector<1x64xf32>,
    %c50_135 = arith.constant 50 : index
    %c0_136 = arith.constant 0 : index
    %122 = vector.load %arg11[%c50_135, %c0_136] : memref<128x64xf32, #tpu.memory_space<vmem>>, vector<1x64xf32>
    %c39_137 = arith.constant 39 : index
    %c0_138 = arith.constant 0 : index
    %123 = vector.load %arg11[%c39_137, %c0_138] : memref<128x64xf32, #tpu.memory_space<vmem>>, vector<1x64xf32>
    tpu.vector_store %arg11[%c39_137, %c0_138], %122 {strides = array<i32>} : memref<128x64xf32, #tpu.memory_space<vmem>>, vector<1x64xf32>,
    %c40_139 = arith.constant 40 : index
    %c0_140 = arith.constant 0 : index
    %124 = vector.load %arg11[%c40_139, %c0_140] : memref<128x64xf32, #tpu.memory_space<vmem>>, vector<1x64xf32>
    %c51_141 = arith.constant 51 : index
    %c0_142 = arith.constant 0 : index
    %125 = vector.load %arg11[%c51_141, %c0_142] : memref<128x64xf32, #tpu.memory_space<vmem>>, vector<1x64xf32>
    tpu.vector_store %arg11[%c51_141, %c0_142], %124 {strides = array<i32>} : memref<128x64xf32, #tpu.memory_space<vmem>>, vector<1x64xf32>,
    %c63_143 = arith.constant 63 : index
    %c0_144 = arith.constant 0 : index
    %126 = vector.load %arg11[%c63_143, %c0_144] : memref<128x64xf32, #tpu.memory_space<vmem>>, vector<1x64xf32>
    %c52_145 = arith.constant 52 : index
    %c0_146 = arith.constant 0 : index
    %127 = vector.load %arg11[%c52_145, %c0_146] : memref<128x64xf32, #tpu.memory_space<vmem>>, vector<1x64xf32>
    tpu.vector_store %arg11[%c52_145, %c0_146], %126 {strides = array<i32>} : memref<128x64xf32, #tpu.memory_space<vmem>>, vector<1x64xf32>,
    %c53_147 = arith.constant 53 : index
    %c0_148 = arith.constant 0 : index
    %128 = vector.load %arg11[%c53_147, %c0_148] : memref<128x64xf32, #tpu.memory_space<vmem>>, vector<1x64xf32>
    %c64_149 = arith.constant 64 : index
    %c0_150 = arith.constant 0 : index
    %129 = vector.load %arg11[%c64_149, %c0_150] : memref<128x64xf32, #tpu.memory_space<vmem>>, vector<1x64xf32>
    tpu.vector_store %arg11[%c64_149, %c0_150], %128 {strides = array<i32>} : memref<128x64xf32, #tpu.memory_space<vmem>>, vector<1x64xf32>,
    %c76_151 = arith.constant 76 : index
    %c0_152 = arith.constant 0 : index
    %130 = vector.load %arg11[%c76_151, %c0_152] : memref<128x64xf32, #tpu.memory_space<vmem>>, vector<1x64xf32>
    %c65_153 = arith.constant 65 : index
    %c0_154 = arith.constant 0 : index
    %131 = vector.load %arg11[%c65_153, %c0_154] : memref<128x64xf32, #tpu.memory_space<vmem>>, vector<1x64xf32>
    tpu.vector_store %arg11[%c65_153, %c0_154], %130 {strides = array<i32>} : memref<128x64xf32, #tpu.memory_space<vmem>>, vector<1x64xf32>,
    %c66_155 = arith.constant 66 : index
    %c0_156 = arith.constant 0 : index
    %132 = vector.load %arg11[%c66_155, %c0_156] : memref<128x64xf32, #tpu.memory_space<vmem>>, vector<1x64xf32>
    %c77_157 = arith.constant 77 : index
    %c0_158 = arith.constant 0 : index
    %133 = vector.load %arg11[%c77_157, %c0_158] : memref<128x64xf32, #tpu.memory_space<vmem>>, vector<1x64xf32>
    tpu.vector_store %arg11[%c77_157, %c0_158], %132 {strides = array<i32>} : memref<128x64xf32, #tpu.memory_space<vmem>>, vector<1x64xf32>,
    %c89_159 = arith.constant 89 : index
    %c0_160 = arith.constant 0 : index
    %134 = vector.load %arg11[%c89_159, %c0_160] : memref<128x64xf32, #tpu.memory_space<vmem>>, vector<1x64xf32>
    %c78_161 = arith.constant 78 : index
    %c0_162 = arith.constant 0 : index
    %135 = vector.load %arg11[%c78_161, %c0_162] : memref<128x64xf32, #tpu.memory_space<vmem>>, vector<1x64xf32>
    tpu.vector_store %arg11[%c78_161, %c0_162], %134 {strides = array<i32>} : memref<128x64xf32, #tpu.memory_space<vmem>>, vector<1x64xf32>,
    %c79_163 = arith.constant 79 : index
    %c0_164 = arith.constant 0 : index
    %136 = vector.load %arg11[%c79_163, %c0_164] : memref<128x64xf32, #tpu.memory_space<vmem>>, vector<1x64xf32>
    %c90_165 = arith.constant 90 : index
    %c0_166 = arith.constant 0 : index
    %137 = vector.load %arg11[%c90_165, %c0_166] : memref<128x64xf32, #tpu.memory_space<vmem>>, vector<1x64xf32>
    tpu.vector_store %arg11[%c90_165, %c0_166], %136 {strides = array<i32>} : memref<128x64xf32, #tpu.memory_space<vmem>>, vector<1x64xf32>,
    %c102_167 = arith.constant 102 : index
    %c0_168 = arith.constant 0 : index
    %138 = vector.load %arg11[%c102_167, %c0_168] : memref<128x64xf32, #tpu.memory_space<vmem>>, vector<1x64xf32>
    %c91_169 = arith.constant 91 : index
    %c0_170 = arith.constant 0 : index
    %139 = vector.load %arg11[%c91_169, %c0_170] : memref<128x64xf32, #tpu.memory_space<vmem>>, vector<1x64xf32>
    tpu.vector_store %arg11[%c91_169, %c0_170], %138 {strides = array<i32>} : memref<128x64xf32, #tpu.memory_space<vmem>>, vector<1x64xf32>,
    %c92_171 = arith.constant 92 : index
    %c0_172 = arith.constant 0 : index
    %140 = vector.load %arg11[%c92_171, %c0_172] : memref<128x64xf32, #tpu.memory_space<vmem>>, vector<1x64xf32>
    %c103_173 = arith.constant 103 : index
    %c0_174 = arith.constant 0 : index
    %141 = vector.load %arg11[%c103_173, %c0_174] : memref<128x64xf32, #tpu.memory_space<vmem>>, vector<1x64xf32>
    tpu.vector_store %arg11[%c103_173, %c0_174], %140 {strides = array<i32>} : memref<128x64xf32, #tpu.memory_space<vmem>>, vector<1x64xf32>,
    %c115_175 = arith.constant 115 : index
    %c0_176 = arith.constant 0 : index
    %142 = vector.load %arg11[%c115_175, %c0_176] : memref<128x64xf32, #tpu.memory_space<vmem>>, vector<1x64xf32>
    %c104_177 = arith.constant 104 : index
    %c0_178 = arith.constant 0 : index
    %143 = vector.load %arg11[%c104_177, %c0_178] : memref<128x64xf32, #tpu.memory_space<vmem>>, vector<1x64xf32>
    tpu.vector_store %arg11[%c104_177, %c0_178], %142 {strides = array<i32>} : memref<128x64xf32, #tpu.memory_space<vmem>>, vector<1x64xf32>,
    %c105_179 = arith.constant 105 : index
    %c0_180 = arith.constant 0 : index
    %144 = vector.load %arg11[%c105_179, %c0_180] : memref<128x64xf32, #tpu.memory_space<vmem>>, vector<1x64xf32>
    %c116_181 = arith.constant 116 : index
    %c0_182 = arith.constant 0 : index
    %145 = vector.load %arg11[%c116_181, %c0_182] : memref<128x64xf32, #tpu.memory_space<vmem>>, vector<1x64xf32>
    tpu.vector_store %arg11[%c116_181, %c0_182], %144 {strides = array<i32>} : memref<128x64xf32, #tpu.memory_space<vmem>>, vector<1x64xf32>,
    %c0_183 = arith.constant 0 : index
    %c0_184 = arith.constant 0 : index
    %146 = vector.load %arg11[%c0_183, %c0_184] : memref<128x64xf32, #tpu.memory_space<vmem>>, vector<96x64xf32>
    %147 = arith.truncf %146 : vector<96x64xf32> to vector<96x64xbf16>
    %c0_185 = arith.constant 0 : index
    %c0_186 = arith.constant 0 : index
    %c0_187 = arith.constant 0 : index
    %148 = vector.load %arg3[%c0_185, %c0_186, %c0_187] : memref<9x64x64xbf16, #tpu.memory_space<vmem>>, vector<1x64x64xbf16>
    %149 = vector.shape_cast %148 : vector<1x64x64xbf16> to vector<64x64xbf16>
    %cst_188 = arith.constant dense<0.000000e+00> : vector<96x64xf32>
    %150 = tpu.matmul %147, %149, %cst_188 {dimension_numbers = #tpu.dot_dimension_numbers<[1], [0], [0], [1], [0, 0, 1, 1], [], []>} : vector<96x64xbf16>, vector<64x64xbf16>, vector<96x64xf32> -> vector<96x64xf32>
    %c1_189 = arith.constant 1 : index
    %c0_190 = arith.constant 0 : index
    %151 = vector.load %arg11[%c1_189, %c0_190] : memref<128x64xf32, #tpu.memory_space<vmem>>, vector<96x64xf32>
    %152 = arith.truncf %151 : vector<96x64xf32> to vector<96x64xbf16>
    %c1_191 = arith.constant 1 : index
    %c0_192 = arith.constant 0 : index
    %c0_193 = arith.constant 0 : index
    %153 = vector.load %arg3[%c1_191, %c0_192, %c0_193] : memref<9x64x64xbf16, #tpu.memory_space<vmem>>, vector<1x64x64xbf16>
    %154 = vector.shape_cast %153 : vector<1x64x64xbf16> to vector<64x64xbf16>
    %cst_194 = arith.constant dense<0.000000e+00> : vector<96x64xf32>
    %155 = tpu.matmul %152, %154, %cst_194 {dimension_numbers = #tpu.dot_dimension_numbers<[1], [0], [0], [1], [0, 0, 1, 1], [], []>} : vector<96x64xbf16>, vector<64x64xbf16>, vector<96x64xf32> -> vector<96x64xf32>
    %156 = arith.addf %150, %155 : vector<96x64xf32>
    %c2_195 = arith.constant 2 : index
    %c0_196 = arith.constant 0 : index
    %157 = vector.load %arg11[%c2_195, %c0_196] : memref<128x64xf32, #tpu.memory_space<vmem>>, vector<96x64xf32>
    %158 = arith.truncf %157 : vector<96x64xf32> to vector<96x64xbf16>
    %c2_197 = arith.constant 2 : index
    %c0_198 = arith.constant 0 : index
    %c0_199 = arith.constant 0 : index
    %159 = vector.load %arg3[%c2_197, %c0_198, %c0_199] : memref<9x64x64xbf16, #tpu.memory_space<vmem>>, vector<1x64x64xbf16>
    %160 = vector.shape_cast %159 : vector<1x64x64xbf16> to vector<64x64xbf16>
    %cst_200 = arith.constant dense<0.000000e+00> : vector<96x64xf32>
    %161 = tpu.matmul %158, %160, %cst_200 {dimension_numbers = #tpu.dot_dimension_numbers<[1], [0], [0], [1], [0, 0, 1, 1], [], []>} : vector<96x64xbf16>, vector<64x64xbf16>, vector<96x64xf32> -> vector<96x64xf32>
    %162 = arith.addf %156, %161 : vector<96x64xf32>
    %c13_201 = arith.constant 13 : index
    %c0_202 = arith.constant 0 : index
    %163 = vector.load %arg11[%c13_201, %c0_202] : memref<128x64xf32, #tpu.memory_space<vmem>>, vector<96x64xf32>
    %164 = arith.truncf %163 : vector<96x64xf32> to vector<96x64xbf16>
    %c3_203 = arith.constant 3 : index
    %c0_204 = arith.constant 0 : index
    %c0_205 = arith.constant 0 : index
    %165 = vector.load %arg3[%c3_203, %c0_204, %c0_205] : memref<9x64x64xbf16, #tpu.memory_space<vmem>>, vector<1x64x64xbf16>
    %166 = vector.shape_cast %165 : vector<1x64x64xbf16> to vector<64x64xbf16>
    %cst_206 = arith.constant dense<0.000000e+00> : vector<96x64xf32>
    %167 = tpu.matmul %164, %166, %cst_206 {dimension_numbers = #tpu.dot_dimension_numbers<[1], [0], [0], [1], [0, 0, 1, 1], [], []>} : vector<96x64xbf16>, vector<64x64xbf16>, vector<96x64xf32> -> vector<96x64xf32>
    %168 = arith.addf %162, %167 : vector<96x64xf32>
    %c14_207 = arith.constant 14 : index
    %c0_208 = arith.constant 0 : index
    %169 = vector.load %arg11[%c14_207, %c0_208] : memref<128x64xf32, #tpu.memory_space<vmem>>, vector<96x64xf32>
    %170 = arith.truncf %169 : vector<96x64xf32> to vector<96x64xbf16>
    %c4_209 = arith.constant 4 : index
    %c0_210 = arith.constant 0 : index
    %c0_211 = arith.constant 0 : index
    %171 = vector.load %arg3[%c4_209, %c0_210, %c0_211] : memref<9x64x64xbf16, #tpu.memory_space<vmem>>, vector<1x64x64xbf16>
    %172 = vector.shape_cast %171 : vector<1x64x64xbf16> to vector<64x64xbf16>
    %cst_212 = arith.constant dense<0.000000e+00> : vector<96x64xf32>
    %173 = tpu.matmul %170, %172, %cst_212 {dimension_numbers = #tpu.dot_dimension_numbers<[1], [0], [0], [1], [0, 0, 1, 1], [], []>} : vector<96x64xbf16>, vector<64x64xbf16>, vector<96x64xf32> -> vector<96x64xf32>
    %174 = arith.addf %168, %173 : vector<96x64xf32>
    %c15_213 = arith.constant 15 : index
    %c0_214 = arith.constant 0 : index
    %175 = vector.load %arg11[%c15_213, %c0_214] : memref<128x64xf32, #tpu.memory_space<vmem>>, vector<96x64xf32>
    %176 = arith.truncf %175 : vector<96x64xf32> to vector<96x64xbf16>
    %c5_215 = arith.constant 5 : index
    %c0_216 = arith.constant 0 : index
    %c0_217 = arith.constant 0 : index
    %177 = vector.load %arg3[%c5_215, %c0_216, %c0_217] : memref<9x64x64xbf16, #tpu.memory_space<vmem>>, vector<1x64x64xbf16>
    %178 = vector.shape_cast %177 : vector<1x64x64xbf16> to vector<64x64xbf16>
    %cst_218 = arith.constant dense<0.000000e+00> : vector<96x64xf32>
    %179 = tpu.matmul %176, %178, %cst_218 {dimension_numbers = #tpu.dot_dimension_numbers<[1], [0], [0], [1], [0, 0, 1, 1], [], []>} : vector<96x64xbf16>, vector<64x64xbf16>, vector<96x64xf32> -> vector<96x64xf32>
    %180 = arith.addf %174, %179 : vector<96x64xf32>
    %c26_219 = arith.constant 26 : index
    %c0_220 = arith.constant 0 : index
    %181 = vector.load %arg11[%c26_219, %c0_220] : memref<128x64xf32, #tpu.memory_space<vmem>>, vector<96x64xf32>
    %182 = arith.truncf %181 : vector<96x64xf32> to vector<96x64xbf16>
    %c6_221 = arith.constant 6 : index
    %c0_222 = arith.constant 0 : index
    %c0_223 = arith.constant 0 : index
    %183 = vector.load %arg3[%c6_221, %c0_222, %c0_223] : memref<9x64x64xbf16, #tpu.memory_space<vmem>>, vector<1x64x64xbf16>
    %184 = vector.shape_cast %183 : vector<1x64x64xbf16> to vector<64x64xbf16>
    %cst_224 = arith.constant dense<0.000000e+00> : vector<96x64xf32>
    %185 = tpu.matmul %182, %184, %cst_224 {dimension_numbers = #tpu.dot_dimension_numbers<[1], [0], [0], [1], [0, 0, 1, 1], [], []>} : vector<96x64xbf16>, vector<64x64xbf16>, vector<96x64xf32> -> vector<96x64xf32>
    %186 = arith.addf %180, %185 : vector<96x64xf32>
    %c27_225 = arith.constant 27 : index
    %c0_226 = arith.constant 0 : index
    %187 = vector.load %arg11[%c27_225, %c0_226] : memref<128x64xf32, #tpu.memory_space<vmem>>, vector<96x64xf32>
    %188 = arith.truncf %187 : vector<96x64xf32> to vector<96x64xbf16>
    %c7_227 = arith.constant 7 : index
    %c0_228 = arith.constant 0 : index
    %c0_229 = arith.constant 0 : index
    %189 = vector.load %arg3[%c7_227, %c0_228, %c0_229] : memref<9x64x64xbf16, #tpu.memory_space<vmem>>, vector<1x64x64xbf16>
    %190 = vector.shape_cast %189 : vector<1x64x64xbf16> to vector<64x64xbf16>
    %cst_230 = arith.constant dense<0.000000e+00> : vector<96x64xf32>
    %191 = tpu.matmul %188, %190, %cst_230 {dimension_numbers = #tpu.dot_dimension_numbers<[1], [0], [0], [1], [0, 0, 1, 1], [], []>} : vector<96x64xbf16>, vector<64x64xbf16>, vector<96x64xf32> -> vector<96x64xf32>
    %192 = arith.addf %186, %191 : vector<96x64xf32>
    %c28_231 = arith.constant 28 : index
    %c0_232 = arith.constant 0 : index
    %193 = vector.load %arg11[%c28_231, %c0_232] : memref<128x64xf32, #tpu.memory_space<vmem>>, vector<96x64xf32>
    %194 = arith.truncf %193 : vector<96x64xf32> to vector<96x64xbf16>
    %c8_233 = arith.constant 8 : index
    %c0_234 = arith.constant 0 : index
    %c0_235 = arith.constant 0 : index
    %195 = vector.load %arg3[%c8_233, %c0_234, %c0_235] : memref<9x64x64xbf16, #tpu.memory_space<vmem>>, vector<1x64x64xbf16>
    %196 = vector.shape_cast %195 : vector<1x64x64xbf16> to vector<64x64xbf16>
    %cst_236 = arith.constant dense<0.000000e+00> : vector<96x64xf32>
    %197 = tpu.matmul %194, %196, %cst_236 {dimension_numbers = #tpu.dot_dimension_numbers<[1], [0], [0], [1], [0, 0, 1, 1], [], []>} : vector<96x64xbf16>, vector<64x64xbf16>, vector<96x64xf32> -> vector<96x64xf32>
    %198 = arith.addf %192, %197 : vector<96x64xf32>
    %cst_237 = arith.constant 0.000000e+00 : f32
    %199 = vector.broadcast %cst_237 : f32 to vector<96x64xf32>
    %200 = arith.cmpf oge, %198, %199 : vector<96x64xf32>
    %cst_238 = arith.constant 0.00999999977 : f32
    %201 = vector.broadcast %cst_238 : f32 to vector<96x64xf32>
    %202 = arith.mulf %201, %198 : vector<96x64xf32>
    %203 = arith.select %200, %198, %202 : vector<96x64xi1>, vector<96x64xf32>
    %c0_239 = arith.constant 0 : index
    %c0_240 = arith.constant 0 : index
    %204 = vector.load %arg12[%c0_239, %c0_240] : memref<96x64xf32, #tpu.memory_space<vmem>>, vector<96x64xf32>
    tpu.vector_store %arg12[%c0_239, %c0_240], %203 {strides = array<i32>} : memref<96x64xf32, #tpu.memory_space<vmem>>, vector<96x64xf32>,
    %c0_241 = arith.constant 0 : index
    %c0_242 = arith.constant 0 : index
    %205 = vector.load %arg12[%c0_241, %c0_242] : memref<96x64xf32, #tpu.memory_space<vmem>>, vector<1x64xf32>
    %c0_243 = arith.constant 0 : index
    %c0_244 = arith.constant 0 : index
    %206 = vector.load %arg13[%c0_243, %c0_244] : memref<1x4928xf32, #tpu.memory_space<vmem>>, vector<1x64xf32>
    tpu.vector_store %arg13[%c0_243, %c0_244], %205 {strides = array<i32>} : memref<1x4928xf32, #tpu.memory_space<vmem>>, vector<1x64xf32>,
    %c1_245 = arith.constant 1 : index
    %c0_246 = arith.constant 0 : index
    %207 = vector.load %arg12[%c1_245, %c0_246] : memref<96x64xf32, #tpu.memory_space<vmem>>, vector<1x64xf32>
    %c0_247 = arith.constant 0 : index
    %c64_248 = arith.constant 64 : index
    %208 = vector.load %arg13[%c0_247, %c64_248] : memref<1x4928xf32, #tpu.memory_space<vmem>>, vector<1x64xf32>
    tpu.vector_store %arg13[%c0_247, %c64_248], %207 {strides = array<i32>} : memref<1x4928xf32, #tpu.memory_space<vmem>>, vector<1x64xf32>,
    %c2_249 = arith.constant 2 : index
    %c0_250 = arith.constant 0 : index
    %209 = vector.load %arg12[%c2_249, %c0_250] : memref<96x64xf32, #tpu.memory_space<vmem>>, vector<1x64xf32>
    %c0_251 = arith.constant 0 : index
    %c128 = arith.constant 128 : index
    %210 = vector.load %arg13[%c0_251, %c128] : memref<1x4928xf32, #tpu.memory_space<vmem>>, vector<1x64xf32>
    tpu.vector_store %arg13[%c0_251, %c128], %209 {strides = array<i32>} : memref<1x4928xf32, #tpu.memory_space<vmem>>, vector<1x64xf32>,
    %c3_252 = arith.constant 3 : index
    %c0_253 = arith.constant 0 : index
    %211 = vector.load %arg12[%c3_252, %c0_253] : memref<96x64xf32, #tpu.memory_space<vmem>>, vector<1x64xf32>
    %c0_254 = arith.constant 0 : index
    %c192 = arith.constant 192 : index
    %212 = vector.load %arg13[%c0_254, %c192] : memref<1x4928xf32, #tpu.memory_space<vmem>>, vector<1x64xf32>
    tpu.vector_store %arg13[%c0_254, %c192], %211 {strides = array<i32>} : memref<1x4928xf32, #tpu.memory_space<vmem>>, vector<1x64xf32>,
    %c4_255 = arith.constant 4 : index
    %c0_256 = arith.constant 0 : index
    %213 = vector.load %arg12[%c4_255, %c0_256] : memref<96x64xf32, #tpu.memory_space<vmem>>, vector<1x64xf32>
    %c0_257 = arith.constant 0 : index
    %c256 = arith.constant 256 : index
    %214 = vector.load %arg13[%c0_257, %c256] : memref<1x4928xf32, #tpu.memory_space<vmem>>, vector<1x64xf32>
    tpu.vector_store %arg13[%c0_257, %c256], %213 {strides = array<i32>} : memref<1x4928xf32, #tpu.memory_space<vmem>>, vector<1x64xf32>,
    %c5_258 = arith.constant 5 : index
    %c0_259 = arith.constant 0 : index
    %215 = vector.load %arg12[%c5_258, %c0_259] : memref<96x64xf32, #tpu.memory_space<vmem>>, vector<1x64xf32>
    %c0_260 = arith.constant 0 : index
    %c320 = arith.constant 320 : index
    %216 = vector.load %arg13[%c0_260, %c320] : memref<1x4928xf32, #tpu.memory_space<vmem>>, vector<1x64xf32>
    tpu.vector_store %arg13[%c0_260, %c320], %215 {strides = array<i32>} : memref<1x4928xf32, #tpu.memory_space<vmem>>, vector<1x64xf32>,
    %c6_261 = arith.constant 6 : index
    %c0_262 = arith.constant 0 : index
    %217 = vector.load %arg12[%c6_261, %c0_262] : memref<96x64xf32, #tpu.memory_space<vmem>>, vector<1x64xf32>
    %c0_263 = arith.constant 0 : index
    %c384 = arith.constant 384 : index
    %218 = vector.load %arg13[%c0_263, %c384] : memref<1x4928xf32, #tpu.memory_space<vmem>>, vector<1x64xf32>
    tpu.vector_store %arg13[%c0_263, %c384], %217 {strides = array<i32>} : memref<1x4928xf32, #tpu.memory_space<vmem>>, vector<1x64xf32>,
    %c7_264 = arith.constant 7 : index
    %c0_265 = arith.constant 0 : index
    %219 = vector.load %arg12[%c7_264, %c0_265] : memref<96x64xf32, #tpu.memory_space<vmem>>, vector<1x64xf32>
    %c0_266 = arith.constant 0 : index
    %c448 = arith.constant 448 : index
    %220 = vector.load %arg13[%c0_266, %c448] : memref<1x4928xf32, #tpu.memory_space<vmem>>, vector<1x64xf32>
    tpu.vector_store %arg13[%c0_266, %c448], %219 {strides = array<i32>} : memref<1x4928xf32, #tpu.memory_space<vmem>>, vector<1x64xf32>,
    %c8_267 = arith.constant 8 : index
    %c0_268 = arith.constant 0 : index
    %221 = vector.load %arg12[%c8_267, %c0_268] : memref<96x64xf32, #tpu.memory_space<vmem>>, vector<1x64xf32>
    %c0_269 = arith.constant 0 : index
    %c512 = arith.constant 512 : index
    %222 = vector.load %arg13[%c0_269, %c512] : memref<1x4928xf32, #tpu.memory_space<vmem>>, vector<1x64xf32>
    tpu.vector_store %arg13[%c0_269, %c512], %221 {strides = array<i32>} : memref<1x4928xf32, #tpu.memory_space<vmem>>, vector<1x64xf32>,
    %c9 = arith.constant 9 : index
    %c0_270 = arith.constant 0 : index
    %223 = vector.load %arg12[%c9, %c0_270] : memref<96x64xf32, #tpu.memory_space<vmem>>, vector<1x64xf32>
    %c0_271 = arith.constant 0 : index
    %c576 = arith.constant 576 : index
    %224 = vector.load %arg13[%c0_271, %c576] : memref<1x4928xf32, #tpu.memory_space<vmem>>, vector<1x64xf32>
    tpu.vector_store %arg13[%c0_271, %c576], %223 {strides = array<i32>} : memref<1x4928xf32, #tpu.memory_space<vmem>>, vector<1x64xf32>,
    %c10 = arith.constant 10 : index
    %c0_272 = arith.constant 0 : index
    %225 = vector.load %arg12[%c10, %c0_272] : memref<96x64xf32, #tpu.memory_space<vmem>>, vector<1x64xf32>
    %c0_273 = arith.constant 0 : index
    %c640 = arith.constant 640 : index
    %226 = vector.load %arg13[%c0_273, %c640] : memref<1x4928xf32, #tpu.memory_space<vmem>>, vector<1x64xf32>
    tpu.vector_store %arg13[%c0_273, %c640], %225 {strides = array<i32>} : memref<1x4928xf32, #tpu.memory_space<vmem>>, vector<1x64xf32>,
    %c13_274 = arith.constant 13 : index
    %c0_275 = arith.constant 0 : index
    %227 = vector.load %arg12[%c13_274, %c0_275] : memref<96x64xf32, #tpu.memory_space<vmem>>, vector<1x64xf32>
    %c0_276 = arith.constant 0 : index
    %c704 = arith.constant 704 : index
    %228 = vector.load %arg13[%c0_276, %c704] : memref<1x4928xf32, #tpu.memory_space<vmem>>, vector<1x64xf32>
    tpu.vector_store %arg13[%c0_276, %c704], %227 {strides = array<i32>} : memref<1x4928xf32, #tpu.memory_space<vmem>>, vector<1x64xf32>,
    %c14_277 = arith.constant 14 : index
    %c0_278 = arith.constant 0 : index
    %229 = vector.load %arg12[%c14_277, %c0_278] : memref<96x64xf32, #tpu.memory_space<vmem>>, vector<1x64xf32>
    %c0_279 = arith.constant 0 : index
    %c768 = arith.constant 768 : index
    %230 = vector.load %arg13[%c0_279, %c768] : memref<1x4928xf32, #tpu.memory_space<vmem>>, vector<1x64xf32>
    tpu.vector_store %arg13[%c0_279, %c768], %229 {strides = array<i32>} : memref<1x4928xf32, #tpu.memory_space<vmem>>, vector<1x64xf32>,
    %c15_280 = arith.constant 15 : index
    %c0_281 = arith.constant 0 : index
    %231 = vector.load %arg12[%c15_280, %c0_281] : memref<96x64xf32, #tpu.memory_space<vmem>>, vector<1x64xf32>
    %c0_282 = arith.constant 0 : index
    %c832 = arith.constant 832 : index
    %232 = vector.load %arg13[%c0_282, %c832] : memref<1x4928xf32, #tpu.memory_space<vmem>>, vector<1x64xf32>
    tpu.vector_store %arg13[%c0_282, %c832], %231 {strides = array<i32>} : memref<1x4928xf32, #tpu.memory_space<vmem>>, vector<1x64xf32>,
    %c16 = arith.constant 16 : index
    %c0_283 = arith.constant 0 : index
    %233 = vector.load %arg12[%c16, %c0_283] : memref<96x64xf32, #tpu.memory_space<vmem>>, vector<1x64xf32>
    %c0_284 = arith.constant 0 : index
    %c896 = arith.constant 896 : index
    %234 = vector.load %arg13[%c0_284, %c896] : memref<1x4928xf32, #tpu.memory_space<vmem>>, vector<1x64xf32>
    tpu.vector_store %arg13[%c0_284, %c896], %233 {strides = array<i32>} : memref<1x4928xf32, #tpu.memory_space<vmem>>, vector<1x64xf32>,
    %c17 = arith.constant 17 : index
    %c0_285 = arith.constant 0 : index
    %235 = vector.load %arg12[%c17, %c0_285] : memref<96x64xf32, #tpu.memory_space<vmem>>, vector<1x64xf32>
    %c0_286 = arith.constant 0 : index
    %c960 = arith.constant 960 : index
    %236 = vector.load %arg13[%c0_286, %c960] : memref<1x4928xf32, #tpu.memory_space<vmem>>, vector<1x64xf32>
    tpu.vector_store %arg13[%c0_286, %c960], %235 {strides = array<i32>} : memref<1x4928xf32, #tpu.memory_space<vmem>>, vector<1x64xf32>,
    %c18 = arith.constant 18 : index
    %c0_287 = arith.constant 0 : index
    %237 = vector.load %arg12[%c18, %c0_287] : memref<96x64xf32, #tpu.memory_space<vmem>>, vector<1x64xf32>
    %c0_288 = arith.constant 0 : index
    %c1024 = arith.constant 1024 : index
    %238 = vector.load %arg13[%c0_288, %c1024] : memref<1x4928xf32, #tpu.memory_space<vmem>>, vector<1x64xf32>
    tpu.vector_store %arg13[%c0_288, %c1024], %237 {strides = array<i32>} : memref<1x4928xf32, #tpu.memory_space<vmem>>, vector<1x64xf32>,
    %c19 = arith.constant 19 : index
    %c0_289 = arith.constant 0 : index
    %239 = vector.load %arg12[%c19, %c0_289] : memref<96x64xf32, #tpu.memory_space<vmem>>, vector<1x64xf32>
    %c0_290 = arith.constant 0 : index
    %c1088 = arith.constant 1088 : index
    %240 = vector.load %arg13[%c0_290, %c1088] : memref<1x4928xf32, #tpu.memory_space<vmem>>, vector<1x64xf32>
    tpu.vector_store %arg13[%c0_290, %c1088], %239 {strides = array<i32>} : memref<1x4928xf32, #tpu.memory_space<vmem>>, vector<1x64xf32>,
    %c20 = arith.constant 20 : index
    %c0_291 = arith.constant 0 : index
    %241 = vector.load %arg12[%c20, %c0_291] : memref<96x64xf32, #tpu.memory_space<vmem>>, vector<1x64xf32>
    %c0_292 = arith.constant 0 : index
    %c1152 = arith.constant 1152 : index
    %242 = vector.load %arg13[%c0_292, %c1152] : memref<1x4928xf32, #tpu.memory_space<vmem>>, vector<1x64xf32>
    tpu.vector_store %arg13[%c0_292, %c1152], %241 {strides = array<i32>} : memref<1x4928xf32, #tpu.memory_space<vmem>>, vector<1x64xf32>,
    %c21 = arith.constant 21 : index
    %c0_293 = arith.constant 0 : index
    %243 = vector.load %arg12[%c21, %c0_293] : memref<96x64xf32, #tpu.memory_space<vmem>>, vector<1x64xf32>
    %c0_294 = arith.constant 0 : index
    %c1216 = arith.constant 1216 : index
    %244 = vector.load %arg13[%c0_294, %c1216] : memref<1x4928xf32, #tpu.memory_space<vmem>>, vector<1x64xf32>
    tpu.vector_store %arg13[%c0_294, %c1216], %243 {strides = array<i32>} : memref<1x4928xf32, #tpu.memory_space<vmem>>, vector<1x64xf32>,
    %c22 = arith.constant 22 : index
    %c0_295 = arith.constant 0 : index
    %245 = vector.load %arg12[%c22, %c0_295] : memref<96x64xf32, #tpu.memory_space<vmem>>, vector<1x64xf32>
    %c0_296 = arith.constant 0 : index
    %c1280 = arith.constant 1280 : index
    %246 = vector.load %arg13[%c0_296, %c1280] : memref<1x4928xf32, #tpu.memory_space<vmem>>, vector<1x64xf32>
    tpu.vector_store %arg13[%c0_296, %c1280], %245 {strides = array<i32>} : memref<1x4928xf32, #tpu.memory_space<vmem>>, vector<1x64xf32>,
    %c23 = arith.constant 23 : index
    %c0_297 = arith.constant 0 : index
    %247 = vector.load %arg12[%c23, %c0_297] : memref<96x64xf32, #tpu.memory_space<vmem>>, vector<1x64xf32>
    %c0_298 = arith.constant 0 : index
    %c1344 = arith.constant 1344 : index
    %248 = vector.load %arg13[%c0_298, %c1344] : memref<1x4928xf32, #tpu.memory_space<vmem>>, vector<1x64xf32>
    tpu.vector_store %arg13[%c0_298, %c1344], %247 {strides = array<i32>} : memref<1x4928xf32, #tpu.memory_space<vmem>>, vector<1x64xf32>,
    %c26_299 = arith.constant 26 : index
    %c0_300 = arith.constant 0 : index
    %249 = vector.load %arg12[%c26_299, %c0_300] : memref<96x64xf32, #tpu.memory_space<vmem>>, vector<1x64xf32>
    %c0_301 = arith.constant 0 : index
    %c1408 = arith.constant 1408 : index
    %250 = vector.load %arg13[%c0_301, %c1408] : memref<1x4928xf32, #tpu.memory_space<vmem>>, vector<1x64xf32>
    tpu.vector_store %arg13[%c0_301, %c1408], %249 {strides = array<i32>} : memref<1x4928xf32, #tpu.memory_space<vmem>>, vector<1x64xf32>,
    %c27_302 = arith.constant 27 : index
    %c0_303 = arith.constant 0 : index
    %251 = vector.load %arg12[%c27_302, %c0_303] : memref<96x64xf32, #tpu.memory_space<vmem>>, vector<1x64xf32>
    %c0_304 = arith.constant 0 : index
    %c1472 = arith.constant 1472 : index
    %252 = vector.load %arg13[%c0_304, %c1472] : memref<1x4928xf32, #tpu.memory_space<vmem>>, vector<1x64xf32>
    tpu.vector_store %arg13[%c0_304, %c1472], %251 {strides = array<i32>} : memref<1x4928xf32, #tpu.memory_space<vmem>>, vector<1x64xf32>,
    %c28_305 = arith.constant 28 : index
    %c0_306 = arith.constant 0 : index
    %253 = vector.load %arg12[%c28_305, %c0_306] : memref<96x64xf32, #tpu.memory_space<vmem>>, vector<1x64xf32>
    %c0_307 = arith.constant 0 : index
    %c1536 = arith.constant 1536 : index
    %254 = vector.load %arg13[%c0_307, %c1536] : memref<1x4928xf32, #tpu.memory_space<vmem>>, vector<1x64xf32>
    tpu.vector_store %arg13[%c0_307, %c1536], %253 {strides = array<i32>} : memref<1x4928xf32, #tpu.memory_space<vmem>>, vector<1x64xf32>,
    %c29 = arith.constant 29 : index
    %c0_308 = arith.constant 0 : index
    %255 = vector.load %arg12[%c29, %c0_308] : memref<96x64xf32, #tpu.memory_space<vmem>>, vector<1x64xf32>
    %c0_309 = arith.constant 0 : index
    %c1600 = arith.constant 1600 : index
    %256 = vector.load %arg13[%c0_309, %c1600] : memref<1x4928xf32, #tpu.memory_space<vmem>>, vector<1x64xf32>
    tpu.vector_store %arg13[%c0_309, %c1600], %255 {strides = array<i32>} : memref<1x4928xf32, #tpu.memory_space<vmem>>, vector<1x64xf32>,
    %c30 = arith.constant 30 : index
    %c0_310 = arith.constant 0 : index
    %257 = vector.load %arg12[%c30, %c0_310] : memref<96x64xf32, #tpu.memory_space<vmem>>, vector<1x64xf32>
    %c0_311 = arith.constant 0 : index
    %c1664 = arith.constant 1664 : index
    %258 = vector.load %arg13[%c0_311, %c1664] : memref<1x4928xf32, #tpu.memory_space<vmem>>, vector<1x64xf32>
    tpu.vector_store %arg13[%c0_311, %c1664], %257 {strides = array<i32>} : memref<1x4928xf32, #tpu.memory_space<vmem>>, vector<1x64xf32>,
    %c31 = arith.constant 31 : index
    %c0_312 = arith.constant 0 : index
    %259 = vector.load %arg12[%c31, %c0_312] : memref<96x64xf32, #tpu.memory_space<vmem>>, vector<1x64xf32>
    %c0_313 = arith.constant 0 : index
    %c1728 = arith.constant 1728 : index
    %260 = vector.load %arg13[%c0_313, %c1728] : memref<1x4928xf32, #tpu.memory_space<vmem>>, vector<1x64xf32>
    tpu.vector_store %arg13[%c0_313, %c1728], %259 {strides = array<i32>} : memref<1x4928xf32, #tpu.memory_space<vmem>>, vector<1x64xf32>,
    %c32 = arith.constant 32 : index
    %c0_314 = arith.constant 0 : index
    %261 = vector.load %arg12[%c32, %c0_314] : memref<96x64xf32, #tpu.memory_space<vmem>>, vector<1x64xf32>
    %c0_315 = arith.constant 0 : index
    %c1792 = arith.constant 1792 : index
    %262 = vector.load %arg13[%c0_315, %c1792] : memref<1x4928xf32, #tpu.memory_space<vmem>>, vector<1x64xf32>
    tpu.vector_store %arg13[%c0_315, %c1792], %261 {strides = array<i32>} : memref<1x4928xf32, #tpu.memory_space<vmem>>, vector<1x64xf32>,
    %c33 = arith.constant 33 : index
    %c0_316 = arith.constant 0 : index
    %263 = vector.load %arg12[%c33, %c0_316] : memref<96x64xf32, #tpu.memory_space<vmem>>, vector<1x64xf32>
    %c0_317 = arith.constant 0 : index
    %c1856 = arith.constant 1856 : index
    %264 = vector.load %arg13[%c0_317, %c1856] : memref<1x4928xf32, #tpu.memory_space<vmem>>, vector<1x64xf32>
    tpu.vector_store %arg13[%c0_317, %c1856], %263 {strides = array<i32>} : memref<1x4928xf32, #tpu.memory_space<vmem>>, vector<1x64xf32>,
    %c34 = arith.constant 34 : index
    %c0_318 = arith.constant 0 : index
    %265 = vector.load %arg12[%c34, %c0_318] : memref<96x64xf32, #tpu.memory_space<vmem>>, vector<1x64xf32>
    %c0_319 = arith.constant 0 : index
    %c1920 = arith.constant 1920 : index
    %266 = vector.load %arg13[%c0_319, %c1920] : memref<1x4928xf32, #tpu.memory_space<vmem>>, vector<1x64xf32>
    tpu.vector_store %arg13[%c0_319, %c1920], %265 {strides = array<i32>} : memref<1x4928xf32, #tpu.memory_space<vmem>>, vector<1x64xf32>,
    %c35 = arith.constant 35 : index
    %c0_320 = arith.constant 0 : index
    %267 = vector.load %arg12[%c35, %c0_320] : memref<96x64xf32, #tpu.memory_space<vmem>>, vector<1x64xf32>
    %c0_321 = arith.constant 0 : index
    %c1984 = arith.constant 1984 : index
    %268 = vector.load %arg13[%c0_321, %c1984] : memref<1x4928xf32, #tpu.memory_space<vmem>>, vector<1x64xf32>
    tpu.vector_store %arg13[%c0_321, %c1984], %267 {strides = array<i32>} : memref<1x4928xf32, #tpu.memory_space<vmem>>, vector<1x64xf32>,
    %c36 = arith.constant 36 : index
    %c0_322 = arith.constant 0 : index
    %269 = vector.load %arg12[%c36, %c0_322] : memref<96x64xf32, #tpu.memory_space<vmem>>, vector<1x64xf32>
    %c0_323 = arith.constant 0 : index
    %c2048 = arith.constant 2048 : index
    %270 = vector.load %arg13[%c0_323, %c2048] : memref<1x4928xf32, #tpu.memory_space<vmem>>, vector<1x64xf32>
    tpu.vector_store %arg13[%c0_323, %c2048], %269 {strides = array<i32>} : memref<1x4928xf32, #tpu.memory_space<vmem>>, vector<1x64xf32>,
    %c39_324 = arith.constant 39 : index
    %c0_325 = arith.constant 0 : index
    %271 = vector.load %arg12[%c39_324, %c0_325] : memref<96x64xf32, #tpu.memory_space<vmem>>, vector<1x64xf32>
    %c0_326 = arith.constant 0 : index
    %c2112 = arith.constant 2112 : index
    %272 = vector.load %arg13[%c0_326, %c2112] : memref<1x4928xf32, #tpu.memory_space<vmem>>, vector<1x64xf32>
    tpu.vector_store %arg13[%c0_326, %c2112], %271 {strides = array<i32>} : memref<1x4928xf32, #tpu.memory_space<vmem>>, vector<1x64xf32>,
    %c40_327 = arith.constant 40 : index
    %c0_328 = arith.constant 0 : index
    %273 = vector.load %arg12[%c40_327, %c0_328] : memref<96x64xf32, #tpu.memory_space<vmem>>, vector<1x64xf32>
    %c0_329 = arith.constant 0 : index
    %c2176 = arith.constant 2176 : index
    %274 = vector.load %arg13[%c0_329, %c2176] : memref<1x4928xf32, #tpu.memory_space<vmem>>, vector<1x64xf32>
    tpu.vector_store %arg13[%c0_329, %c2176], %273 {strides = array<i32>} : memref<1x4928xf32, #tpu.memory_space<vmem>>, vector<1x64xf32>,
    %c41 = arith.constant 41 : index
    %c0_330 = arith.constant 0 : index
    %275 = vector.load %arg12[%c41, %c0_330] : memref<96x64xf32, #tpu.memory_space<vmem>>, vector<1x64xf32>
    %c0_331 = arith.constant 0 : index
    %c2240 = arith.constant 2240 : index
    %276 = vector.load %arg13[%c0_331, %c2240] : memref<1x4928xf32, #tpu.memory_space<vmem>>, vector<1x64xf32>
    tpu.vector_store %arg13[%c0_331, %c2240], %275 {strides = array<i32>} : memref<1x4928xf32, #tpu.memory_space<vmem>>, vector<1x64xf32>,
    %c42 = arith.constant 42 : index
    %c0_332 = arith.constant 0 : index
    %277 = vector.load %arg12[%c42, %c0_332] : memref<96x64xf32, #tpu.memory_space<vmem>>, vector<1x64xf32>
    %c0_333 = arith.constant 0 : index
    %c2304 = arith.constant 2304 : index
    %278 = vector.load %arg13[%c0_333, %c2304] : memref<1x4928xf32, #tpu.memory_space<vmem>>, vector<1x64xf32>
    tpu.vector_store %arg13[%c0_333, %c2304], %277 {strides = array<i32>} : memref<1x4928xf32, #tpu.memory_space<vmem>>, vector<1x64xf32>,
    %c43 = arith.constant 43 : index
    %c0_334 = arith.constant 0 : index
    %279 = vector.load %arg12[%c43, %c0_334] : memref<96x64xf32, #tpu.memory_space<vmem>>, vector<1x64xf32>
    %c0_335 = arith.constant 0 : index
    %c2368 = arith.constant 2368 : index
    %280 = vector.load %arg13[%c0_335, %c2368] : memref<1x4928xf32, #tpu.memory_space<vmem>>, vector<1x64xf32>
    tpu.vector_store %arg13[%c0_335, %c2368], %279 {strides = array<i32>} : memref<1x4928xf32, #tpu.memory_space<vmem>>, vector<1x64xf32>,
    %c44 = arith.constant 44 : index
    %c0_336 = arith.constant 0 : index
    %281 = vector.load %arg12[%c44, %c0_336] : memref<96x64xf32, #tpu.memory_space<vmem>>, vector<1x64xf32>
    %c0_337 = arith.constant 0 : index
    %c2432 = arith.constant 2432 : index
    %282 = vector.load %arg13[%c0_337, %c2432] : memref<1x4928xf32, #tpu.memory_space<vmem>>, vector<1x64xf32>
    tpu.vector_store %arg13[%c0_337, %c2432], %281 {strides = array<i32>} : memref<1x4928xf32, #tpu.memory_space<vmem>>, vector<1x64xf32>,
    %c45 = arith.constant 45 : index
    %c0_338 = arith.constant 0 : index
    %283 = vector.load %arg12[%c45, %c0_338] : memref<96x64xf32, #tpu.memory_space<vmem>>, vector<1x64xf32>
    %c0_339 = arith.constant 0 : index
    %c2496 = arith.constant 2496 : index
    %284 = vector.load %arg13[%c0_339, %c2496] : memref<1x4928xf32, #tpu.memory_space<vmem>>, vector<1x64xf32>
    tpu.vector_store %arg13[%c0_339, %c2496], %283 {strides = array<i32>} : memref<1x4928xf32, #tpu.memory_space<vmem>>, vector<1x64xf32>,
    %c46 = arith.constant 46 : index
    %c0_340 = arith.constant 0 : index
    %285 = vector.load %arg12[%c46, %c0_340] : memref<96x64xf32, #tpu.memory_space<vmem>>, vector<1x64xf32>
    %c0_341 = arith.constant 0 : index
    %c2560 = arith.constant 2560 : index
    %286 = vector.load %arg13[%c0_341, %c2560] : memref<1x4928xf32, #tpu.memory_space<vmem>>, vector<1x64xf32>
    tpu.vector_store %arg13[%c0_341, %c2560], %285 {strides = array<i32>} : memref<1x4928xf32, #tpu.memory_space<vmem>>, vector<1x64xf32>,
    %c47 = arith.constant 47 : index
    %c0_342 = arith.constant 0 : index
    %287 = vector.load %arg12[%c47, %c0_342] : memref<96x64xf32, #tpu.memory_space<vmem>>, vector<1x64xf32>
    %c0_343 = arith.constant 0 : index
    %c2624 = arith.constant 2624 : index
    %288 = vector.load %arg13[%c0_343, %c2624] : memref<1x4928xf32, #tpu.memory_space<vmem>>, vector<1x64xf32>
    tpu.vector_store %arg13[%c0_343, %c2624], %287 {strides = array<i32>} : memref<1x4928xf32, #tpu.memory_space<vmem>>, vector<1x64xf32>,
    %c48 = arith.constant 48 : index
    %c0_344 = arith.constant 0 : index
    %289 = vector.load %arg12[%c48, %c0_344] : memref<96x64xf32, #tpu.memory_space<vmem>>, vector<1x64xf32>
    %c0_345 = arith.constant 0 : index
    %c2688 = arith.constant 2688 : index
    %290 = vector.load %arg13[%c0_345, %c2688] : memref<1x4928xf32, #tpu.memory_space<vmem>>, vector<1x64xf32>
    tpu.vector_store %arg13[%c0_345, %c2688], %289 {strides = array<i32>} : memref<1x4928xf32, #tpu.memory_space<vmem>>, vector<1x64xf32>,
    %c49 = arith.constant 49 : index
    %c0_346 = arith.constant 0 : index
    %291 = vector.load %arg12[%c49, %c0_346] : memref<96x64xf32, #tpu.memory_space<vmem>>, vector<1x64xf32>
    %c0_347 = arith.constant 0 : index
    %c2752 = arith.constant 2752 : index
    %292 = vector.load %arg13[%c0_347, %c2752] : memref<1x4928xf32, #tpu.memory_space<vmem>>, vector<1x64xf32>
    tpu.vector_store %arg13[%c0_347, %c2752], %291 {strides = array<i32>} : memref<1x4928xf32, #tpu.memory_space<vmem>>, vector<1x64xf32>,
    %c52_348 = arith.constant 52 : index
    %c0_349 = arith.constant 0 : index
    %293 = vector.load %arg12[%c52_348, %c0_349] : memref<96x64xf32, #tpu.memory_space<vmem>>, vector<1x64xf32>
    %c0_350 = arith.constant 0 : index
    %c2816 = arith.constant 2816 : index
    %294 = vector.load %arg13[%c0_350, %c2816] : memref<1x4928xf32, #tpu.memory_space<vmem>>, vector<1x64xf32>
    tpu.vector_store %arg13[%c0_350, %c2816], %293 {strides = array<i32>} : memref<1x4928xf32, #tpu.memory_space<vmem>>, vector<1x64xf32>,
    %c53_351 = arith.constant 53 : index
    %c0_352 = arith.constant 0 : index
    %295 = vector.load %arg12[%c53_351, %c0_352] : memref<96x64xf32, #tpu.memory_space<vmem>>, vector<1x64xf32>
    %c0_353 = arith.constant 0 : index
    %c2880 = arith.constant 2880 : index
    %296 = vector.load %arg13[%c0_353, %c2880] : memref<1x4928xf32, #tpu.memory_space<vmem>>, vector<1x64xf32>
    tpu.vector_store %arg13[%c0_353, %c2880], %295 {strides = array<i32>} : memref<1x4928xf32, #tpu.memory_space<vmem>>, vector<1x64xf32>,
    %c54 = arith.constant 54 : index
    %c0_354 = arith.constant 0 : index
    %297 = vector.load %arg12[%c54, %c0_354] : memref<96x64xf32, #tpu.memory_space<vmem>>, vector<1x64xf32>
    %c0_355 = arith.constant 0 : index
    %c2944 = arith.constant 2944 : index
    %298 = vector.load %arg13[%c0_355, %c2944] : memref<1x4928xf32, #tpu.memory_space<vmem>>, vector<1x64xf32>
    tpu.vector_store %arg13[%c0_355, %c2944], %297 {strides = array<i32>} : memref<1x4928xf32, #tpu.memory_space<vmem>>, vector<1x64xf32>,
    %c55 = arith.constant 55 : index
    %c0_356 = arith.constant 0 : index
    %299 = vector.load %arg12[%c55, %c0_356] : memref<96x64xf32, #tpu.memory_space<vmem>>, vector<1x64xf32>
    %c0_357 = arith.constant 0 : index
    %c3008 = arith.constant 3008 : index
    %300 = vector.load %arg13[%c0_357, %c3008] : memref<1x4928xf32, #tpu.memory_space<vmem>>, vector<1x64xf32>
    tpu.vector_store %arg13[%c0_357, %c3008], %299 {strides = array<i32>} : memref<1x4928xf32, #tpu.memory_space<vmem>>, vector<1x64xf32>,
    %c56 = arith.constant 56 : index
    %c0_358 = arith.constant 0 : index
    %301 = vector.load %arg12[%c56, %c0_358] : memref<96x64xf32, #tpu.memory_space<vmem>>, vector<1x64xf32>
    %c0_359 = arith.constant 0 : index
    %c3072 = arith.constant 3072 : index
    %302 = vector.load %arg13[%c0_359, %c3072] : memref<1x4928xf32, #tpu.memory_space<vmem>>, vector<1x64xf32>
    tpu.vector_store %arg13[%c0_359, %c3072], %301 {strides = array<i32>} : memref<1x4928xf32, #tpu.memory_space<vmem>>, vector<1x64xf32>,
    %c57 = arith.constant 57 : index
    %c0_360 = arith.constant 0 : index
    %303 = vector.load %arg12[%c57, %c0_360] : memref<96x64xf32, #tpu.memory_space<vmem>>, vector<1x64xf32>
    %c0_361 = arith.constant 0 : index
    %c3136 = arith.constant 3136 : index
    %304 = vector.load %arg13[%c0_361, %c3136] : memref<1x4928xf32, #tpu.memory_space<vmem>>, vector<1x64xf32>
    tpu.vector_store %arg13[%c0_361, %c3136], %303 {strides = array<i32>} : memref<1x4928xf32, #tpu.memory_space<vmem>>, vector<1x64xf32>,
    %c58 = arith.constant 58 : index
    %c0_362 = arith.constant 0 : index
    %305 = vector.load %arg12[%c58, %c0_362] : memref<96x64xf32, #tpu.memory_space<vmem>>, vector<1x64xf32>
    %c0_363 = arith.constant 0 : index
    %c3200 = arith.constant 3200 : index
    %306 = vector.load %arg13[%c0_363, %c3200] : memref<1x4928xf32, #tpu.memory_space<vmem>>, vector<1x64xf32>
    tpu.vector_store %arg13[%c0_363, %c3200], %305 {strides = array<i32>} : memref<1x4928xf32, #tpu.memory_space<vmem>>, vector<1x64xf32>,
    %c59 = arith.constant 59 : index
    %c0_364 = arith.constant 0 : index
    %307 = vector.load %arg12[%c59, %c0_364] : memref<96x64xf32, #tpu.memory_space<vmem>>, vector<1x64xf32>
    %c0_365 = arith.constant 0 : index
    %c3264 = arith.constant 3264 : index
    %308 = vector.load %arg13[%c0_365, %c3264] : memref<1x4928xf32, #tpu.memory_space<vmem>>, vector<1x64xf32>
    tpu.vector_store %arg13[%c0_365, %c3264], %307 {strides = array<i32>} : memref<1x4928xf32, #tpu.memory_space<vmem>>, vector<1x64xf32>,
    %c60 = arith.constant 60 : index
    %c0_366 = arith.constant 0 : index
    %309 = vector.load %arg12[%c60, %c0_366] : memref<96x64xf32, #tpu.memory_space<vmem>>, vector<1x64xf32>
    %c0_367 = arith.constant 0 : index
    %c3328 = arith.constant 3328 : index
    %310 = vector.load %arg13[%c0_367, %c3328] : memref<1x4928xf32, #tpu.memory_space<vmem>>, vector<1x64xf32>
    tpu.vector_store %arg13[%c0_367, %c3328], %309 {strides = array<i32>} : memref<1x4928xf32, #tpu.memory_space<vmem>>, vector<1x64xf32>,
    %c61 = arith.constant 61 : index
    %c0_368 = arith.constant 0 : index
    %311 = vector.load %arg12[%c61, %c0_368] : memref<96x64xf32, #tpu.memory_space<vmem>>, vector<1x64xf32>
    %c0_369 = arith.constant 0 : index
    %c3392 = arith.constant 3392 : index
    %312 = vector.load %arg13[%c0_369, %c3392] : memref<1x4928xf32, #tpu.memory_space<vmem>>, vector<1x64xf32>
    tpu.vector_store %arg13[%c0_369, %c3392], %311 {strides = array<i32>} : memref<1x4928xf32, #tpu.memory_space<vmem>>, vector<1x64xf32>,
    %c62 = arith.constant 62 : index
    %c0_370 = arith.constant 0 : index
    %313 = vector.load %arg12[%c62, %c0_370] : memref<96x64xf32, #tpu.memory_space<vmem>>, vector<1x64xf32>
    %c0_371 = arith.constant 0 : index
    %c3456 = arith.constant 3456 : index
    %314 = vector.load %arg13[%c0_371, %c3456] : memref<1x4928xf32, #tpu.memory_space<vmem>>, vector<1x64xf32>
    tpu.vector_store %arg13[%c0_371, %c3456], %313 {strides = array<i32>} : memref<1x4928xf32, #tpu.memory_space<vmem>>, vector<1x64xf32>,
    %c65_372 = arith.constant 65 : index
    %c0_373 = arith.constant 0 : index
    %315 = vector.load %arg12[%c65_372, %c0_373] : memref<96x64xf32, #tpu.memory_space<vmem>>, vector<1x64xf32>
    %c0_374 = arith.constant 0 : index
    %c3520 = arith.constant 3520 : index
    %316 = vector.load %arg13[%c0_374, %c3520] : memref<1x4928xf32, #tpu.memory_space<vmem>>, vector<1x64xf32>
    tpu.vector_store %arg13[%c0_374, %c3520], %315 {strides = array<i32>} : memref<1x4928xf32, #tpu.memory_space<vmem>>, vector<1x64xf32>,
    %c66_375 = arith.constant 66 : index
    %c0_376 = arith.constant 0 : index
    %317 = vector.load %arg12[%c66_375, %c0_376] : memref<96x64xf32, #tpu.memory_space<vmem>>, vector<1x64xf32>
    %c0_377 = arith.constant 0 : index
    %c3584 = arith.constant 3584 : index
    %318 = vector.load %arg13[%c0_377, %c3584] : memref<1x4928xf32, #tpu.memory_space<vmem>>, vector<1x64xf32>
    tpu.vector_store %arg13[%c0_377, %c3584], %317 {strides = array<i32>} : memref<1x4928xf32, #tpu.memory_space<vmem>>, vector<1x64xf32>,
    %c67 = arith.constant 67 : index
    %c0_378 = arith.constant 0 : index
    %319 = vector.load %arg12[%c67, %c0_378] : memref<96x64xf32, #tpu.memory_space<vmem>>, vector<1x64xf32>
    %c0_379 = arith.constant 0 : index
    %c3648 = arith.constant 3648 : index
    %320 = vector.load %arg13[%c0_379, %c3648] : memref<1x4928xf32, #tpu.memory_space<vmem>>, vector<1x64xf32>
    tpu.vector_store %arg13[%c0_379, %c3648], %319 {strides = array<i32>} : memref<1x4928xf32, #tpu.memory_space<vmem>>, vector<1x64xf32>,
    %c68 = arith.constant 68 : index
    %c0_380 = arith.constant 0 : index
    %321 = vector.load %arg12[%c68, %c0_380] : memref<96x64xf32, #tpu.memory_space<vmem>>, vector<1x64xf32>
    %c0_381 = arith.constant 0 : index
    %c3712 = arith.constant 3712 : index
    %322 = vector.load %arg13[%c0_381, %c3712] : memref<1x4928xf32, #tpu.memory_space<vmem>>, vector<1x64xf32>
    tpu.vector_store %arg13[%c0_381, %c3712], %321 {strides = array<i32>} : memref<1x4928xf32, #tpu.memory_space<vmem>>, vector<1x64xf32>,
    %c69 = arith.constant 69 : index
    %c0_382 = arith.constant 0 : index
    %323 = vector.load %arg12[%c69, %c0_382] : memref<96x64xf32, #tpu.memory_space<vmem>>, vector<1x64xf32>
    %c0_383 = arith.constant 0 : index
    %c3776 = arith.constant 3776 : index
    %324 = vector.load %arg13[%c0_383, %c3776] : memref<1x4928xf32, #tpu.memory_space<vmem>>, vector<1x64xf32>
    tpu.vector_store %arg13[%c0_383, %c3776], %323 {strides = array<i32>} : memref<1x4928xf32, #tpu.memory_space<vmem>>, vector<1x64xf32>,
    %c70 = arith.constant 70 : index
    %c0_384 = arith.constant 0 : index
    %325 = vector.load %arg12[%c70, %c0_384] : memref<96x64xf32, #tpu.memory_space<vmem>>, vector<1x64xf32>
    %c0_385 = arith.constant 0 : index
    %c3840 = arith.constant 3840 : index
    %326 = vector.load %arg13[%c0_385, %c3840] : memref<1x4928xf32, #tpu.memory_space<vmem>>, vector<1x64xf32>
    tpu.vector_store %arg13[%c0_385, %c3840], %325 {strides = array<i32>} : memref<1x4928xf32, #tpu.memory_space<vmem>>, vector<1x64xf32>,
    %c71 = arith.constant 71 : index
    %c0_386 = arith.constant 0 : index
    %327 = vector.load %arg12[%c71, %c0_386] : memref<96x64xf32, #tpu.memory_space<vmem>>, vector<1x64xf32>
    %c0_387 = arith.constant 0 : index
    %c3904 = arith.constant 3904 : index
    %328 = vector.load %arg13[%c0_387, %c3904] : memref<1x4928xf32, #tpu.memory_space<vmem>>, vector<1x64xf32>
    tpu.vector_store %arg13[%c0_387, %c3904], %327 {strides = array<i32>} : memref<1x4928xf32, #tpu.memory_space<vmem>>, vector<1x64xf32>,
    %c72 = arith.constant 72 : index
    %c0_388 = arith.constant 0 : index
    %329 = vector.load %arg12[%c72, %c0_388] : memref<96x64xf32, #tpu.memory_space<vmem>>, vector<1x64xf32>
    %c0_389 = arith.constant 0 : index
    %c3968 = arith.constant 3968 : index
    %330 = vector.load %arg13[%c0_389, %c3968] : memref<1x4928xf32, #tpu.memory_space<vmem>>, vector<1x64xf32>
    tpu.vector_store %arg13[%c0_389, %c3968], %329 {strides = array<i32>} : memref<1x4928xf32, #tpu.memory_space<vmem>>, vector<1x64xf32>,
    %c73 = arith.constant 73 : index
    %c0_390 = arith.constant 0 : index
    %331 = vector.load %arg12[%c73, %c0_390] : memref<96x64xf32, #tpu.memory_space<vmem>>, vector<1x64xf32>
    %c0_391 = arith.constant 0 : index
    %c4032 = arith.constant 4032 : index
    %332 = vector.load %arg13[%c0_391, %c4032] : memref<1x4928xf32, #tpu.memory_space<vmem>>, vector<1x64xf32>
    tpu.vector_store %arg13[%c0_391, %c4032], %331 {strides = array<i32>} : memref<1x4928xf32, #tpu.memory_space<vmem>>, vector<1x64xf32>,
    %c74 = arith.constant 74 : index
    %c0_392 = arith.constant 0 : index
    %333 = vector.load %arg12[%c74, %c0_392] : memref<96x64xf32, #tpu.memory_space<vmem>>, vector<1x64xf32>
    %c0_393 = arith.constant 0 : index
    %c4096 = arith.constant 4096 : index
    %334 = vector.load %arg13[%c0_393, %c4096] : memref<1x4928xf32, #tpu.memory_space<vmem>>, vector<1x64xf32>
    tpu.vector_store %arg13[%c0_393, %c4096], %333 {strides = array<i32>} : memref<1x4928xf32, #tpu.memory_space<vmem>>, vector<1x64xf32>,
    %c75 = arith.constant 75 : index
    %c0_394 = arith.constant 0 : index
    %335 = vector.load %arg12[%c75, %c0_394] : memref<96x64xf32, #tpu.memory_space<vmem>>, vector<1x64xf32>
    %c0_395 = arith.constant 0 : index
    %c4160 = arith.constant 4160 : index
    %336 = vector.load %arg13[%c0_395, %c4160] : memref<1x4928xf32, #tpu.memory_space<vmem>>, vector<1x64xf32>
    tpu.vector_store %arg13[%c0_395, %c4160], %335 {strides = array<i32>} : memref<1x4928xf32, #tpu.memory_space<vmem>>, vector<1x64xf32>,
    %c78_396 = arith.constant 78 : index
    %c0_397 = arith.constant 0 : index
    %337 = vector.load %arg12[%c78_396, %c0_397] : memref<96x64xf32, #tpu.memory_space<vmem>>, vector<1x64xf32>
    %c0_398 = arith.constant 0 : index
    %c4224 = arith.constant 4224 : index
    %338 = vector.load %arg13[%c0_398, %c4224] : memref<1x4928xf32, #tpu.memory_space<vmem>>, vector<1x64xf32>
    tpu.vector_store %arg13[%c0_398, %c4224], %337 {strides = array<i32>} : memref<1x4928xf32, #tpu.memory_space<vmem>>, vector<1x64xf32>,
    %c79_399 = arith.constant 79 : index
    %c0_400 = arith.constant 0 : index
    %339 = vector.load %arg12[%c79_399, %c0_400] : memref<96x64xf32, #tpu.memory_space<vmem>>, vector<1x64xf32>
    %c0_401 = arith.constant 0 : index
    %c4288 = arith.constant 4288 : index
    %340 = vector.load %arg13[%c0_401, %c4288] : memref<1x4928xf32, #tpu.memory_space<vmem>>, vector<1x64xf32>
    tpu.vector_store %arg13[%c0_401, %c4288], %339 {strides = array<i32>} : memref<1x4928xf32, #tpu.memory_space<vmem>>, vector<1x64xf32>,
    %c80 = arith.constant 80 : index
    %c0_402 = arith.constant 0 : index
    %341 = vector.load %arg12[%c80, %c0_402] : memref<96x64xf32, #tpu.memory_space<vmem>>, vector<1x64xf32>
    %c0_403 = arith.constant 0 : index
    %c4352 = arith.constant 4352 : index
    %342 = vector.load %arg13[%c0_403, %c4352] : memref<1x4928xf32, #tpu.memory_space<vmem>>, vector<1x64xf32>
    tpu.vector_store %arg13[%c0_403, %c4352], %341 {strides = array<i32>} : memref<1x4928xf32, #tpu.memory_space<vmem>>, vector<1x64xf32>,
    %c81 = arith.constant 81 : index
    %c0_404 = arith.constant 0 : index
    %343 = vector.load %arg12[%c81, %c0_404] : memref<96x64xf32, #tpu.memory_space<vmem>>, vector<1x64xf32>
    %c0_405 = arith.constant 0 : index
    %c4416 = arith.constant 4416 : index
    %344 = vector.load %arg13[%c0_405, %c4416] : memref<1x4928xf32, #tpu.memory_space<vmem>>, vector<1x64xf32>
    tpu.vector_store %arg13[%c0_405, %c4416], %343 {strides = array<i32>} : memref<1x4928xf32, #tpu.memory_space<vmem>>, vector<1x64xf32>,
    %c82 = arith.constant 82 : index
    %c0_406 = arith.constant 0 : index
    %345 = vector.load %arg12[%c82, %c0_406] : memref<96x64xf32, #tpu.memory_space<vmem>>, vector<1x64xf32>
    %c0_407 = arith.constant 0 : index
    %c4480 = arith.constant 4480 : index
    %346 = vector.load %arg13[%c0_407, %c4480] : memref<1x4928xf32, #tpu.memory_space<vmem>>, vector<1x64xf32>
    tpu.vector_store %arg13[%c0_407, %c4480], %345 {strides = array<i32>} : memref<1x4928xf32, #tpu.memory_space<vmem>>, vector<1x64xf32>,
    %c83 = arith.constant 83 : index
    %c0_408 = arith.constant 0 : index
    %347 = vector.load %arg12[%c83, %c0_408] : memref<96x64xf32, #tpu.memory_space<vmem>>, vector<1x64xf32>
    %c0_409 = arith.constant 0 : index
    %c4544 = arith.constant 4544 : index
    %348 = vector.load %arg13[%c0_409, %c4544] : memref<1x4928xf32, #tpu.memory_space<vmem>>, vector<1x64xf32>
    tpu.vector_store %arg13[%c0_409, %c4544], %347 {strides = array<i32>} : memref<1x4928xf32, #tpu.memory_space<vmem>>, vector<1x64xf32>,
    %c84 = arith.constant 84 : index
    %c0_410 = arith.constant 0 : index
    %349 = vector.load %arg12[%c84, %c0_410] : memref<96x64xf32, #tpu.memory_space<vmem>>, vector<1x64xf32>
    %c0_411 = arith.constant 0 : index
    %c4608 = arith.constant 4608 : index
    %350 = vector.load %arg13[%c0_411, %c4608] : memref<1x4928xf32, #tpu.memory_space<vmem>>, vector<1x64xf32>
    tpu.vector_store %arg13[%c0_411, %c4608], %349 {strides = array<i32>} : memref<1x4928xf32, #tpu.memory_space<vmem>>, vector<1x64xf32>,
    %c85 = arith.constant 85 : index
    %c0_412 = arith.constant 0 : index
    %351 = vector.load %arg12[%c85, %c0_412] : memref<96x64xf32, #tpu.memory_space<vmem>>, vector<1x64xf32>
    %c0_413 = arith.constant 0 : index
    %c4672 = arith.constant 4672 : index
    %352 = vector.load %arg13[%c0_413, %c4672] : memref<1x4928xf32, #tpu.memory_space<vmem>>, vector<1x64xf32>
    tpu.vector_store %arg13[%c0_413, %c4672], %351 {strides = array<i32>} : memref<1x4928xf32, #tpu.memory_space<vmem>>, vector<1x64xf32>,
    %c86 = arith.constant 86 : index
    %c0_414 = arith.constant 0 : index
    %353 = vector.load %arg12[%c86, %c0_414] : memref<96x64xf32, #tpu.memory_space<vmem>>, vector<1x64xf32>
    %c0_415 = arith.constant 0 : index
    %c4736 = arith.constant 4736 : index
    %354 = vector.load %arg13[%c0_415, %c4736] : memref<1x4928xf32, #tpu.memory_space<vmem>>, vector<1x64xf32>
    tpu.vector_store %arg13[%c0_415, %c4736], %353 {strides = array<i32>} : memref<1x4928xf32, #tpu.memory_space<vmem>>, vector<1x64xf32>,
    %c87 = arith.constant 87 : index
    %c0_416 = arith.constant 0 : index
    %355 = vector.load %arg12[%c87, %c0_416] : memref<96x64xf32, #tpu.memory_space<vmem>>, vector<1x64xf32>
    %c0_417 = arith.constant 0 : index
    %c4800 = arith.constant 4800 : index
    %356 = vector.load %arg13[%c0_417, %c4800] : memref<1x4928xf32, #tpu.memory_space<vmem>>, vector<1x64xf32>
    tpu.vector_store %arg13[%c0_417, %c4800], %355 {strides = array<i32>} : memref<1x4928xf32, #tpu.memory_space<vmem>>, vector<1x64xf32>,
    %c88 = arith.constant 88 : index
    %c0_418 = arith.constant 0 : index
    %357 = vector.load %arg12[%c88, %c0_418] : memref<96x64xf32, #tpu.memory_space<vmem>>, vector<1x64xf32>
    %c0_419 = arith.constant 0 : index
    %c4864 = arith.constant 4864 : index
    %358 = vector.load %arg13[%c0_419, %c4864] : memref<1x4928xf32, #tpu.memory_space<vmem>>, vector<1x64xf32>
    tpu.vector_store %arg13[%c0_419, %c4864], %357 {strides = array<i32>} : memref<1x4928xf32, #tpu.memory_space<vmem>>, vector<1x64xf32>,
    %c0_420 = arith.constant 0 : index
    %c0_421 = arith.constant 0 : index
    %359 = vector.load %arg13[%c0_420, %c0_421] : memref<1x4928xf32, #tpu.memory_space<vmem>>, vector<1x4928xf32>
    %360 = arith.truncf %359 : vector<1x4928xf32> to vector<1x4928xbf16>
    %c0_422 = arith.constant 0 : index
    %c0_423 = arith.constant 0 : index
    %361 = vector.load %arg4[%c0_422, %c0_423] : memref<4928x64xbf16, #tpu.memory_space<vmem>>, vector<4928x64xbf16>
    %cst_424 = arith.constant dense<0.000000e+00> : vector<1x64xf32>
    %362 = tpu.matmul %360, %361, %cst_424 {dimension_numbers = #tpu.dot_dimension_numbers<[1], [0], [0], [1], [0, 0, 1, 1], [], []>} : vector<1x4928xbf16>, vector<4928x64xbf16>, vector<1x64xf32> -> vector<1x64xf32>
    %c0_425 = arith.constant 0 : index
    %c0_426 = arith.constant 0 : index
    %363 = vector.load %arg5[%c0_425, %c0_426] : memref<1x64xf32, #tpu.memory_space<vmem>>, vector<1x64xf32>
    %364 = arith.addf %362, %363 : vector<1x64xf32>
    %cst_427 = arith.constant 0.000000e+00 : f32
    %365 = vector.broadcast %cst_427 : f32 to vector<1x64xf32>
    %366 = arith.cmpf oge, %364, %365 : vector<1x64xf32>
    %cst_428 = arith.constant 0.00999999977 : f32
    %367 = vector.broadcast %cst_428 : f32 to vector<1x64xf32>
    %368 = arith.mulf %367, %364 : vector<1x64xf32>
    %369 = arith.select %366, %364, %368 : vector<1x64xi1>, vector<1x64xf32>
    %370 = arith.truncf %369 : vector<1x64xf32> to vector<1x64xbf16>
    %c0_429 = arith.constant 0 : index
    %c0_430 = arith.constant 0 : index
    %371 = vector.load %arg6[%c0_429, %c0_430] : memref<64x64xbf16, #tpu.memory_space<vmem>>, vector<64x64xbf16>
    %cst_431 = arith.constant dense<0.000000e+00> : vector<1x64xf32>
    %372 = tpu.matmul %370, %371, %cst_431 {dimension_numbers = #tpu.dot_dimension_numbers<[1], [0], [0], [1], [0, 0, 1, 1], [], []>} : vector<1x64xbf16>, vector<64x64xbf16>, vector<1x64xf32> -> vector<1x64xf32>
    %c0_432 = arith.constant 0 : index
    %c0_433 = arith.constant 0 : index
    %373 = vector.load %arg7[%c0_432, %c0_433] : memref<1x64xf32, #tpu.memory_space<vmem>>, vector<1x64xf32>
    %374 = arith.addf %372, %373 : vector<1x64xf32>
    %cst_434 = arith.constant 0.000000e+00 : f32
    %375 = vector.broadcast %cst_434 : f32 to vector<1x64xf32>
    %376 = arith.cmpf oge, %374, %375 : vector<1x64xf32>
    %cst_435 = arith.constant 0.00999999977 : f32
    %377 = vector.broadcast %cst_435 : f32 to vector<1x64xf32>
    %378 = arith.mulf %377, %374 : vector<1x64xf32>
    %379 = arith.select %376, %374, %378 : vector<1x64xi1>, vector<1x64xf32>
    %380 = arith.truncf %379 : vector<1x64xf32> to vector<1x64xbf16>
    %c0_436 = arith.constant 0 : index
    %c0_437 = arith.constant 0 : index
    %381 = vector.load %arg8[%c0_436, %c0_437] : memref<64x4xbf16, #tpu.memory_space<vmem>>, vector<64x4xbf16>
    %cst_438 = arith.constant dense<0.000000e+00> : vector<1x4xf32>
    %382 = tpu.matmul %380, %381, %cst_438 {dimension_numbers = #tpu.dot_dimension_numbers<[1], [0], [0], [1], [0, 0, 1, 1], [], []>} : vector<1x64xbf16>, vector<64x4xbf16>, vector<1x4xf32> -> vector<1x4xf32>
    %c0_439 = arith.constant 0 : index
    %c0_440 = arith.constant 0 : index
    %383 = vector.load %arg9[%c0_439, %c0_440] : memref<1x4xf32, #tpu.memory_space<vmem>>, vector<1x4xf32>
    %384 = arith.addf %382, %383 : vector<1x4xf32>
    %cst_441 = arith.constant 0.000000e+00 : f32
    %385 = vector.broadcast %cst_441 : f32 to vector<1x4xf32>
    %386 = arith.cmpf oge, %384, %385 : vector<1x4xf32>
    %cst_442 = arith.constant 0.00999999977 : f32
    %387 = vector.broadcast %cst_442 : f32 to vector<1x4xf32>
    %388 = arith.mulf %387, %384 : vector<1x4xf32>
    %389 = arith.select %386, %384, %388 : vector<1x4xi1>, vector<1x4xf32>
    %c0_443 = arith.constant 0 : index
    %c0_444 = arith.constant 0 : index
    %c0_445 = arith.constant 0 : index
    %390 = vector.load %arg10[%c0_443, %c0_444, %c0_445] : memref<1x1x4xf32, #tpu.memory_space<vmem>>, vector<1x1x4xf32>
    %391 = vector.shape_cast %390 : vector<1x1x4xf32> to vector<1x4xf32>
    %392 = vector.shape_cast %389 : vector<1x4xf32> to vector<1x1x4xf32>
    tpu.vector_store %arg10[%c0_443, %c0_444, %c0_445], %392 {strides = array<i32>} : memref<1x1x4xf32, #tpu.memory_space<vmem>>, vector<1x1x4xf32>,
    return
  }
  func.func @transform_0(%arg0: i32) -> (i32, i32, i32) {
    %c0_i32 = arith.constant 0 : i32
    %c0_i32_0 = arith.constant 0 : i32
    %c0_i32_1 = arith.constant 0 : i32
    return %arg0, %c0_i32, %c0_i32_0 : i32, i32, i32
  }
  func.func @transform_1(%arg0: i32) -> (i32, i32, i32) {
    %c0_i32 = arith.constant 0 : i32
    %c0_i32_0 = arith.constant 0 : i32
    %c0_i32_1 = arith.constant 0 : i32
    %c0_i32_2 = arith.constant 0 : i32
    return %c0_i32, %c0_i32_0, %c0_i32_1 : i32, i32, i32
  }
  func.func @transform_2(%arg0: i32) -> (i32, i32, i32) {
    %c0_i32 = arith.constant 0 : i32
    %c0_i32_0 = arith.constant 0 : i32
    %c0_i32_1 = arith.constant 0 : i32
    %c0_i32_2 = arith.constant 0 : i32
    return %c0_i32, %c0_i32_0, %c0_i32_1 : i32, i32, i32
  }
  func.func @transform_3(%arg0: i32) -> (i32, i32) {
    %c0_i32 = arith.constant 0 : i32
    %c0_i32_0 = arith.constant 0 : i32
    %c0_i32_1 = arith.constant 0 : i32
    return %c0_i32, %c0_i32_0 : i32, i32
  }
  func.func @transform_4(%arg0: i32) -> (i32, i32) {
    %c0_i32 = arith.constant 0 : i32
    %c0_i32_0 = arith.constant 0 : i32
    %c0_i32_1 = arith.constant 0 : i32
    return %c0_i32, %c0_i32_0 : i32, i32
  }
  func.func @transform_5(%arg0: i32) -> (i32, i32) {
    %c0_i32 = arith.constant 0 : i32
    %c0_i32_0 = arith.constant 0 : i32
    %c0_i32_1 = arith.constant 0 : i32
    return %c0_i32, %c0_i32_0 : i32, i32
  }
  func.func @transform_6(%arg0: i32) -> (i32, i32) {
    %c0_i32 = arith.constant 0 : i32
    %c0_i32_0 = arith.constant 0 : i32
    %c0_i32_1 = arith.constant 0 : i32
    return %c0_i32, %c0_i32_0 : i32, i32
  }
  func.func @transform_7(%arg0: i32) -> (i32, i32) {
    %c0_i32 = arith.constant 0 : i32
    %c0_i32_0 = arith.constant 0 : i32
    %c0_i32_1 = arith.constant 0 : i32
    return %c0_i32, %c0_i32_0 : i32, i32
  }
  func.func @transform_8(%arg0: i32) -> (i32, i32) {
    %c0_i32 = arith.constant 0 : i32
    %c0_i32_0 = arith.constant 0 : i32
    %c0_i32_1 = arith.constant 0 : i32
    return %c0_i32, %c0_i32_0 : i32, i32
  }
  func.func @transform_9(%arg0: i32) -> (i32, i32, i32) {
    %c0_i32 = arith.constant 0 : i32
    %c0_i32_0 = arith.constant 0 : i32
    %c0_i32_1 = arith.constant 0 : i32
    return %arg0, %c0_i32, %c0_i32_0 : i32, i32, i32
  }
}

</mosaic_0001>

<bundles_post_ra>
// kernel: model_forward.1
= control target key start
LH: loop header
LB: loop body
LE: loop exit
PB: predicated region body
PF: predicated region fallthrough
CT: control target
= control target key end

     0   :  { %14 = vsyncpa [#allocation6], 0  ;;  %s12424_s0 = inlined_call_operand.vmem [shape: f32[2,91,64], index: 0, kind: input, shape index: {}]   ;;  %s12425_s1 = inlined_call_operand.vmem [shape: bf16[9,64,64], index: 1, kind: input, shape index: {}]   ;;  %s12426_s2 = inlined_call_operand.vmem [shape: bf16[9,64,64], index: 2, kind: input, shape index: {}]   ;;  %s12427_s3 = inlined_call_operand.vmem [shape: bf16[4928,64], index: 3, kind: input, shape index: {}]   ;;  %s12428_s4 = inlined_call_operand.vmem [shape: f32[1,64], index: 4, kind: input, shape index: {}]   ;;  %s12429_s5 = inlined_call_operand.vmem [shape: bf16[64,64], index: 5, kind: input, shape index: {}]   ;;  %s12430_s6 = inlined_call_operand.vmem [shape: f32[1,64], index: 6, kind: input, shape index: {}]   ;;  %s12431_s7 = inlined_call_operand.vmem [shape: bf16[64,4], index: 7, kind: input, shape index: {}]   ;;  %s12432_s8 = inlined_call_operand.vmem [shape: f32[1,4], index: 8, kind: input, shape index: {}]   ;;  %s12433_s9 = inlined_call_operand.hbm [shape: f32[2,1,4], index: 9, kind: output, shape index: {}]  }
   0x1   :  { %16 = vsyncpa [#allocation6 + $0x1], 0  ;;  %s10453_s30 = smov 0   ;;  %s10455_s10 = smov 0  }
   0x2   :  { %s10457_s11 = smov 0   ;;  %s10459_s12 = smov 0  }
   0x3 LB: > { %s10474_s13 = sadd.s32 4294967295, %s10396_s12   ;;  %s8028_s14 = sadd.s32 4294967294, %s10396_s12   ;;  %s10396_s12 = sphi %s10459_s12, %s12443_s12   ;;  %s10392_s11 = sphi %s10457_s11, %s12442_s11   ;;  %s10388_s10 = sphi %s10455_s10, %s12441_s10   ;;  %s10384_s30 = sphi %s10453_s30, %s12440_s30  }
   0x4   : > { %s10478_s15 = sadd.s32 1, %s10396_s12   ;;  %s223_s16 = sadd.s32 1, %s10392_s11 }
   0x5   : > { %s220_s17 = ssub.s32 %s10396_s12, %s10478_s15  ;;  %p233_p0 = scmp.ne.s32.totalorder %s10392_s11, %s10388_s10 }
   0x6   : > { %p221_p1 = scmp.eq.s32.totalorder %s220_s17, 0  ;;  %p234_p2 = scmp.eq.s32.totalorder %s10474_s13, 1 }
   0x7   : > { %p239_p3 = scmp.ne.s32.totalorder %s10388_s10, %s10384_s30  ;;  %p240_p4 = scmp.eq.s32.totalorder %s8028_s14, 1 }
   0x8   : > { %s10489_s18 = scalar_select %p221_p1, %s10392_s11, %s223_s16  }
   0x9   : > { %p10491_p5 = por %p234_p2, %p233_p0  ;;  %p10495_p6 = por %p240_p4, %p239_p3 }
   0xa   : > { %p8031_p7 = scmp.ge.s32.totalorder %s10396_s12, 1  ;;  %p290_p8 = scmp.lt.s32.totalorder %s10396_s12, 3 }
   0xc   : > { %p291_p9 = pnand %p8031_p7, %p290_p8 }
   0xd   : > { %v9946_v0 = vld [vmem:[%s12425_s1 + $0x20] sm:$0xff] (!%p291_p9)   ;;  %p325_p10 = scmp.lt.s32.totalorder (!%p291_p9), %s10474_s13, 1  ;;  %v9947_v1 = vld [vmem:[%s12425_s1 + $0x28] sm:$0xff] (!%p291_p9)   ;;  %v9948_v2 = vld [vmem:[%s12425_s1 + $0x30] sm:$0xff] (!%p291_p9)   ;;  %vm333_vm0 = vcmask (!%p291_p9), 523264   ;;  %vm335_vm1 = vcmask (!%p291_p9), 521216  }
   0xe   : > { %294 = sbr.rel (%p291_p9) target bundleno = 2030 (0x7ee), region = 56  ;;  %9314 = vmatprep.subr.bf16.mxu0 (!%p291_p9), %v9946_v0  ;;  %v9949_v3 = vld [vmem:[%s12425_s1 + $0x38] sm:$0xff] (!%p291_p9)   ;;  %vm360_vm2 = vcmask (!%p291_p9), 518144   ;;  %v9950_v18 = vld [vmem:[%s12425_s1] sm:$0xff] (!%p291_p9)   ;;  %vm370_vm3 = vcmask (!%p291_p9), 516096   ;;  %v9951_v42 = vld [vmem:[%s12425_s1 + $0x8] sm:$0xff] (!%p291_p9)  }
   0xf   : > { %9315 = vmatpush3.bf16.msra.mxu0 (!%p291_p9), %v9946_v0  ;;  %v9952_v44 = vld [vmem:[%s12425_s1 + $0x10] sm:$0xff] (!%p291_p9)   ;;  %v9953_v51 = vld [vmem:[%s12425_s1 + $0x18] sm:$0xff] (!%p291_p9)   ;;  %v9954_v53 = vld [vmem:[%s12425_s1 + $0x40] sm:$0xff] (!%p291_p9)   ;;  %vm367_vm4 = vcmask (!%p291_p9), 522240   ;;  %s323_s29 = sand.u32 (!%p291_p9), 1, %s10388_s10   ;;  %s8698_s17 = sshll.u32 (!%p291_p9), %s10474_s13, 4 }
  0x10   : > { %9316 = vmatprep.subr.bf16.mxu0 (!%p291_p9), %v9947_v1  ;;  %s324_s22 = scalar_lea.vmem (!%p291_p9), [#allocation5], %s323_s29 }
  0x11   : > { %s7973_s23 = sshll.u32 (!%p291_p9), %s324_s22, 4  ;;  %s12384_s23 = int_to_ptr.vmem [resolvable:$true] %s7973_s23 }
  0x12   : > { %s10334_s27 = scalar_lea.vmem (!%p291_p9), %s12384_s23, 16 }
  0x13   : > { %9317 = vmatpush3.bf16.msra.mxu0 (!%p291_p9), %v9947_v1  ;;  %p10335_p11 = scmp.ne.s32.totalorder (!%p291_p9), %s12384_s23, %s10334_s27 }
  0x14   : > { %9318 = vmatprep.subr.bf16.mxu0 (!%p291_p9), %v9948_v2 }
  0x15   : > { %s326_s25 = scalar_select %p325_p10, %s10474_s13, 1 }
  0x16   : > { %s7961_s13 = scalar_lea.sflag [#allocation6], %s323_s29  ;;  %p10336_p12 = pnand %p10335_p11, %p10491_p5 }
  0x17   : > { %s9902_s28 = smul.u32 96, %s326_s25  ;;  %9319 = vmatpush3.bf16.msra.mxu0 %v9948_v2  ;;  %s10399_s25 = smov 64  }
  0x18   : > { %9320 = vmatprep.subr.bf16.mxu0 %v9949_v3  ;;  %p10337_p13 = pneg %p10336_p12 }
  0x19   : > { %s10518_s21 = scalar_lea.vmem %s12424_s0, %s9902_s28  ;;  %s10402_s28 = smov [#allocation5]  }
  0x1a   : > { %v331_v4 = vld [vmem:[%s10518_s21 + $0x4d] sm:$0xff]  ;;  %v332_v5 = vld [vmem:[%s10518_s21 + $0x55] sm:$0x3f]  ;;  %v337_v6 = vld [vmem:[%s10518_s21] sm:$0xff] }
  0x1b   : > { %334 = vst.msk [vmem:[#allocation2] sm:$0xff] %vm333_vm0, %v331_v4  ;;  %v338_v7 = vld [vmem:[%s10518_s21 + $0x8] sm:$0xff]  ;;  %349 = vst.msk [vmem:[#allocation2 + $0xe] sm:$0xff] %vm333_vm0, %v337_v6  ;;  %v339_v8 = vld [vmem:[%s10518_s21 + $0x10] sm:$0xff]  ;;  %9321 = vmatpush3.bf16.msra.mxu0 %v9949_v3 }
  0x1c   : > { %336 = vst.msk [vmem:[#allocation2 + $0x8] sm:$0x3f] %vm335_vm1, %v332_v5  ;;  %v340_v9 = vld [vmem:[%s10518_s21 + $0x18] sm:$0xff]  ;;  %v341_v10 = vld [vmem:[%s10518_s21 + $0x20] sm:$0xff]  ;;  %v342_v11 = vld [vmem:[%s10518_s21 + $0x28] sm:$0xff]  ;;  %9334 = vmatprep.subr.bf16.mxu0 %v9950_v18 }
  0x1d   : > { %365 = vst.msk [vmem:[#allocation2 + $0x69] sm:$0xff] %vm333_vm0, %v337_v6  ;;  %350 = vst.msk [vmem:[#allocation2 + $0x16] sm:$0xff] %vm333_vm0, %v338_v7  ;;  %v343_v12 = vld [vmem:[%s10518_s21 + $0x30] sm:$0xff]  ;;  %v344_v13 = vld [vmem:[%s10518_s21 + $0x38] sm:$0xff] }
  0x1e   : > { %351 = vst.msk [vmem:[#allocation2 + $0x1e] sm:$0xff] %vm333_vm0, %v339_v8  ;;  %352 = vst.msk [vmem:[#allocation2 + $0x26] sm:$0xff] %vm333_vm0, %v340_v9  ;;  %v345_v14 = vld [vmem:[%s10518_s21 + $0x40] sm:$0xff]  ;;  %v346_v15 = vld [vmem:[%s10518_s21 + $0x48] sm:$0xff] }
  0x1f   : > { %366 = vst.msk [vmem:[#allocation2 + $0x71] sm:$0xff] %vm333_vm0, %v338_v7  ;;  %353 = vst.msk [vmem:[#allocation2 + $0x2e] sm:$0xff] %vm333_vm0, %v341_v10  ;;  %v347_v16 = vld [vmem:[%s10518_s21 + $0x50] sm:$0xff]  ;;  %v348_v17 = vld [vmem:[%s10518_s21 + $0x58] sm:$0x7] }
  0x20   : > { %354 = vst.msk [vmem:[#allocation2 + $0x36] sm:$0xff] %vm333_vm0, %v342_v11  ;;  %355 = vst.msk [vmem:[#allocation2 + $0x3e] sm:$0xff] %vm333_vm0, %v343_v12  ;;  %v9955_v3 = vld [vmem:[%s12425_s1 + $0x48] sm:$0xff]   ;;  %v9956_v6 = vld [vmem:[%s12425_s1 + $0x50] sm:$0xff]  }
  0x21   : > { %356 = vst.msk [vmem:[#allocation2 + $0x46] sm:$0xff] %vm333_vm0, %v344_v13  ;;  %357 = vst.msk [vmem:[#allocation2 + $0x4e] sm:$0xff] %vm333_vm0, %v345_v14  ;;  %v9957_v11 = vld [vmem:[%s12425_s1 + $0x58] sm:$0xff]  }
  0x22   : > { %358 = vst.msk [vmem:[#allocation2 + $0x56] sm:$0xff] %vm333_vm0, %v346_v15  ;;  %359 = vst.msk [vmem:[#allocation2 + $0x5e] sm:$0xff] %vm333_vm0, %v347_v16  ;;  %v372_v19 = vld [vmem:[#allocation2 + $0x1] sm:$0x1]  ;;  %v376_v20 = vld [vmem:[#allocation2 + $0xe] sm:$0x1] }
  0x23   : > { %361 = vst.msk [vmem:[#allocation2 + $0x66] sm:$0x7] %vm360_vm2, %v348_v17  ;;  %v432_v33 = vld [vmem:[#allocation2 + $0x1] sm:$0xff]  ;;  %v369_v34 = vld [vmem:[#allocation2 + $0xb] sm:$0x1] }
  0x24   : > { %373 = vst.msk [vmem:[#allocation2 + $0xc] sm:$0x1] %vm370_vm3, %v372_v19  ;;  %v374_v21 = vld [vmem:[#allocation2 + $0x18] sm:$0x1]  ;;  %377 = vst.msk [vmem:[#allocation2 + $0x19] sm:$0x1] %vm370_vm3, %v376_v20 }
  0x25   : > { %v378_v22 = vld [vmem:[#allocation2 + $0x25] sm:$0x1]  ;;  %375 = vst.msk [vmem:[#allocation2 + $0xd] sm:$0x1] %vm370_vm3, %v374_v21  ;;  %v380_v23 = vld [vmem:[#allocation2 + $0x1b] sm:$0x1] }
  0x26   : > { %379 = vst.msk [vmem:[#allocation2 + $0x1a] sm:$0x1] %vm370_vm3, %v378_v22  ;;  %v382_v24 = vld [vmem:[#allocation2 + $0x32] sm:$0x1]  ;;  %381 = vst.msk [vmem:[#allocation2 + $0x26] sm:$0x1] %vm370_vm3, %v380_v23 }
  0x27   : > { %383 = vst.msk [vmem:[#allocation2 + $0x27] sm:$0x1] %vm370_vm3, %v382_v24  ;;  %v384_v25 = vld [vmem:[#allocation2 + $0x28] sm:$0x1]  ;;  %v386_v26 = vld [vmem:[#allocation2 + $0x3f] sm:$0x1] }
  0x28   : > { %v388_v27 = vld [vmem:[#allocation2 + $0x35] sm:$0x1]  ;;  %385 = vst.msk [vmem:[#allocation2 + $0x33] sm:$0x1] %vm370_vm3, %v384_v25  ;;  %387 = vst.msk [vmem:[#allocation2 + $0x34] sm:$0x1] %vm370_vm3, %v386_v26 }
  0x29   : > { %389 = vst.msk [vmem:[#allocation2 + $0x40] sm:$0x1] %vm370_vm3, %v388_v27  ;;  %v390_v28 = vld [vmem:[#allocation2 + $0x4c] sm:$0x1]  ;;  %v392_v29 = vld [vmem:[#allocation2 + $0x42] sm:$0x1] }
  0x2a   : > { %v394_v30 = vld [vmem:[#allocation2 + $0x59] sm:$0x1]  ;;  %391 = vst.msk [vmem:[#allocation2 + $0x41] sm:$0x1] %vm370_vm3, %v390_v28  ;;  %393 = vst.msk [vmem:[#allocation2 + $0x4d] sm:$0x1] %vm370_vm3, %v392_v29 }
  0x2b   : > { %395 = vst.msk [vmem:[#allocation2 + $0x4e] sm:$0x1] %vm370_vm3, %v394_v30  ;;  %v396_v31 = vld [vmem:[#allocation2 + $0x4f] sm:$0x1]  ;;  %v398_v32 = vld [vmem:[#allocation2 + $0x66] sm:$0x1] }
  0x2c   : > { %397 = vst.msk [vmem:[#allocation2 + $0x5a] sm:$0x1] %vm370_vm3, %v396_v31  ;;  %399 = vst.msk [vmem:[#allocation2 + $0x5b] sm:$0x1] %vm370_vm3, %v398_v32  ;;  %v434_v35 = vld [vmem:[#allocation2 + $0x11] sm:$0xff]  ;;  %v437_v36 = vld [vmem:[#allocation2 + $0x29] sm:$0xff] }
  0x2d   : > { %371 = vst.msk [vmem:[#allocation2] sm:$0x1] %vm370_vm3, %v369_v34  ;;  %v433_v37 = vld [vmem:[#allocation2 + $0x9] sm:$0xff]  ;;  %v435_v38 = vld [vmem:[#allocation2 + $0x19] sm:$0xff]  ;;  %v442_v52 = vld [vmem:[#allocation2 + $0x51] sm:$0xff] }
  0x2e   : > { %v444_v39 = vpack.c.bf16 %v433_v37, %v432_v33  ;;  %v445_v40 = vpack.c.bf16 %v435_v38, %v434_v35  ;;  %v436_v41 = vld [vmem:[#allocation2 + $0x21] sm:$0xff]  ;;  %v408_v59 = vld [vmem:[#allocation2 + $0x10] sm:$0xff]  ;;  %v400_v60 = vld [vmem:[#allocation2 + $0x5c] sm:$0x1] }
  0x2f   : > { %v446_v43 = vpack.c.bf16 %v437_v36, %v436_v41  ;;  %v438_v45 = vld [vmem:[#allocation2 + $0x31] sm:$0xff]  ;;  %v407_v56 = vld [vmem:[#allocation2 + $0x8] sm:$0xff]  ;;  %401 = vst.msk [vmem:[#allocation2 + $0x67] sm:$0x1] %vm370_vm3, %v400_v60  ;;  %v410_v63 = vld [vmem:[#allocation2 + $0x20] sm:$0xff] }
  0x30   : > { %9322 = vmatprep.mubr.msk.bf16.mxu0 %vm333_vm0, %v444_v39  ;;  %v439_v46 = vld [vmem:[#allocation2 + $0x39] sm:$0xff]  ;;  %v402_v61 = vld [vmem:[#allocation2 + $0x73] sm:$0x1]  ;;  %v411_v0 = vld [vmem:[#allocation2 + $0x28] sm:$0xff] }
  0x31   : > { %9323 = vmatmul.mubr.msk.bf16.vlgmr.msra.gmra.mrb[0].mxu0 %vm333_vm0, %v445_v40  ;;  %v440_v47 = vld [vmem:[#allocation2 + $0x41] sm:$0xff]  ;;  %v447_v49 = vpack.c.bf16 %v439_v46, %v438_v45  ;;  %v409_v62 = vld [vmem:[#allocation2 + $0x18] sm:$0xff]  ;;  %403 = vst.msk [vmem:[#allocation2 + $0x68] sm:$0x1] %vm370_vm3, %v402_v61  ;;  %v420_v2 = vpack.c.bf16 %v411_v0, %v410_v63  ;;  %v412_v5 = vld [vmem:[#allocation2 + $0x30] sm:$0xff] }
  0x32   : > { %9335 = vmatpush3.bf16.msra.mxu0 %v9950_v18  ;;  %9326 = vmatprep.mubr.msk.bf16.mxu0 %vm333_vm0, %v446_v43  ;;  %v441_v48 = vld [vmem:[#allocation2 + $0x49] sm:$0xff]  ;;  %v419_v1 = vpack.c.bf16 %v409_v62, %v408_v59  ;;  %v413_v4 = vld [vmem:[#allocation2 + $0x38] sm:$0xff]  ;;  %v414_v7 = vld [vmem:[#allocation2 + $0x40] sm:$0xff] }
  0x33   : > { %9336 = vmatprep.subr.bf16.mxu0 %v9951_v42  ;;  %v448_v50 = vpack.c.bf16 %v441_v48, %v440_v47  ;;  %v443_v54 = vld [vmem:[#allocation2 + $0x59] sm:$0xff]  ;;  %v415_v8 = vld [vmem:[#allocation2 + $0x48] sm:$0xff]  ;;  %v421_v9 = vpack.c.bf16 %v413_v4, %v412_v5  ;;  %v416_v12 = vld [vmem:[#allocation2 + $0x50] sm:$0xff] }
  0x34   : > { %v406_v55 = vld [vmem:[#allocation2] sm:$0xff]  ;;  %v449_v57 = vpack.c.bf16 %v443_v54, %v442_v52  ;;  %v422_v10 = vpack.c.bf16 %v415_v8, %v414_v7  ;;  %v417_v13 = vld [vmem:[#allocation2 + $0x58] sm:$0xff]  ;;  %v706_v15 = vld [vmem:[#allocation2 + $0xa] sm:$0xff] }
  0x35   : > { %v418_v58 = vpack.c.bf16 %v407_v56, %v406_v55  ;;  %v705_v14 = vld [vmem:[#allocation2 + $0x2] sm:$0xff]  ;;  %v423_v17 = vpack.c.bf16 %v417_v13, %v416_v12  ;;  %v364_v19 = vld [vmem:[%s10518_s21 + $0x10] sm:$0x7f]  ;;  %v10610_v22 = vld [vmem:[#allocation2 + $0x1a] sm:$0xff]  ;;  %s10338_s21 = sshll.u32 %s10402_s28, 4  ;;  %s10339_s21 = int_to_ptr.vmem [resolvable:$false] %s10338_s21 }
  0x36   : > { %9337 = vmatpush3.bf16.msra.mxu0 %v9951_v42  ;;  %v9958_v16 = vld [vmem:[%s12425_s1 + $0x60] sm:$0xff]   ;;  %v717_v18 = vpack.c.bf16 %v706_v15, %v705_v14  ;;  %v404_v20 = vld [vmem:[#allocation2 + $0x69] sm:$0x1]  ;;  %368 = vst.msk [vmem:[#allocation2 + $0x79] sm:$0x7f] %vm367_vm4, %v364_v19  ;;  %v707_v21 = vld [vmem:[#allocation2 + $0x12] sm:$0xff]  ;;  %p10341_p0 = scmp.lt.s32.totalorder %s12384_s23, %s10339_s21 }
  0x37   : > { %9338 = vmatprep.subr.bf16.mxu0 %v9952_v44  ;;  %405 = vst.msk [vmem:[#allocation2 + $0x74] sm:$0x1] %vm370_vm3, %v404_v20  ;;  %v10612_v23 = vld [vmem:[#allocation2 + $0x22] sm:$0xff]  ;;  %v10614_v24 = vld [vmem:[#allocation2 + $0x2a] sm:$0xff]  ;;  %v718_v25 = vpack.c.bf16 %v10610_v22, %v707_v21  ;;  %v10623_v28 = vld [vmem:[#allocation2 + $0x32] sm:$0xff]  ;;  %s10340_s14 = scalar_lea.vmem %s10339_s21, 32 }
  0x38   : > { %v719_v26 = vpack.c.bf16 %v10614_v24, %v10612_v23  ;;  %v9959_v27 = vld [vmem:[%s12425_s1 + $0x68] sm:$0xff]   ;;  %v10626_v29 = vld [vmem:[#allocation2 + $0x3a] sm:$0xff]  ;;  %v9960_v30 = vld [vmem:[%s12425_s1 + $0x70] sm:$0xff]   ;;  %p10342_p1 = scmp.lt.s32.totalorder %s10340_s14, %s10334_s27 }
  0x39   : > { %9327 = vmatmul.mubr.msk.bf16.gmra.mrb[4].mxu0 %vm333_vm0, %v447_v49  ;;  %v10631_v31 = vld [vmem:[#allocation2 + $0x42] sm:$0xff]  ;;  %v10633_v32 = vld [vmem:[#allocation2 + $0x4a] sm:$0xff]  ;;  %v720_v33 = vpack.c.bf16 %v10626_v29, %v10623_v28  ;;  %v9961_v34 = vld [vmem:[%s12425_s1 + $0x78] sm:$0xff]  }
  0x3a   : > { %9339 = vmatpush3.bf16.msra.mxu0 %v9952_v44  ;;  %9330 = vmatprep.mubr.msk.bf16.mxu0 %vm333_vm0, %v448_v50  ;;  %v721_v35 = vpack.c.bf16 %v10633_v32, %v10631_v31  ;;  %v10643_v36 = vld [vmem:[#allocation2 + $0x52] sm:$0xff]  ;;  %v10645_v37 = vld [vmem:[#allocation2 + $0x5a] sm:$0xff]  ;;  %v870_v44 = vld [vmem:[#allocation2 + $0x25] sm:$0xff]  ;;  %p10343_p2 = por %p10342_p1, %p10341_p0 }
  0x3b   : > { %9340 = vmatprep.subr.bf16.mxu0 %v9953_v51  ;;  %v867_v38 = vld [vmem:[#allocation2 + $0xd] sm:$0xff]  ;;  %v868_v39 = vld [vmem:[#allocation2 + $0x15] sm:$0xff]  ;;  %v9962_v40 = vld [vmem:[%s12425_s1 + $0x80] sm:$0xff]   ;;  %v722_v41 = vpack.c.bf16 %v10645_v37, %v10643_v36 }
  0x3c   : > { %v879_v42 = vpack.c.bf16 %v868_v39, %v867_v38  ;;  %v869_v43 = vld [vmem:[#allocation2 + $0x1d] sm:$0xff]  ;;  %v871_v45 = vld [vmem:[#allocation2 + $0x2d] sm:$0xff]  ;;  %v872_v46 = vld [vmem:[#allocation2 + $0x35] sm:$0xff]  ;;  %p10344_p3 = pnand %p10343_p2, %p10337_p13 }
  0x3d   : > { %v880_v47 = vpack.c.bf16 %v870_v44, %v869_v43  ;;  %v9963_v48 = vld [vmem:[%s12425_s1 + $0x88] sm:$0xff]   ;;  %v881_v49 = vpack.c.bf16 %v872_v46, %v871_v45  ;;  %v873_v50 = vld [vmem:[#allocation2 + $0x3d] sm:$0xff]  ;;  %v9964_v52 = vld [vmem:[%s12425_s1 + $0x90] sm:$0xff]  }
  0x3e   : > { %9341 = vmatpush3.bf16.msra.mxu0 %v9953_v51  ;;  %v874_v51 = vld [vmem:[#allocation2 + $0x45] sm:$0xff]  ;;  %v876_v54 = vld [vmem:[#allocation2 + $0x55] sm:$0xff] }
  0x3f   : > { %9354 = vmatprep.subr.bf16.mxu0 %v9954_v53  ;;  %v882_v55 = vpack.c.bf16 %v874_v51, %v873_v50  ;;  %v9965_v56 = vld [vmem:[%s12425_s1 + $0x98] sm:$0xff]   ;;  %v878_v59 = vld [vmem:[#allocation2 + $0x65] sm:$0xff]  ;;  %v1029_v60 = vld [vmem:[#allocation2 + $0xe] sm:$0xff]  ;;  %v1365_v51 = vpack.c.bf16 %v10612_v23, %v10610_v22 }
  0x40   : > { %v1030_v61 = vld [vmem:[#allocation2 + $0x16] sm:$0xff]  ;;  %v9966_v62 = vld [vmem:[%s12425_s1 + $0xa0] sm:$0xff]  }
  0x41   : > { %9331 = vmatmul.mubr.msk.bf16.gmra.mrb[8].mxu0 %vm333_vm0, %v449_v57  ;;  %v1041_v0 = vpack.c.bf16 %v1030_v61, %v1029_v60  ;;  %v1034_v4 = vld [vmem:[#allocation2 + $0x36] sm:$0xff]  ;;  %v1035_v8 = vld [vmem:[#allocation2 + $0x3e] sm:$0xff] }
  0x42   : > { %9342 = vmatprep.mubr.msk.bf16.mxu0 %vm333_vm0, %v418_v58  ;;  %v877_v58 = vld [vmem:[#allocation2 + $0x5d] sm:$0xff]  ;;  %v9976_v22 = vld [vmem:[%s12425_s1 + $0xf0] sm:$0xff]  }
  0x43   : > { %v884_v63 = vpack.c.bf16 %v878_v59, %v877_v58  ;;  %v1038_v12 = vld [vmem:[#allocation2 + $0x56] sm:$0xff]  ;;  %v9970_v20 = vld [vmem:[%s12425_s1 + $0xc0] sm:$0xff]  }
  0x44   : > { %v9969_v14 = vld [vmem:[%s12425_s1 + $0xb8] sm:$0xff]   ;;  %v1362_v23 = vld [vmem:[#allocation2 + $0x62] sm:$0xff] }
  0x45   : > { %v1192_v19 = vld [vmem:[#allocation2 + $0x17] sm:$0xff]  ;;  %v1197_v39 = vld [vmem:[#allocation2 + $0x3f] sm:$0xff] }
  0x46   : > { %v1200_v43 = vld [vmem:[#allocation2 + $0x57] sm:$0xff]  ;;  %v9978_v58 = vld [vmem:[%s12425_s1 + $0x100] sm:$0xff]  }
  0x47   : > { %v9973_v45 = vld [vmem:[%s12425_s1 + $0xd8] sm:$0xff]   ;;  %v1520_v61 = vld [vmem:[#allocation2 + $0x43] sm:$0xff] }
  0x48   : > { %v1518_v59 = vld [vmem:[#allocation2 + $0x33] sm:$0xff]  ;;  %v1519_v60 = vld [vmem:[#allocation2 + $0x3b] sm:$0xff] }
  0x49   : > { %9343 = vmatmul.mubr.msk.bf16.vlgmr.msra.gmra.mrb[0].mxu0 %vm333_vm0, %v419_v1  ;;  %v1031_v1 = vld [vmem:[#allocation2 + $0x1e] sm:$0xff] }
  0x4a   : > { %9355 = vmatpush3.bf16.msra.mxu0 %v9954_v53  ;;  %9346 = vmatprep.mubr.msk.bf16.mxu0 %vm333_vm0, %v420_v2  ;;  %v875_v53 = vld [vmem:[#allocation2 + $0x4d] sm:$0xff] }
  0x4b   : > { %9356 = vmatprep.subr.bf16.mxu0 %v9955_v3  ;;  %v883_v57 = vpack.c.bf16 %v876_v54, %v875_v53  ;;  %v1032_v2 = vld [vmem:[#allocation2 + $0x26] sm:$0xff]  ;;  %v1367_v54 = vpack.c.bf16 %v10631_v31, %v10626_v29  ;;  %v1369_v29 = vpack.c.bf16 %v1362_v23, %v10645_v37 }
  0x4c   : > { %v1042_v5 = vpack.c.bf16 %v1032_v2, %v1031_v1  ;;  %v9975_v53 = vld [vmem:[%s12425_s1 + $0xe8] sm:$0xff]   ;;  %v1522_v2 = vld [vmem:[#allocation2 + $0x53] sm:$0xff] }
  0x4d   : > { %v1363_v31 = vld [vmem:[#allocation2 + $0x6a] sm:$0xff] }
  0x4e   : > { %9357 = vmatpush3.bf16.msra.mxu0 %v9955_v3  ;;  %v1033_v3 = vld [vmem:[#allocation2 + $0x2e] sm:$0xff] }
  0x4f   : > { %9358 = vmatprep.subr.bf16.mxu0 %v9956_v6  ;;  %v1043_v7 = vpack.c.bf16 %v1034_v4, %v1033_v3  ;;  %v1517_v37 = vld [vmem:[#allocation2 + $0x2b] sm:$0xff]  ;;  %v1523_v4 = vld [vmem:[#allocation2 + $0x5b] sm:$0xff] }
  0x50   : > { %v1521_v1 = vld [vmem:[#allocation2 + $0x4b] sm:$0xff] }
  0x51   : > { %9347 = vmatmul.mubr.msk.bf16.gmra.mrb[4].mxu0 %vm333_vm0, %v421_v9  ;;  %v1036_v9 = vld [vmem:[#allocation2 + $0x46] sm:$0xff]  ;;  %v9980_v3 = vld [vmem:[%s12425_s1 + $0x110] sm:$0xff]  }
  0x52   : > { %9359 = vmatpush3.bf16.msra.mxu0 %v9956_v6  ;;  %9350 = vmatprep.mubr.msk.bf16.mxu0 %vm333_vm0, %v422_v10  ;;  %v9967_v6 = vld [vmem:[%s12425_s1 + $0xa8] sm:$0xff]   ;;  %v9968_v10 = vld [vmem:[%s12425_s1 + $0xb0] sm:$0xff]   ;;  %v1044_v13 = vpack.c.bf16 %v1036_v9, %v1035_v8 }
  0x53   : > { %9360 = vmatprep.subr.bf16.mxu0 %v9957_v11  ;;  %v1525_v9 = vld [vmem:[#allocation2 + $0x6b] sm:$0xff] }
  0x56   : > { %9361 = vmatpush3.bf16.msra.mxu0 %v9957_v11  ;;  %v1037_v11 = vld [vmem:[#allocation2 + $0x4e] sm:$0xff] }
  0x57   : > { %9374 = vmatprep.subr.bf16.mxu0 %v9958_v16  ;;  %v1045_v15 = vpack.c.bf16 %v1038_v12, %v1037_v11  ;;  %v1677_v11 = vld [vmem:[#allocation2 + $0x1c] sm:$0xff]  ;;  %v1678_v12 = vld [vmem:[#allocation2 + $0x24] sm:$0xff] }
  0x59   : > { %9351 = vmatmul.mubr.msk.bf16.gmra.mrb[8].mxu0 %vm333_vm0, %v423_v17  ;;  %v1040_v17 = vld [vmem:[#allocation2 + $0x66] sm:$0xff] }
  0x5a   : > { %9362 = vmatprep.mubr.msk.bf16.mxu0 %vm333_vm0, %v717_v18  ;;  %v1191_v18 = vld [vmem:[#allocation2 + $0xf] sm:$0xff] }
  0x61   : > { %9363 = vmatmul.mubr.msk.bf16.vlgmr.msra.gmra.mrb[0].mxu0 %vm333_vm0, %v718_v25  ;;  %v1203_v25 = vpack.c.bf16 %v1192_v19, %v1191_v18  ;;  %v1682_v18 = vld [vmem:[#allocation2 + $0x44] sm:$0xff] }
  0x62   : > { %9375 = vmatpush3.bf16.msra.mxu0 %v9958_v16  ;;  %9366 = vmatprep.mubr.msk.bf16.mxu0 %vm333_vm0, %v719_v26  ;;  %v1039_v16 = vld [vmem:[#allocation2 + $0x5e] sm:$0xff] }
  0x63   : > { %9376 = vmatprep.subr.bf16.mxu0 %v9959_v27  ;;  %v1046_v21 = vpack.c.bf16 %v1040_v17, %v1039_v16  ;;  %v1193_v26 = vld [vmem:[#allocation2 + $0x1f] sm:$0xff]  ;;  %v1680_v16 = vld [vmem:[#allocation2 + $0x34] sm:$0xff] }
  0x64   : > { %v1681_v17 = vld [vmem:[#allocation2 + $0x3c] sm:$0xff] }
  0x66   : > { %9377 = vmatpush3.bf16.msra.mxu0 %v9959_v27  ;;  %v1194_v27 = vld [vmem:[#allocation2 + $0x27] sm:$0xff] }
  0x67   : > { %9378 = vmatprep.subr.bf16.mxu0 %v9960_v30 }
  0x69   : > { %9367 = vmatmul.mubr.msk.bf16.gmra.mrb[4].mxu0 %vm333_vm0, %v720_v33  ;;  %v1196_v33 = vld [vmem:[#allocation2 + $0x37] sm:$0xff] }
  0x6a   : > { %9379 = vmatpush3.bf16.msra.mxu0 %v9960_v30  ;;  %9370 = vmatprep.mubr.msk.bf16.mxu0 %vm333_vm0, %v721_v35  ;;  %v1195_v30 = vld [vmem:[#allocation2 + $0x2f] sm:$0xff] }
  0x6b   : > { %9380 = vmatprep.subr.bf16.mxu0 %v9961_v34  ;;  %v9971_v35 = vld [vmem:[%s12425_s1 + $0xc8] sm:$0xff]   ;;  %v1205_v38 = vpack.c.bf16 %v1196_v33, %v1195_v30 }
  0x6e   : > { %9381 = vmatpush3.bf16.msra.mxu0 %v9961_v34  ;;  %v1204_v34 = vpack.c.bf16 %v1194_v27, %v1193_v26  ;;  %v1685_v26 = vld [vmem:[#allocation2 + $0x5c] sm:$0xff]  ;;  %v1686_v27 = vld [vmem:[#allocation2 + $0x64] sm:$0xff] }
  0x6f   : > { %9394 = vmatprep.subr.bf16.mxu0 %v9962_v40  ;;  %v1693_v33 = vpack.c.bf16 %v1686_v27, %v1685_v26 }
  0x71   : > { %9371 = vmatmul.mubr.msk.bf16.gmra.mrb[8].mxu0 %vm333_vm0, %v722_v41  ;;  %v9972_v41 = vld [vmem:[%s12425_s1 + $0xd0] sm:$0xff]  }
  0x72   : > { %9382 = vmatprep.mubr.msk.bf16.mxu0 %vm333_vm0, %v879_v42  ;;  %v1199_v42 = vld [vmem:[#allocation2 + $0x4f] sm:$0xff] }
  0x73   : > { %v1207_v46 = vpack.c.bf16 %v1200_v43, %v1199_v42  ;;  %v9985_v42 = vld [vmem:[%s12426_s2 + $0x38] sm:$0xff]   ;;  %v10771_v43 = vld [vmem:[%s12426_s2] sm:$0xff]  }
  0x79   : > { %9383 = vmatmul.mubr.msk.bf16.vlgmr.msra.gmra.mrb[0].mxu0 %vm333_vm0, %v880_v47  ;;  %v1201_v47 = vld [vmem:[#allocation2 + $0x5f] sm:$0xff] }
  0x7a   : > { %9395 = vmatpush3.bf16.msra.mxu0 %v9962_v40  ;;  %9386 = vmatprep.mubr.msk.bf16.mxu0 %vm333_vm0, %v881_v49  ;;  %v1198_v40 = vld [vmem:[#allocation2 + $0x47] sm:$0xff] }
  0x7b   : > { %9396 = vmatprep.subr.bf16.mxu0 %v9963_v48  ;;  %v1206_v44 = vpack.c.bf16 %v1198_v40, %v1197_v39  ;;  %v9974_v49 = vld [vmem:[%s12425_s1 + $0xe0] sm:$0xff]   ;;  %v9983_v40 = vld [vmem:[%s12426_s2 + $0x28] sm:$0xff]  }
  0x7c   : > { %v9982_v39 = vld [vmem:[%s12426_s2 + $0x20] sm:$0xff]  }
  0x7d   : > { %9494 = vmatprep.subr.bf16.mxu1 %v9982_v39 }
  0x7e   : > { %9397 = vmatpush3.bf16.msra.mxu0 %v9963_v48  ;;  %v1202_v48 = vld [vmem:[#allocation2 + $0x67] sm:$0xff]  ;;  %9495 = vmatpush3.bf16.msra.mxu1 %v9982_v39 }
  0x7f   : > { %9398 = vmatprep.subr.bf16.mxu0 %v9964_v52  ;;  %v1208_v50 = vpack.c.bf16 %v1202_v48, %v1201_v47  ;;  %9496 = vmatprep.subr.bf16.mxu1 %v9983_v40 }
  0x81   : > { %9387 = vmatmul.mubr.msk.bf16.gmra.mrb[4].mxu0 %vm333_vm0, %v882_v55  ;;  %v1364_v55 = vld [vmem:[#allocation2 + $0x72] sm:$0xff] }
  0x82   : > { %9399 = vmatpush3.bf16.msra.mxu0 %v9964_v52  ;;  %9390 = vmatprep.mubr.msk.bf16.mxu0 %vm333_vm0, %v883_v57  ;;  %v1366_v52 = vpack.c.bf16 %v10623_v28, %v10614_v24  ;;  %v1368_v24 = vpack.c.bf16 %v10643_v36, %v10633_v32  ;;  %v9977_v28 = vld [vmem:[%s12425_s1 + $0xf8] sm:$0xff]   ;;  %v1516_v57 = vld [vmem:[#allocation2 + $0x23] sm:$0xff]  ;;  %v1370_v32 = vpack.c.bf16 %v1364_v55, %v1363_v31 }
  0x83   : > { %9400 = vmatprep.subr.bf16.mxu0 %v9965_v56  ;;  %9497 = vmatpush3.bf16.msra.mxu1 %v9983_v40 }
  0x86   : > { %9401 = vmatpush3.bf16.msra.mxu0 %v9965_v56  ;;  %v1515_v56 = vld [vmem:[#allocation2 + $0x1b] sm:$0xff] }
  0x87   : > { %9414 = vmatprep.subr.bf16.mxu0 %v9966_v62  ;;  %v1527_v36 = vpack.c.bf16 %v1516_v57, %v1515_v56 }
  0x89   : > { %9391 = vmatmul.mubr.msk.bf16.gmra.mrb[8].mxu0 %vm333_vm0, %v884_v63  ;;  %v9979_v63 = vld [vmem:[%s12425_s1 + $0x108] sm:$0xff]  }
  0x8a   : > { %9402 = vmatprep.mubr.msk.bf16.mxu0 %vm333_vm0, %v1041_v0  ;;  %v1529_v0 = vpack.c.bf16 %v1520_v61, %v1519_v60 }
  0x91   : > { %9403 = vmatmul.mubr.msk.bf16.vlgmr.msra.gmra.mrb[0].mxu0 %vm333_vm0, %v1042_v5  ;;  %v1524_v5 = vld [vmem:[#allocation2 + $0x63] sm:$0xff] }
  0x92   : > { %9415 = vmatpush3.bf16.msra.mxu0 %v9966_v62  ;;  %9406 = vmatprep.mubr.msk.bf16.mxu0 %vm333_vm0, %v1043_v7  ;;  %v1528_v62 = vpack.c.bf16 %v1518_v59, %v1517_v37  ;;  %v9981_v7 = vld [vmem:[%s12425_s1 + $0x118] sm:$0xff]   ;;  %v1531_v8 = vpack.c.bf16 %v1524_v5, %v1523_v4 }
  0x93   : > { %9416 = vmatprep.subr.bf16.mxu0 %v9967_v6 }
  0x96   : > { %9417 = vmatpush3.bf16.msra.mxu0 %v9967_v6  ;;  %v1530_v6 = vpack.c.bf16 %v1522_v2, %v1521_v1 }
  0x97   : > { %9418 = vmatprep.subr.bf16.mxu0 %v9968_v10 }
  0x99   : > { %9407 = vmatmul.mubr.msk.bf16.gmra.mrb[4].mxu0 %vm333_vm0, %v1044_v13 }
  0x9a   : > { %9419 = vmatpush3.bf16.msra.mxu0 %v9968_v10  ;;  %9410 = vmatprep.mubr.msk.bf16.mxu0 %vm333_vm0, %v1045_v15  ;;  %v1526_v10 = vld [vmem:[#allocation2 + $0x73] sm:$0xff] }
  0x9b   : > { %9420 = vmatprep.subr.bf16.mxu0 %v9969_v14  ;;  %v1532_v13 = vpack.c.bf16 %v1526_v10, %v1525_v9  ;;  %v1679_v15 = vld [vmem:[#allocation2 + $0x2c] sm:$0xff] }
  0x9c   : > { %v1690_v19 = vpack.c.bf16 %v1680_v16, %v1679_v15 }
  0x9e   : > { %9421 = vmatpush3.bf16.msra.mxu0 %v9969_v14  ;;  %v1689_v14 = vpack.c.bf16 %v1678_v12, %v1677_v11 }
  0x9f   : > { %9434 = vmatprep.subr.bf16.mxu0 %v9970_v20 }
  0xa1   : > { %9411 = vmatmul.mubr.msk.bf16.gmra.mrb[8].mxu0 %vm333_vm0, %v1046_v21  ;;  %v1683_v21 = vld [vmem:[#allocation2 + $0x4c] sm:$0xff] }
  0xa2   : > { %9422 = vmatprep.mubr.msk.bf16.mxu0 %vm333_vm0, %v1203_v25  ;;  %v1684_v25 = vld [vmem:[#allocation2 + $0x54] sm:$0xff] }
  0xa3   : > { %v1692_v30 = vpack.c.bf16 %v1684_v25, %v1683_v21 }
  0xa9   : > { %9423 = vmatmul.mubr.msk.bf16.vlgmr.msra.gmra.mrb[0].mxu0 %vm333_vm0, %v1204_v34  ;;  %v1687_v34 = vld [vmem:[#allocation2 + $0x6c] sm:$0xff] }
  0xaa   : > { %9435 = vmatpush3.bf16.msra.mxu0 %v9970_v20  ;;  %9426 = vmatprep.mubr.msk.bf16.mxu0 %vm333_vm0, %v1205_v38  ;;  %v1691_v20 = vpack.c.bf16 %v1682_v18, %v1681_v17 }
  0xab   : > { %9436 = vmatprep.subr.bf16.mxu0 %v9971_v35 }
  0xae   : > { %9437 = vmatpush3.bf16.msra.mxu0 %v9971_v35  ;;  %v1688_v35 = vld [vmem:[#allocation2 + $0x74] sm:$0xff] }
  0xaf   : > { %9438 = vmatprep.subr.bf16.mxu0 %v9972_v41  ;;  %v1694_v38 = vpack.c.bf16 %v1688_v35, %v1687_v34 }
  0xb1   : > { %9427 = vmatmul.mubr.msk.bf16.gmra.mrb[4].mxu0 %vm333_vm0, %v1206_v44 }
  0xb2   : > { %9439 = vmatpush3.bf16.msra.mxu0 %v9972_v41  ;;  %9430 = vmatprep.mubr.msk.bf16.mxu0 %vm333_vm0, %v1207_v46  ;;  %v9984_v41 = vld [vmem:[%s12426_s2 + $0x30] sm:$0xff]  }
  0xb3   : > { %9440 = vmatprep.subr.bf16.mxu0 %v9973_v45  ;;  %9498 = vmatprep.subr.bf16.mxu1 %v9984_v41 }
  0xb4   : > { %9499 = vmatpush3.bf16.msra.mxu1 %v9984_v41 }
  0xb5   : > { %9500 = vmatprep.subr.bf16.mxu1 %v9985_v42 }
  0xb6   : > { %9441 = vmatpush3.bf16.msra.mxu0 %v9973_v45 }
  0xb7   : > { %9454 = vmatprep.subr.bf16.mxu0 %v9974_v49 }
  0xb8   : > { %9501 = vmatpush3.bf16.msra.mxu1 %v9985_v42 }
  0xb9   : > { %9431 = vmatmul.mubr.msk.bf16.gmra.mrb[8].mxu0 %vm333_vm0, %v1208_v50  ;;  %9514 = vmatprep.subr.bf16.mxu1 %v10771_v43 }
  0xba   : > { %9442 = vmatprep.mubr.msk.bf16.mxu0 %vm333_vm0, %v1365_v51 }
  0xc1   : > { %9443 = vmatmul.mubr.msk.bf16.vlgmr.msra.gmra.mrb[0].mxu0 %vm333_vm0, %v1366_v52 }
  0xc2   : > { %9455 = vmatpush3.bf16.msra.mxu0 %v9974_v49  ;;  %9446 = vmatprep.mubr.msk.bf16.mxu0 %vm333_vm0, %v1367_v54 }
  0xc3   : > { %9456 = vmatprep.subr.bf16.mxu0 %v9975_v53 }
  0xc6   : > { %9457 = vmatpush3.bf16.msra.mxu0 %v9975_v53 }
  0xc7   : > { %9458 = vmatprep.subr.bf16.mxu0 %v9976_v22 }
  0xc9   : > { %9447 = vmatmul.mubr.msk.bf16.gmra.mrb[4].mxu0 %vm333_vm0, %v1368_v24 }
  0xca   : > { %9459 = vmatpush3.bf16.msra.mxu0 %v9976_v22  ;;  %9450 = vmatprep.mubr.msk.bf16.mxu0 %vm333_vm0, %v1369_v29 }
  0xcb   : > { %9460 = vmatprep.subr.bf16.mxu0 %v9977_v28 }
  0xce   : > { %9461 = vmatpush3.bf16.msra.mxu0 %v9977_v28 }
  0xcf   : > { %9474 = vmatprep.subr.bf16.mxu0 %v9978_v58 }
  0xd1   : > { %9451 = vmatmul.mubr.msk.bf16.gmra.mrb[8].mxu0 %vm333_vm0, %v1370_v32 }
  0xd2   : > { %9462 = vmatprep.mubr.msk.bf16.mxu0 %vm333_vm0, %v1527_v36 }
  0xd9   : > { %9463 = vmatmul.mubr.msk.bf16.vlgmr.msra.gmra.mrb[0].mxu0 %vm333_vm0, %v1528_v62 }
  0xda   : > { %9475 = vmatpush3.bf16.msra.mxu0 %v9978_v58  ;;  %9466 = vmatprep.mubr.msk.bf16.mxu0 %vm333_vm0, %v1529_v0 }
  0xdb   : > { %9476 = vmatprep.subr.bf16.mxu0 %v9979_v63 }
  0xde   : > { %9477 = vmatpush3.bf16.msra.mxu0 %v9979_v63 }
  0xdf   : > { %9478 = vmatprep.subr.bf16.mxu0 %v9980_v3 }
  0xe1   : > { %9467 = vmatmul.mubr.msk.bf16.gmra.mrb[4].mxu0 %vm333_vm0, %v1530_v6 }
  0xe2   : > { %9479 = vmatpush3.bf16.msra.mxu0 %v9980_v3  ;;  %9470 = vmatprep.mubr.msk.bf16.mxu0 %vm333_vm0, %v1531_v8 }
  0xe3   : > { %9480 = vmatprep.subr.bf16.mxu0 %v9981_v7 }
  0xe6   : > { %9481 = vmatpush3.bf16.msra.mxu0 %v9981_v7 }
  0xe9   : > { %9471 = vmatmul.mubr.msk.bf16.gmra.mrb[8].mxu0 %vm333_vm0, %v1532_v13 }
  0xea   : > { %9482 = vmatprep.mubr.msk.bf16.mxu0 %vm333_vm0, %v1689_v14 }
  0xf1   : > { %9483 = vmatmul.mubr.msk.bf16.vlgmr.msra.gmra.mrb[0].mxu0 %vm333_vm0, %v1690_v19 }
  0xf2   : > { %9486 = vmatprep.mubr.msk.bf16.mxu0 %vm333_vm0, %v1691_v20 }
  0xf9   : > { %9487 = vmatmul.mubr.msk.bf16.gmra.mrb[4].mxu0 %vm333_vm0, %v1692_v30 }
  0xfa   : > { %9490 = vmatprep.mubr.msk.bf16.mxu0 %vm333_vm0, %v1693_v33 }
 0x101   : > { %9491 = vmatmul.mubr.msk.bf16.gmra.mrb[8].mxu0 %vm333_vm0, %v1694_v38 }
 0x1c4   : > { %v9484_v44 = vpop.f32.mrb[0].mxu0 }
 0x1c5   : > { %vm1841_vm5 = vcmp.ge.f32.partialorder %v9484_v44, 0.0  ;;  %v1853_v45 = vmul.f32 0.01, %v9484_v44  ;;  %v1780_v46 = vpop.f32.mrb[1].mxu0 }
 0x1c6   : > { %vm1839_vm6 = vcmp.ge.f32.partialorder %v1780_v46, 0.0  ;;  %v1851_v47 = vmul.f32 0.01, %v1780_v46  ;;  %v9485_v48 = vpop.f32.mrb[2].mxu0 }
 0x1c7   : > { %v1865_v49 = vsel %vm1841_vm5, %v9484_v44, %v1853_v45  ;;  %vm1842_vm7 = vcmp.ge.f32.partialorder %v9485_v48, 0.0  ;;  %v1854_v50 = vmul.f32 0.01, %v9485_v48  ;;  %v1783_v51 = vpop.f32.mrb[3].mxu0 }
 0x1c8   : > { %1877 = vst.msk [vmem:[#allocation3 + $0x10] sm:$0xff] %vm333_vm0, %v1865_v49  ;;  %v1863_v52 = vsel %vm1839_vm6, %v1780_v46, %v1851_v47  ;;  %vm1840_vm8 = vcmp.ge.f32.partialorder %v1783_v51, 0.0  ;;  %v1852_v53 = vmul.f32 0.01, %v1783_v51 }
 0x1c9   : > { %1875 = vst.msk [vmem:[#allocation3] sm:$0xff] %vm333_vm0, %v1863_v52  ;;  %v1866_v54 = vsel %vm1842_vm7, %v9485_v48, %v1854_v50 }
 0x1ca   : > { %1878 = vst.msk [vmem:[#allocation3 + $0x18] sm:$0xff] %vm333_vm0, %v1866_v54  ;;  %v1864_v22 = vsel %vm1840_vm8, %v1783_v51, %v1852_v53 }
 0x1cb   : > { %1876 = vst.msk [vmem:[#allocation3 + $0x8] sm:$0xff] %vm333_vm0, %v1864_v22 }
 0x1cc   : > { %v9488_v23 = vpop.f32.mrb[4].mxu0 }
 0x1cd   : > { %vm1845_vm9 = vcmp.ge.f32.partialorder %v9488_v23, 0.0  ;;  %v1857_v24 = vmul.f32 0.01, %v9488_v23  ;;  %v1796_v28 = vpop.f32.mrb[5].mxu0 }
 0x1ce   : > { %vm1843_vm10 = vcmp.ge.f32.partialorder %v1796_v28, 0.0  ;;  %v1855_v29 = vmul.f32 0.01, %v1796_v28  ;;  %v9489_v31 = vpop.f32.mrb[6].mxu0 }
 0x1cf   : > { %v1893_v55 = vld [vmem:[#allocation3 + $0x10] sm:$0xff]  ;;  %v1869_v57 = vsel %vm1845_vm9, %v9488_v23, %v1857_v24  ;;  %vm1846_vm11 = vcmp.ge.f32.partialorder %v9489_v31, 0.0  ;;  %v1858_v58 = vmul.f32 0.01, %v9489_v31  ;;  %v1799_v37 = vpop.f32.mrb[7].mxu0 }
 0x1d0   : > { %v1917_v56 = vld [vmem:[#allocation3 + $0x10] sm:$0x7f]  ;;  %1905 = vst.msk [vmem:[#allocation2 + $0x1e] sm:$0xff] %vm333_vm0, %v1893_v55  ;;  %v1891_v32 = vld [vmem:[#allocation3] sm:$0xff]  ;;  %1881 = vst.msk [vmem:[#allocation3 + $0x30] sm:$0xff] %vm333_vm0, %v1869_v57  ;;  %v1867_v36 = vsel %vm1843_vm10, %v1796_v28, %v1855_v29  ;;  %vm1844_vm12 = vcmp.ge.f32.partialorder %v1799_v37, 0.0 }
 0x1d1   : > { %1920 = vst.msk [vmem:[#allocation2 + $0x79] sm:$0x7f] %vm367_vm4, %v1917_v56  ;;  %v1894_v59 = vld [vmem:[#allocation3 + $0x18] sm:$0xff]  ;;  %v1870_v60 = vsel %vm1846_vm11, %v9489_v31, %v1858_v58  ;;  %v1856_v61 = vmul.f32 0.01, %v1799_v37 }
 0x1d2   : > { %1903 = vst.msk [vmem:[#allocation2 + $0xe] sm:$0xff] %vm333_vm0, %v1891_v32  ;;  %1918 = vst.msk [vmem:[#allocation2 + $0x69] sm:$0xff] %vm333_vm0, %v1891_v32  ;;  %v1892_v62 = vld [vmem:[#allocation3 + $0x8] sm:$0xff] }
 0x1d3   : > { %1879 = vst.msk [vmem:[#allocation3 + $0x20] sm:$0xff] %vm333_vm0, %v1867_v36  ;;  %1906 = vst.msk [vmem:[#allocation2 + $0x26] sm:$0xff] %vm333_vm0, %v1894_v59  ;;  %v1868_v63 = vsel %vm1844_vm12, %v1799_v37, %v1856_v61 }
 0x1d4   : > { %1882 = vst.msk [vmem:[#allocation3 + $0x38] sm:$0xff] %vm333_vm0, %v1870_v60  ;;  %1919 = vst.msk [vmem:[#allocation2 + $0x71] sm:$0xff] %vm333_vm0, %v1892_v62  ;;  %v9492_v0 = vpop.f32.mrb[8].mxu0  ;;  %v9987_v60 = vld [vmem:[%s12426_s2 + $0x8] sm:$0xff]  }
 0x1d5   : > { %1904 = vst.msk [vmem:[#allocation2 + $0x16] sm:$0xff] %vm333_vm0, %v1892_v62  ;;  %1880 = vst.msk [vmem:[#allocation3 + $0x28] sm:$0xff] %vm333_vm0, %v1868_v63  ;;  %vm1849_vm13 = vcmp.ge.f32.partialorder %v9492_v0, 0.0  ;;  %v1861_v1 = vmul.f32 0.01, %v9492_v0  ;;  %v1812_v2 = vpop.f32.mrb[9].mxu0 }
 0x1d6   : > { %vm1847_vm14 = vcmp.ge.f32.partialorder %v1812_v2, 0.0  ;;  %v1859_v3 = vmul.f32 0.01, %v1812_v2  ;;  %v9493_v4 = vpop.f32.mrb[10].mxu0  ;;  %v9988_v63 = vld [vmem:[%s12426_s2 + $0x10] sm:$0xff]  }
 0x1d7   : > { %v1897_v5 = vld [vmem:[#allocation3 + $0x30] sm:$0xff]  ;;  %v1873_v6 = vsel %vm1849_vm13, %v9492_v0, %v1861_v1  ;;  %vm1850_vm15 = vcmp.ge.f32.partialorder %v9493_v4, 0.0  ;;  %v1862_v7 = vmul.f32 0.01, %v9493_v4  ;;  %v1815_v8 = vpop.f32.mrb[11].mxu0 }
 0x1d8   : > { %1909 = vst.msk [vmem:[#allocation2 + $0x3e] sm:$0xff] %vm333_vm0, %v1897_v5  ;;  %1885 = vst.msk [vmem:[#allocation3 + $0x50] sm:$0xff] %vm333_vm0, %v1873_v6  ;;  %v1871_v10 = vsel %vm1847_vm14, %v1812_v2, %v1859_v3  ;;  %vm1848_vm4 = vcmp.ge.f32.partialorder %v1815_v8, 0.0  ;;  %v1860_v11 = vmul.f32 0.01, %v1815_v8  ;;  %v9989_v5 = vld [vmem:[%s12426_s2 + $0x18] sm:$0xff]  }
 0x1d9   : > { %v1927_v12 = vld [vmem:[#allocation2 + $0xe] sm:$0x1]  ;;  %1883 = vst.msk [vmem:[#allocation3 + $0x40] sm:$0xff] %vm333_vm0, %v1871_v10  ;;  %v1874_v14 = vsel %vm1850_vm15, %v9493_v4, %v1862_v7  ;;  %v1929_v15 = vld [vmem:[#allocation2 + $0x25] sm:$0x1] }
 0x1da   : > { %v1895_v9 = vld [vmem:[#allocation3 + $0x20] sm:$0xff]  ;;  %1928 = vst.msk [vmem:[#allocation2 + $0x19] sm:$0x1] %vm370_vm3, %v1927_v12  ;;  %v1935_v16 = vld [vmem:[#allocation2 + $0x28] sm:$0x1]  ;;  %v1872_v17 = vsel %vm1848_vm4, %v1815_v8, %v1860_v11 }
 0x1db   : > { %1907 = vst.msk [vmem:[#allocation2 + $0x2e] sm:$0xff] %vm333_vm0, %v1895_v9  ;;  %v1898_v13 = vld [vmem:[#allocation3 + $0x38] sm:$0xff]  ;;  %1886 = vst.msk [vmem:[#allocation3 + $0x58] sm:$0xff] %vm333_vm0, %v1874_v14  ;;  %v1955_v20 = vld [vmem:[#allocation2 + $0x69] sm:$0x1] }
 0x1dc   : > { %1910 = vst.msk [vmem:[#allocation2 + $0x46] sm:$0xff] %vm333_vm0, %v1898_v13  ;;  %v1931_v18 = vld [vmem:[#allocation2 + $0x1b] sm:$0x1]  ;;  %v1896_v19 = vld [vmem:[#allocation3 + $0x28] sm:$0xff]  ;;  %1884 = vst.msk [vmem:[#allocation3 + $0x48] sm:$0xff] %vm333_vm0, %v1872_v17 }
 0x1dd   : > { %1930 = vst.msk [vmem:[#allocation2 + $0x1a] sm:$0x1] %vm370_vm3, %v1929_v15  ;;  %1936 = vst.msk [vmem:[#allocation2 + $0x33] sm:$0x1] %vm370_vm3, %v1935_v16  ;;  %v1925_v30 = vld [vmem:[#allocation2 + $0x18] sm:$0x1] }
 0x1de   : > { %1932 = vst.msk [vmem:[#allocation2 + $0x26] sm:$0x1] %vm370_vm3, %v1931_v18  ;;  %1956 = vst.msk [vmem:[#allocation2 + $0x74] sm:$0x1] %vm370_vm3, %v1955_v20  ;;  %v1953_v38 = vld [vmem:[#allocation2 + $0x73] sm:$0x1] }
 0x1df   : > { %1908 = vst.msk [vmem:[#allocation2 + $0x36] sm:$0xff] %vm333_vm0, %v1896_v19  ;;  %v1901_v21 = vld [vmem:[#allocation3 + $0x50] sm:$0xff]  ;;  %v1937_v25 = vld [vmem:[#allocation2 + $0x3f] sm:$0x1]  ;;  %v1943_v26 = vld [vmem:[#allocation2 + $0x42] sm:$0x1] }
 0x1e0   : > { %1913 = vst.msk [vmem:[#allocation2 + $0x5e] sm:$0xff] %vm333_vm0, %v1901_v21  ;;  %v1899_v27 = vld [vmem:[#allocation3 + $0x40] sm:$0xff]  ;;  %v1985_v58 = vld [vmem:[#allocation2 + $0x11] sm:$0xff]  ;;  %v9991_v18 = vld [vmem:[%s12426_s2 + $0x48] sm:$0xff]  }
 0x1e1   : > { %1938 = vst.msk [vmem:[#allocation2 + $0x34] sm:$0x1] %vm370_vm3, %v1937_v25  ;;  %1944 = vst.msk [vmem:[#allocation2 + $0x4d] sm:$0x1] %vm370_vm3, %v1943_v26  ;;  %v1959_v15 = vld [vmem:[#allocation2 + $0x10] sm:$0xff] }
 0x1e2   : > { %v1933_v33 = vld [vmem:[#allocation2 + $0x32] sm:$0x1]  ;;  %1911 = vst.msk [vmem:[#allocation2 + $0x4e] sm:$0xff] %vm333_vm0, %v1899_v27  ;;  %v1888_v34 = vld [vmem:[#allocation3 + $0x55] sm:$0x3f]  ;;  %v10815_v44 = vld [vmem:[#allocation2 + $0x2a] sm:$0xff] }
 0x1e3   : > { %v1902_v35 = vld [vmem:[#allocation3 + $0x58] sm:$0x7]  ;;  %1934 = vst.msk [vmem:[#allocation2 + $0x27] sm:$0x1] %vm370_vm3, %v1933_v33  ;;  %v1887_v39 = vld [vmem:[#allocation3 + $0x4d] sm:$0xff]  ;;  %v10834_v23 = vld [vmem:[#allocation2 + $0x42] sm:$0xff] }
 0x1e4   : > { %1914 = vst.msk [vmem:[#allocation2 + $0x66] sm:$0x7] %vm360_vm2, %v1902_v35  ;;  %v1900_v40 = vld [vmem:[#allocation3 + $0x48] sm:$0xff]  ;;  %v1939_v41 = vld [vmem:[#allocation2 + $0x35] sm:$0x1]  ;;  %v10819_v47 = vld [vmem:[#allocation2 + $0x1a] sm:$0xff] }
 0x1e5   : > { %1890 = vst.msk [vmem:[#allocation2 + $0x8] sm:$0x3f] %vm335_vm1, %v1888_v34  ;;  %v1941_v42 = vld [vmem:[#allocation2 + $0x4c] sm:$0x1]  ;;  %v1986_v29 = vld [vmem:[#allocation2 + $0x19] sm:$0xff]  ;;  %v9992_v20 = vld [vmem:[%s12426_s2 + $0x50] sm:$0xff]  }
 0x1e6   : > { %1889 = vst.msk [vmem:[#allocation2] sm:$0xff] %vm333_vm0, %v1887_v39  ;;  %1912 = vst.msk [vmem:[#allocation2 + $0x56] sm:$0xff] %vm333_vm0, %v1900_v40  ;;  %v1996_v37 = vpack.c.bf16 %v1986_v29, %v1985_v58  ;;  %v1988_v59 = vld [vmem:[#allocation2 + $0x29] sm:$0xff]  ;;  %v1960_v13 = vld [vmem:[#allocation2 + $0x18] sm:$0xff] }
 0x1e7   : > { %1926 = vst.msk [vmem:[#allocation2 + $0xd] sm:$0x1] %vm370_vm3, %v1925_v30  ;;  %1940 = vst.msk [vmem:[#allocation2 + $0x40] sm:$0x1] %vm370_vm3, %v1939_v41  ;;  %v1970_v16 = vpack.c.bf16 %v1960_v13, %v1959_v15  ;;  %v1962_v17 = vld [vmem:[#allocation2 + $0x28] sm:$0xff]  ;;  %v1964_v26 = vld [vmem:[#allocation2 + $0x38] sm:$0xff] }
 0x1e8   : > { %1954 = vst.msk [vmem:[#allocation2 + $0x68] sm:$0x1] %vm370_vm3, %v1953_v38  ;;  %1942 = vst.msk [vmem:[#allocation2 + $0x41] sm:$0x1] %vm370_vm3, %v1941_v42  ;;  %v10817_v45 = vld [vmem:[#allocation2 + $0x32] sm:$0xff]  ;;  %v9994_v35 = vld [vmem:[%s12426_s2 + $0x60] sm:$0xff]  }
 0x1e9   : > { %v1947_v46 = vld [vmem:[#allocation2 + $0x4f] sm:$0x1]  ;;  %v2917_v48 = vpack.c.bf16 %v10817_v45, %v10815_v44  ;;  %v1989_v0 = vld [vmem:[#allocation2 + $0x31] sm:$0xff] }
 0x1ea   : > { %1948 = vst.msk [vmem:[#allocation2 + $0x5a] sm:$0x1] %vm370_vm3, %v1947_v46  ;;  %v10824_v51 = vld [vmem:[#allocation2 + $0x22] sm:$0xff]  ;;  %v1963_v21 = vld [vmem:[#allocation2 + $0x30] sm:$0xff]  ;;  %v9993_v33 = vld [vmem:[%s12426_s2 + $0x58] sm:$0xff]  }
 0x1eb   : > { %v1949_v49 = vld [vmem:[#allocation2 + $0x66] sm:$0x1]  ;;  %v2916_v53 = vpack.c.bf16 %v10824_v51, %v10819_v47  ;;  %v1972_v27 = vpack.c.bf16 %v1964_v26, %v1963_v21  ;;  %v2582_v21 = vld [vmem:[#allocation2 + $0x1e] sm:$0xff]  ;;  %v2585_v26 = vld [vmem:[#allocation2 + $0x36] sm:$0xff] }
 0x1ec   : > { %v1921_v50 = vld [vmem:[#allocation2 + $0xb] sm:$0x1]  ;;  %1950 = vst.msk [vmem:[#allocation2 + $0x5b] sm:$0x1] %vm370_vm3, %v1949_v49  ;;  %v1987_v56 = vld [vmem:[#allocation2 + $0x21] sm:$0xff]  ;;  %v2258_v49 = vld [vmem:[#allocation2 + $0x12] sm:$0xff] }
 0x1ed   : > { %v1923_v52 = vld [vmem:[#allocation2 + $0x1] sm:$0x1]  ;;  %1922 = vst.msk [vmem:[#allocation2] sm:$0x1] %vm370_vm3, %v1921_v50  ;;  %v1945_v54 = vld [vmem:[#allocation2 + $0x59] sm:$0x1]  ;;  %v1997_v62 = vpack.c.bf16 %v1988_v59, %v1987_v56  ;;  %v2269_v50 = vpack.c.bf16 %v10819_v47, %v2258_v49 }
 0x1ee   : > { %1924 = vst.msk [vmem:[#allocation2 + $0xc] sm:$0x1] %vm370_vm3, %v1923_v52  ;;  %1946 = vst.msk [vmem:[#allocation2 + $0x4e] sm:$0x1] %vm370_vm3, %v1945_v54  ;;  %v1951_v28 = vld [vmem:[#allocation2 + $0x5c] sm:$0x1]  ;;  %v2270_v54 = vpack.c.bf16 %v10815_v44, %v10824_v51 }
 0x1ef   : > { %v10832_v22 = vld [vmem:[#allocation2 + $0x3a] sm:$0xff]  ;;  %1952 = vst.msk [vmem:[#allocation2 + $0x67] sm:$0x1] %vm370_vm3, %v1951_v28  ;;  %v10841_v36 = vld [vmem:[#allocation2 + $0x52] sm:$0xff]  ;;  %v2256_v42 = vld [vmem:[#allocation2 + $0x2] sm:$0xff] }
 0x1f0   : > { %v2918_v24 = vpack.c.bf16 %v10834_v23, %v10832_v22  ;;  %v1983_v31 = vld [vmem:[#allocation2 + $0x1] sm:$0xff]  ;;  %v1990_v1 = vld [vmem:[#allocation2 + $0x39] sm:$0xff]  ;;  %v1993_v10 = vld [vmem:[#allocation2 + $0x51] sm:$0xff]  ;;  %v2271_v29 = vpack.c.bf16 %v10832_v22, %v10817_v45 }
 0x1f1   : > { %v1998_v3 = vpack.c.bf16 %v1990_v1, %v1989_v0  ;;  %v1991_v4 = vld [vmem:[#allocation2 + $0x41] sm:$0xff]  ;;  %v1967_v40 = vld [vmem:[#allocation2 + $0x50] sm:$0xff]  ;;  %v10013_v44 = vld [vmem:[%s12426_s2 + $0xf8] sm:$0xff]  }
 0x1f2   : > { %v1961_v14 = vld [vmem:[#allocation2 + $0x20] sm:$0xff]  ;;  %v9995_v52 = vld [vmem:[%s12426_s2 + $0x68] sm:$0xff]   ;;  %v9996_v28 = vld [vmem:[%s12426_s2 + $0x70] sm:$0xff]  }
 0x1f3   : > { %v1994_v7 = vld [vmem:[#allocation2 + $0x59] sm:$0xff]  ;;  %v1971_v19 = vpack.c.bf16 %v1962_v17, %v1961_v14  ;;  %v2418_v58 = vld [vmem:[#allocation2 + $0xd] sm:$0xff]  ;;  %v3067_v22 = vld [vmem:[#allocation2 + $0x23] sm:$0xff] }
 0x1f4   : > { %v1957_v8 = vld [vmem:[#allocation2] sm:$0xff]  ;;  %v2000_v11 = vpack.c.bf16 %v1994_v7, %v1993_v10  ;;  %v1968_v38 = vld [vmem:[#allocation2 + $0x58] sm:$0xff]  ;;  %v2580_v17 = vld [vmem:[#allocation2 + $0xe] sm:$0xff] }
 0x1f5   : > { %v1984_v55 = vld [vmem:[#allocation2 + $0x9] sm:$0xff]  ;;  %v1965_v30 = vld [vmem:[#allocation2 + $0x40] sm:$0xff]  ;;  %v1974_v41 = vpack.c.bf16 %v1968_v38, %v1967_v40  ;;  %v2419_v59 = vld [vmem:[#allocation2 + $0x15] sm:$0xff] }
 0x1f6   : > { %v1995_v57 = vpack.c.bf16 %v1984_v55, %v1983_v31  ;;  %v10839_v32 = vld [vmem:[#allocation2 + $0x4a] sm:$0xff]  ;;  %v9997_v31 = vld [vmem:[%s12426_s2 + $0x78] sm:$0xff]   ;;  %v9998_v56 = vld [vmem:[%s12426_s2 + $0x80] sm:$0xff]  }
 0x1f7   : > { %v2919_v61 = vpack.c.bf16 %v10841_v36, %v10839_v32  ;;  %v1992_v2 = vld [vmem:[#allocation2 + $0x49] sm:$0xff]  ;;  %v2272_v55 = vpack.c.bf16 %v10839_v32, %v10834_v23  ;;  %v2420_v0 = vld [vmem:[#allocation2 + $0x1d] sm:$0xff]  ;;  %v2427_v7 = vld [vmem:[#allocation2 + $0x55] sm:$0xff] }
 0x1f8   : > { %9502 = vmatprep.mubr.msk.bf16.mxu1 %vm333_vm0, %v1995_v57  ;;  %v1999_v6 = vpack.c.bf16 %v1992_v2, %v1991_v4  ;;  %v1958_v9 = vld [vmem:[#allocation2 + $0x8] sm:$0xff]  ;;  %v10906_v57 = vld [vmem:[#allocation2 + $0x5a] sm:$0xff]  ;;  %v10012_v47 = vld [vmem:[%s12426_s2 + $0xf0] sm:$0xff]  }
 0x1f9   : > { %9503 = vmatmul.mubr.msk.bf16.vlgmr.msra.gmra.mrb[0].mxu1 %vm333_vm0, %v1996_v37  ;;  %v1969_v12 = vpack.c.bf16 %v1958_v9, %v1957_v8  ;;  %v1966_v25 = vld [vmem:[#allocation2 + $0x48] sm:$0xff]  ;;  %v2273_v37 = vpack.c.bf16 %v10906_v57, %v10841_v36  ;;  %v2423_v2 = vld [vmem:[#allocation2 + $0x35] sm:$0xff]  ;;  %v2428_v15 = vld [vmem:[#allocation2 + $0x5d] sm:$0xff] }
 0x1fa   : > { %9515 = vmatpush3.bf16.msra.mxu1 %v10771_v43  ;;  %9506 = vmatprep.mubr.msk.bf16.mxu1 %vm333_vm0, %v1997_v62  ;;  %v9990_v43 = vld [vmem:[%s12426_s2 + $0x40] sm:$0xff]   ;;  %v1973_v34 = vpack.c.bf16 %v1966_v25, %v1965_v30  ;;  %v2257_v39 = vld [vmem:[#allocation2 + $0xa] sm:$0xff]  ;;  %v10001_v10 = vld [vmem:[%s12426_s2 + $0x98] sm:$0xff]  }
 0x1fb   : > { %9516 = vmatprep.subr.bf16.mxu1 %v9987_v60  ;;  %v2268_v46 = vpack.c.bf16 %v2257_v39, %v2256_v42  ;;  %v2421_v62 = vld [vmem:[#allocation2 + $0x25] sm:$0xff]  ;;  %v2581_v14 = vld [vmem:[#allocation2 + $0x16] sm:$0xff] }
 0x1fc   : > { %v2431_v1 = vpack.c.bf16 %v2421_v62, %v2420_v0  ;;  %v2425_v8 = vld [vmem:[#allocation2 + $0x45] sm:$0xff]  ;;  %v2589_v38 = vld [vmem:[#allocation2 + $0x56] sm:$0xff] }
 0x1fd   : > { %v2429_v13 = vld [vmem:[#allocation2 + $0x65] sm:$0xff]  ;;  %v10008_v62 = vld [vmem:[%s12426_s2 + $0xd0] sm:$0xff]   ;;  %v3070_v36 = vld [vmem:[#allocation2 + $0x3b] sm:$0xff] }
 0x1fe   : > { %9517 = vmatpush3.bf16.msra.mxu1 %v9987_v60  ;;  %v2430_v60 = vpack.c.bf16 %v2419_v59, %v2418_v58  ;;  %v2587_v39 = vld [vmem:[#allocation2 + $0x46] sm:$0xff]  ;;  %v2751_v0 = vld [vmem:[#allocation2 + $0x57] sm:$0xff] }
 0x1ff   : > { %9518 = vmatprep.subr.bf16.mxu1 %v9988_v63  ;;  %v2591_v49 = vld [vmem:[#allocation2 + $0x66] sm:$0xff]  ;;  %v3069_v32 = vld [vmem:[#allocation2 + $0x33] sm:$0xff] }
 0x200   : > { %v10007_v59 = vld [vmem:[%s12426_s2 + $0xc8] sm:$0xff]  }
 0x201   : > { %9507 = vmatmul.mubr.msk.bf16.gmra.mrb[4].mxu1 %vm333_vm0, %v1998_v3  ;;  %v9999_v3 = vld [vmem:[%s12426_s2 + $0x88] sm:$0xff]  }
 0x202   : > { %9510 = vmatprep.mubr.msk.bf16.mxu1 %vm333_vm0, %v1999_v6  ;;  %9519 = vmatpush3.bf16.msra.mxu1 %v9988_v63  ;;  %v2422_v63 = vld [vmem:[#allocation2 + $0x2d] sm:$0xff]  ;;  %v2424_v6 = vld [vmem:[#allocation2 + $0x3d] sm:$0xff] }
 0x203   : > { %9520 = vmatprep.subr.bf16.mxu1 %v9989_v5  ;;  %v2432_v4 = vpack.c.bf16 %v2423_v2, %v2422_v63  ;;  %v2433_v9 = vpack.c.bf16 %v2425_v8, %v2424_v6  ;;  %v2749_v63 = vld [vmem:[#allocation2 + $0x47] sm:$0xff] }
 0x204   : > { %v10010_v6 = vld [vmem:[%s12426_s2 + $0xe0] sm:$0xff]   ;;  %v2914_v23 = vld [vmem:[#allocation2 + $0x6a] sm:$0xff] }
 0x205   : > { %v2913_v51 = vld [vmem:[#allocation2 + $0x62] sm:$0xff] }
 0x206   : > { %9521 = vmatpush3.bf16.msra.mxu1 %v9989_v5  ;;  %v10000_v5 = vld [vmem:[%s12426_s2 + $0x90] sm:$0xff]   ;;  %v2920_v45 = vpack.c.bf16 %v2913_v51, %v10906_v57 }
 0x207   : > { %9534 = vmatprep.subr.bf16.mxu1 %v9990_v43 }
 0x209   : > { %9511 = vmatmul.mubr.msk.bf16.gmra.mrb[8].mxu1 %vm333_vm0, %v2000_v11 }
 0x20a   : > { %9522 = vmatprep.mubr.msk.bf16.mxu1 %vm333_vm0, %v1969_v12  ;;  %v10002_v12 = vld [vmem:[%s12426_s2 + $0xa0] sm:$0xff]  }
 0x211   : > { %9523 = vmatmul.mubr.msk.bf16.vlgmr.msra.gmra.mrb[0].mxu1 %vm333_vm0, %v1970_v16  ;;  %v2435_v16 = vpack.c.bf16 %v2429_v13, %v2428_v15  ;;  %v10015_v13 = vld [vmem:[%s12426_s2 + $0x108] sm:$0xff]   ;;  %v10016_v15 = vld [vmem:[%s12426_s2 + $0x110] sm:$0xff]  }
 0x212   : > { %9535 = vmatpush3.bf16.msra.mxu1 %v9990_v43  ;;  %9526 = vmatprep.mubr.msk.bf16.mxu1 %vm333_vm0, %v1971_v19  ;;  %v2426_v43 = vld [vmem:[#allocation2 + $0x4d] sm:$0xff] }
 0x213   : > { %9536 = vmatprep.subr.bf16.mxu1 %v9991_v18  ;;  %v2434_v11 = vpack.c.bf16 %v2427_v7, %v2426_v43  ;;  %v2583_v19 = vld [vmem:[#allocation2 + $0x26] sm:$0xff] }
 0x214   : > { %v2593_v25 = vpack.c.bf16 %v2583_v19, %v2582_v21  ;;  %v2753_v43 = vld [vmem:[#allocation2 + $0x67] sm:$0xff]  ;;  %v2752_v7 = vld [vmem:[#allocation2 + $0x5f] sm:$0xff]  ;;  %v3073_v19 = vld [vmem:[#allocation2 + $0x53] sm:$0xff] }
 0x215   : > { %v2759_v8 = vpack.c.bf16 %v2753_v43, %v2752_v7  ;;  %v10017_v21 = vld [vmem:[%s12426_s2 + $0x118] sm:$0xff]   ;;  %v3439_v43 = vlaneseq  ;;  %v10398_v7 = vmov 1966171168  }
 0x216   : > { %9537 = vmatpush3.bf16.msra.mxu1 %v9991_v18  ;;  %v2592_v18 = vpack.c.bf16 %v2581_v14, %v2580_v17  ;;  %v3074_v17 = vld [vmem:[#allocation2 + $0x5b] sm:$0xff] }
 0x217   : > { %9538 = vmatprep.subr.bf16.mxu1 %v9992_v20  ;;  %vm11070_vm7 = vcmp.lt.s32.totalorder %v3439_v43, 64  ;;  %vm3463_vm15 = vcmp.ge.s32.totalorder %v3439_v43, 64  ;;  %vm3464_vm4 = vcmp.lt.s32.totalorder %v3439_v43, 128 }
 0x219   : > { %9527 = vmatmul.mubr.msk.bf16.gmra.mrb[4].mxu1 %vm333_vm0, %v1972_v27  ;;  %v10003_v27 = vld [vmem:[%s12426_s2 + $0xa8] sm:$0xff]  }
 0x21a   : > { %9530 = vmatprep.mubr.msk.bf16.mxu1 %vm333_vm0, %v1973_v34  ;;  %9539 = vmatpush3.bf16.msra.mxu1 %v9992_v20  ;;  %v2584_v20 = vld [vmem:[#allocation2 + $0x2e] sm:$0xff]  ;;  %v2586_v34 = vld [vmem:[#allocation2 + $0x3e] sm:$0xff] }
 0x21b   : > { %9540 = vmatprep.subr.bf16.mxu1 %v9993_v33  ;;  %v2594_v30 = vpack.c.bf16 %v2585_v26, %v2584_v20  ;;  %v2595_v40 = vpack.c.bf16 %v2587_v39, %v2586_v34  ;;  %v3077_v26 = vld [vmem:[#allocation2 + $0x73] sm:$0xff]  ;;  %v3228_v34 = vld [vmem:[#allocation2 + $0x1c] sm:$0xff] }
 0x21c   : > { %v3232_v39 = vld [vmem:[#allocation2 + $0x3c] sm:$0xff] }
 0x21e   : > { %9541 = vmatpush3.bf16.msra.mxu1 %v9993_v33  ;;  %v10004_v33 = vld [vmem:[%s12426_s2 + $0xb0] sm:$0xff]  }
 0x21f   : > { %9554 = vmatprep.subr.bf16.mxu1 %v9994_v35 }
 0x221   : > { %9531 = vmatmul.mubr.msk.bf16.gmra.mrb[8].mxu1 %vm333_vm0, %v1974_v41  ;;  %v10005_v41 = vld [vmem:[%s12426_s2 + $0xb8] sm:$0xff]  }
 0x222   : > { %9542 = vmatprep.mubr.msk.bf16.mxu1 %vm333_vm0, %v2268_v46  ;;  %v10006_v46 = vld [vmem:[%s12426_s2 + $0xc0] sm:$0xff]  }
 0x229   : > { %9543 = vmatmul.mubr.msk.bf16.vlgmr.msra.gmra.mrb[0].mxu1 %vm333_vm0, %v2269_v50  ;;  %v2743_v50 = vld [vmem:[#allocation2 + $0x17] sm:$0xff] }
 0x22a   : > { %9555 = vmatpush3.bf16.msra.mxu1 %v9994_v35  ;;  %9546 = vmatprep.mubr.msk.bf16.mxu1 %vm333_vm0, %v2270_v54  ;;  %v2588_v35 = vld [vmem:[#allocation2 + $0x4e] sm:$0xff] }
 0x22b   : > { %9556 = vmatprep.subr.bf16.mxu1 %v9995_v52  ;;  %v2596_v42 = vpack.c.bf16 %v2589_v38, %v2588_v35  ;;  %v3231_v38 = vld [vmem:[#allocation2 + $0x34] sm:$0xff] }
 0x22e   : > { %9557 = vmatpush3.bf16.msra.mxu1 %v9995_v52  ;;  %v2590_v52 = vld [vmem:[#allocation2 + $0x5e] sm:$0xff] }
 0x22f   : > { %9558 = vmatprep.subr.bf16.mxu1 %v9996_v28  ;;  %v2597_v54 = vpack.c.bf16 %v2591_v49, %v2590_v52  ;;  %v3234_v49 = vld [vmem:[#allocation2 + $0x4c] sm:$0xff]  ;;  %v3237_v52 = vld [vmem:[#allocation2 + $0x64] sm:$0xff] }
 0x231   : > { %9547 = vmatmul.mubr.msk.bf16.gmra.mrb[4].mxu1 %vm333_vm0, %v2271_v29 }
 0x232   : > { %9550 = vmatprep.mubr.msk.bf16.mxu1 %vm333_vm0, %v2272_v55  ;;  %9559 = vmatpush3.bf16.msra.mxu1 %v9996_v28  ;;  %v2742_v28 = vld [vmem:[#allocation2 + $0xf] sm:$0xff] }
 0x233   : > { %9560 = vmatprep.subr.bf16.mxu1 %v9997_v31  ;;  %v2754_v29 = vpack.c.bf16 %v2743_v50, %v2742_v28  ;;  %v2746_v55 = vld [vmem:[#allocation2 + $0x2f] sm:$0xff]  ;;  %v3236_v28 = vld [vmem:[#allocation2 + $0x5c] sm:$0xff] }
 0x234   : > { %v3235_v50 = vld [vmem:[#allocation2 + $0x54] sm:$0xff] }
 0x236   : > { %9561 = vmatpush3.bf16.msra.mxu1 %v9997_v31  ;;  %v2745_v31 = vld [vmem:[#allocation2 + $0x27] sm:$0xff] }
 0x237   : > { %9574 = vmatprep.subr.bf16.mxu1 %v9998_v56 }
 0x239   : > { %9551 = vmatmul.mubr.msk.bf16.gmra.mrb[8].mxu1 %vm333_vm0, %v2273_v37  ;;  %v2747_v37 = vld [vmem:[#allocation2 + $0x37] sm:$0xff] }
 0x23a   : > { %9562 = vmatprep.mubr.msk.bf16.mxu1 %vm333_vm0, %v2430_v60  ;;  %v2756_v60 = vpack.c.bf16 %v2747_v37, %v2746_v55  ;;  %v3238_v55 = vld [vmem:[#allocation2 + $0x6c] sm:$0xff]  ;;  %v10019_v37 = vld [vmem:[%s12427_s3 + $0xc0] sm:$0xff]  }
 0x241   : > { %9563 = vmatmul.mubr.msk.bf16.vlgmr.msra.gmra.mrb[0].mxu1 %vm333_vm0, %v2431_v1  ;;  %v2748_v1 = vld [vmem:[#allocation2 + $0x3f] sm:$0xff] }
 0x242   : > { %9575 = vmatpush3.bf16.msra.mxu1 %v9998_v56  ;;  %9566 = vmatprep.mubr.msk.bf16.mxu1 %vm333_vm0, %v2432_v4  ;;  %v2744_v56 = vld [vmem:[#allocation2 + $0x1f] sm:$0xff]  ;;  %v2757_v2 = vpack.c.bf16 %v2749_v63, %v2748_v1  ;;  %v10023_v63 = vld [vmem:[%s12427_s3 + $0xc8] sm:$0xff]  }
 0x243   : > { %9576 = vmatprep.subr.bf16.mxu1 %v9999_v3  ;;  %v2755_v58 = vpack.c.bf16 %v2745_v31, %v2744_v56  ;;  %v10009_v4 = vld [vmem:[%s12426_s2 + $0xd8] sm:$0xff]   ;;  %v10025_v1 = vld [vmem:[%s12427_s3 + $0x88] sm:$0xff]  }
 0x244   : > { %v3239_v31 = vld [vmem:[#allocation2 + $0x74] sm:$0xff] }
 0x245   : > { %v3245_v56 = vpack.c.bf16 %v3239_v31, %v3238_v55 }
 0x246   : > { %9577 = vmatpush3.bf16.msra.mxu1 %v9999_v3  ;;  %v2750_v3 = vld [vmem:[#allocation2 + $0x4f] sm:$0xff] }
 0x247   : > { %9578 = vmatprep.subr.bf16.mxu1 %v10000_v5 }
 0x249   : > { %9567 = vmatmul.mubr.msk.bf16.gmra.mrb[4].mxu1 %vm333_vm0, %v2433_v9  ;;  %v10011_v9 = vld [vmem:[%s12426_s2 + $0xe8] sm:$0xff]  }
 0x24a   : > { %9570 = vmatprep.mubr.msk.bf16.mxu1 %vm333_vm0, %v2434_v11  ;;  %9579 = vmatpush3.bf16.msra.mxu1 %v10000_v5  ;;  %v2758_v5 = vpack.c.bf16 %v2751_v0, %v2750_v3  ;;  %v10024_v0 = vld [vmem:[%s12427_s3 + $0x8] sm:$0xff]  }
 0x24b   : > { %9580 = vmatprep.subr.bf16.mxu1 %v10001_v10 }
 0x24e   : > { %9581 = vmatpush3.bf16.msra.mxu1 %v10001_v10  ;;  %v3066_v10 = vld [vmem:[#allocation2 + $0x1b] sm:$0xff] }
 0x24f   : > { %9594 = vmatprep.subr.bf16.mxu1 %v10002_v12  ;;  %v3078_v57 = vpack.c.bf16 %v3067_v22, %v3066_v10  ;;  %v10028_v22 = vld [vmem:[%s12427_s3 + $0x10] sm:$0xff]  }
 0x251   : > { %9571 = vmatmul.mubr.msk.bf16.gmra.mrb[8].mxu1 %vm333_vm0, %v2435_v16  ;;  %v3072_v16 = vld [vmem:[#allocation2 + $0x4b] sm:$0xff] }
 0x252   : > { %9582 = vmatprep.mubr.msk.bf16.mxu1 %vm333_vm0, %v2592_v18  ;;  %v3075_v18 = vld [vmem:[#allocation2 + $0x63] sm:$0xff]  ;;  %v3081_v20 = vpack.c.bf16 %v3073_v19, %v3072_v16  ;;  %v10033_v16 = vld [vmem:[%s12427_s3 + $0x98] sm:$0xff]  }
 0x259   : > { %9583 = vmatmul.mubr.msk.bf16.vlgmr.msra.gmra.mrb[0].mxu1 %vm333_vm0, %v2593_v25  ;;  %v3082_v25 = vpack.c.bf16 %v3075_v18, %v3074_v17 }
 0x25a   : > { %9595 = vmatpush3.bf16.msra.mxu1 %v10002_v12  ;;  %9586 = vmatprep.mubr.msk.bf16.mxu1 %vm333_vm0, %v2594_v30  ;;  %v3071_v12 = vld [vmem:[#allocation2 + $0x43] sm:$0xff]  ;;  %v3076_v30 = vld [vmem:[#allocation2 + $0x6b] sm:$0xff] }
 0x25b   : > { %9596 = vmatprep.subr.bf16.mxu1 %v10003_v27  ;;  %v3080_v14 = vpack.c.bf16 %v3071_v12, %v3070_v36  ;;  %v10032_v12 = vld [vmem:[%s12427_s3 + $0x18] sm:$0xff]  }
 0x25e   : > { %9597 = vmatpush3.bf16.msra.mxu1 %v10003_v27  ;;  %v3229_v27 = vld [vmem:[#allocation2 + $0x24] sm:$0xff] }
 0x25f   : > { %9598 = vmatprep.subr.bf16.mxu1 %v10004_v33  ;;  %v3240_v35 = vpack.c.bf16 %v3229_v27, %v3228_v34  ;;  %v10034_v34 = vld [vmem:[%s12427_s3 + $0x60] sm:$0xff]  }
 0x261   : > { %9587 = vmatmul.mubr.msk.bf16.gmra.mrb[4].mxu1 %vm333_vm0, %v2595_v40  ;;  %v3230_v40 = vld [vmem:[#allocation2 + $0x2c] sm:$0xff] }
 0x262   : > { %9590 = vmatprep.mubr.msk.bf16.mxu1 %vm333_vm0, %v2596_v42  ;;  %9599 = vmatpush3.bf16.msra.mxu1 %v10004_v33  ;;  %v3083_v33 = vpack.c.bf16 %v3077_v26, %v3076_v30  ;;  %v3233_v42 = vld [vmem:[#allocation2 + $0x44] sm:$0xff] }
 0x263   : > { %9600 = vmatprep.subr.bf16.mxu1 %v10005_v41 }
 0x266   : > { %9601 = vmatpush3.bf16.msra.mxu1 %v10005_v41  ;;  %v3241_v41 = vpack.c.bf16 %v3231_v38, %v3230_v40 }
 0x267   : > { %9614 = vmatprep.subr.bf16.mxu1 %v10006_v46 }
 0x269   : > { %9591 = vmatmul.mubr.msk.bf16.gmra.mrb[8].mxu1 %vm333_vm0, %v2597_v54  ;;  %v3243_v54 = vpack.c.bf16 %v3235_v50, %v3234_v49 }
 0x26a   : > { %9602 = vmatprep.mubr.msk.bf16.mxu1 %vm333_vm0, %v2754_v29  ;;  %v3244_v29 = vpack.c.bf16 %v3237_v52, %v3236_v28 }
 0x271   : > { %9603 = vmatmul.mubr.msk.bf16.vlgmr.msra.gmra.mrb[0].mxu1 %vm333_vm0, %v2755_v58  ;;  %v10018_v58 = vld [vmem:[%s12427_s3 + $0x40] sm:$0xff]  }
 0x272   : > { %9615 = vmatpush3.bf16.msra.mxu1 %v10006_v46  ;;  %9606 = vmatprep.mubr.msk.bf16.mxu1 %vm333_vm0, %v2756_v60  ;;  %v3242_v46 = vpack.c.bf16 %v3233_v42, %v3232_v39  ;;  %v10021_v60 = vld [vmem:[%s12427_s3 + $0x80] sm:$0xff]  }
 0x273   : > { %9616 = vmatprep.subr.bf16.mxu1 %v10007_v59  ;;  %8881 = vmatprep.subr.bf16.mxu0 %v10018_v58 }
 0x276   : > { %9617 = vmatpush3.bf16.msra.mxu1 %v10007_v59  ;;  %v10020_v59 = vld [vmem:[%s12427_s3] sm:$0xff]  }
 0x277   : > { %9618 = vmatprep.subr.bf16.mxu1 %v10008_v62  ;;  %8882 = vmatpush3.bf16.msra.mxu0 %v10020_v59 }
 0x279   : > { %9607 = vmatmul.mubr.msk.bf16.gmra.mrb[4].mxu1 %vm333_vm0, %v2757_v2 }
 0x27a   : > { %9610 = vmatprep.mubr.msk.bf16.mxu1 %vm333_vm0, %v2758_v5  ;;  %9619 = vmatpush3.bf16.msra.mxu1 %v10008_v62  ;;  %v10022_v62 = vld [vmem:[%s12427_s3 + $0x48] sm:$0xff]  }
 0x27b   : > { %9620 = vmatprep.subr.bf16.mxu1 %v10009_v4  ;;  %8883 = vmatprep.subr.bf16.mxu0 %v10022_v62 }
 0x27c   : > { %8884 = vmatpush3.bf16.msra.mxu0 %v10024_v0 }
 0x27e   : > { %9621 = vmatpush3.bf16.msra.mxu1 %v10009_v4 }
 0x27f   : > { %9634 = vmatprep.subr.bf16.mxu1 %v10010_v6 }
 0x281   : > { %9611 = vmatmul.mubr.msk.bf16.gmra.mrb[8].mxu1 %vm333_vm0, %v2759_v8  ;;  %v3454_v8 = vunpack.c.l.s4 %v10398_v7  ;;  %v10038_v7 = vld [vmem:[%s12427_s3 + $0x68] sm:$0xff]  }
 0x282   : > { %9622 = vmatprep.mubr.msk.bf16.mxu1 %vm333_vm0, %v2916_v53  ;;  %v2915_v53 = vld [vmem:[#allocation2 + $0x72] sm:$0xff] }
 0x289   : > { %9623 = vmatmul.mubr.msk.bf16.vlgmr.msra.gmra.mrb[0].mxu1 %vm333_vm0, %v2917_v48  ;;  %v10014_v48 = vld [vmem:[%s12426_s2 + $0x100] sm:$0xff]  }
 0x28a   : > { %9635 = vmatpush3.bf16.msra.mxu1 %v10010_v6  ;;  %9626 = vmatprep.mubr.msk.bf16.mxu1 %vm333_vm0, %v2918_v24  ;;  %v2921_v24 = vpack.c.bf16 %v2915_v53, %v2914_v23  ;;  %v10027_v53 = vld [vmem:[%s12427_s3 + $0xd0] sm:$0xff]  }
 0x28b   : > { %9636 = vmatprep.subr.bf16.mxu1 %v10011_v9 }
 0x28e   : > { %9637 = vmatpush3.bf16.msra.mxu1 %v10011_v9 }
 0x28f   : > { %9638 = vmatprep.subr.bf16.mxu1 %v10012_v47 }
 0x291   : > { %9627 = vmatmul.mubr.msk.bf16.gmra.mrb[4].mxu1 %vm333_vm0, %v2919_v61  ;;  %v3068_v61 = vld [vmem:[#allocation2 + $0x2b] sm:$0xff] }
 0x292   : > { %9630 = vmatprep.mubr.msk.bf16.mxu1 %vm333_vm0, %v2920_v45  ;;  %9639 = vmatpush3.bf16.msra.mxu1 %v10012_v47  ;;  %v3079_v11 = vpack.c.bf16 %v3069_v32, %v3068_v61  ;;  %v11057_v32 = vshrl.u32 %v3439_v43, 7  ;;  %v10030_v61 = vld [vmem:[%s12427_s3 + $0x58] sm:$0xff]  }
 0x293   : > { %9640 = vmatprep.subr.bf16.mxu1 %v10013_v44 }
 0x296   : > { %9641 = vmatpush3.bf16.msra.mxu1 %v10013_v44 }
 0x297   : > { %9654 = vmatprep.subr.bf16.mxu1 %v10014_v48 }
 0x299   : > { %9631 = vmatmul.mubr.msk.bf16.gmra.mrb[8].mxu1 %vm333_vm0, %v2921_v24  ;;  %v10029_v24 = vld [vmem:[%s12427_s3 + $0x90] sm:$0xff]  }
 0x29a   : > { %9642 = vmatprep.mubr.msk.bf16.mxu1 %vm333_vm0, %v3078_v57  ;;  %v3455_v57 = vunpack.c.0.s8 %v3454_v8 }
 0x29c   : > { %v11078_v19 = vsub.s32 %v3455_v57, %v11057_v32 }
 0x2a1   : > { %9643 = vmatmul.mubr.msk.bf16.vlgmr.msra.gmra.mrb[0].mxu1 %vm333_vm0, %v3079_v11  ;;  %v10031_v11 = vld [vmem:[%s12427_s3 + $0xd8] sm:$0xff]  }
 0x2a2   : > { %9655 = vmatpush3.bf16.msra.mxu1 %v10014_v48  ;;  %9646 = vmatprep.mubr.msk.bf16.mxu1 %vm333_vm0, %v3080_v14  ;;  %v10026_v48 = vld [vmem:[%s12427_s3 + $0x50] sm:$0xff]  }
 0x2a3   : > { %9656 = vmatprep.subr.bf16.mxu1 %v10015_v13  ;;  %8885 = vmatprep.subr.bf16.mxu0 %v10026_v48 }
 0x2a4   : > { %8886 = vmatpush3.bf16.msra.mxu0 %v10028_v22  ;;  %v10042_v22 = vld [vmem:[%s12427_s3 + $0x70] sm:$0xff]  }
 0x2a5   : > { %8887 = vmatprep.subr.bf16.mxu0 %v10030_v61  ;;  %v10043_v61 = vld [vmem:[%s12427_s3 + $0xf0] sm:$0xff]  }
 0x2a6   : > { %9657 = vmatpush3.bf16.msra.mxu1 %v10015_v13 }
 0x2a7   : > { %9658 = vmatprep.subr.bf16.mxu1 %v10016_v15 }
 0x2a8   : > { %8888 = vmatpush3.bf16.msra.mxu0 %v10032_v12 }
 0x2a9   : > { %9647 = vmatmul.mubr.msk.bf16.gmra.mrb[4].mxu1 %vm333_vm0, %v3081_v20  ;;  %8889 = vmatprep.subr.bf16.mxu0 %v10034_v34 }
 0x2aa   : > { %9650 = vmatprep.mubr.msk.bf16.mxu1 %vm333_vm0, %v3082_v25  ;;  %9659 = vmatpush3.bf16.msra.mxu1 %v10016_v15 }
 0x2ab   : > { %9660 = vmatprep.subr.bf16.mxu1 %v10017_v21 }
 0x2ae   : > { %9661 = vmatpush3.bf16.msra.mxu1 %v10017_v21 }
 0x2af   : > { %8903 = vmatprep.subr.bf16.mxu1 %v10019_v37 }
 0x2b1   : > { %9651 = vmatmul.mubr.msk.bf16.gmra.mrb[8].mxu1 %vm333_vm0, %v3083_v33 }
 0x2b2   : > { %9662 = vmatprep.mubr.msk.bf16.mxu1 %vm333_vm0, %v3240_v35 }
 0x2b9   : > { %9663 = vmatmul.mubr.msk.bf16.vlgmr.msra.gmra.mrb[0].mxu1 %vm333_vm0, %v3241_v41 }
 0x2ba   : > { %9666 = vmatprep.mubr.msk.bf16.mxu1 %vm333_vm0, %v3242_v46  ;;  %8904 = vmatpush3.bf16.msra.mxu1 %v10021_v60 }
 0x2bb   : > { %8905 = vmatprep.subr.bf16.mxu1 %v10023_v63 }
 0x2be   : > { %8906 = vmatpush3.bf16.msra.mxu1 %v10025_v1 }
 0x2bf   : > { %8907 = vmatprep.subr.bf16.mxu1 %v10027_v53  ;;  %v10041_v53 = vld [vmem:[%s12427_s3 + $0xa8] sm:$0xff]  }
 0x2c1   : > { %9667 = vmatmul.mubr.msk.bf16.gmra.mrb[4].mxu1 %vm333_vm0, %v3243_v54 }
 0x2c2   : > { %9670 = vmatprep.mubr.msk.bf16.mxu1 %vm333_vm0, %v3244_v29  ;;  %8908 = vmatpush3.bf16.msra.mxu1 %v10029_v24  ;;  %v10035_v29 = vld [vmem:[%s12427_s3 + $0xe0] sm:$0xff]  }
 0x2c3   : > { %8909 = vmatprep.subr.bf16.mxu1 %v10031_v11  ;;  %v10044_v11 = vld [vmem:[%s12427_s3 + $0x30] sm:$0xff]  }
 0x2c6   : > { %8910 = vmatpush3.bf16.msra.mxu1 %v10033_v16 }
 0x2c7   : > { %8911 = vmatprep.subr.bf16.mxu1 %v10035_v29 }
 0x2c9   : > { %9671 = vmatmul.mubr.msk.bf16.gmra.mrb[8].mxu1 %vm333_vm0, %v3245_v56 }
 0x38c   : > { %v9664_v2 = vpop.f32.mrb[0].mxu1 }
 0x38d   : > { %vm3392_vm1 = vcmp.ge.f32.partialorder %v9664_v2, 0.0  ;;  %v3404_v3 = vmul.f32 0.01, %v9664_v2  ;;  %v3331_v4 = vpop.f32.mrb[1].mxu1 }
 0x38e   : > { %vm3390_vm2 = vcmp.ge.f32.partialorder %v3331_v4, 0.0  ;;  %v3402_v5 = vmul.f32 0.01, %v3331_v4  ;;  %v9665_v6 = vpop.f32.mrb[2].mxu1 }
 0x38f   : > { %v3416_v9 = vsel %vm3392_vm1, %v9664_v2, %v3404_v3  ;;  %vm3393_vm3 = vcmp.ge.f32.partialorder %v9665_v6, 0.0  ;;  %v3405_v47 = vmul.f32 0.01, %v9665_v6  ;;  %v3334_v51 = vpop.f32.mrb[3].mxu1  ;;  %v10036_v2 = vld [vmem:[%s12427_s3 + $0x20] sm:$0xff]   ;;  %vm11299_vm1 = vmand %vm3463_vm15, %vm3464_vm4 }
 0x390   : > { %3428 = vst.msk [vmem:[#allocation3 + $0x10] sm:$0xff] %vm333_vm0, %v3416_v9  ;;  %v3414_v44 = vsel %vm3390_vm2, %v3331_v4, %v3402_v5  ;;  %vm3391_vm5 = vcmp.ge.f32.partialorder %v3334_v51, 0.0  ;;  %v3403_v45 = vmul.f32 0.01, %v3334_v51  ;;  %v10037_v3 = vld [vmem:[%s12427_s3 + $0xa0] sm:$0xff]   ;;  %8890 = vmatpush3.bf16.msra.mxu0 %v10036_v2  ;;  %vm10401_vm2 = vmmov 0  }
 0x391   : > { %3426 = vst.msk [vmem:[#allocation3] sm:$0xff] %vm333_vm0, %v3414_v44  ;;  %v3417_v23 = vsel %vm3393_vm3, %v9665_v6, %v3405_v47  ;;  %v10039_v47 = vld [vmem:[%s12427_s3 + $0xe8] sm:$0xff]   ;;  %8912 = vmatpush3.bf16.msra.mxu1 %v10037_v3  ;;  %8891 = vmatprep.subr.bf16.mxu0 %v10038_v7 }
 0x392   : > { %3429 = vst.msk [vmem:[#allocation3 + $0x18] sm:$0xff] %vm333_vm0, %v3417_v23  ;;  %v3415_v10 = vsel %vm3391_vm5, %v3334_v51, %v3403_v45  ;;  %v10040_v51 = vld [vmem:[%s12427_s3 + $0x28] sm:$0xff]   ;;  %8913 = vmatprep.subr.bf16.mxu1 %v10039_v47 }
 0x393   : > { %3427 = vst.msk [vmem:[#allocation3 + $0x8] sm:$0xff] %vm333_vm0, %v3415_v10 }
 0x394   : > { %v9668_v36 = vpop.f32.mrb[4].mxu1  ;;  %8892 = vmatpush3.bf16.msra.mxu0 %v10040_v51 }
 0x395   : > { %vm3396_vm6 = vcmp.ge.f32.partialorder %v9668_v36, 0.0  ;;  %v3408_v13 = vmul.f32 0.01, %v9668_v36  ;;  %v3347_v14 = vpop.f32.mrb[5].mxu1  ;;  %8914 = vmatpush3.bf16.msra.mxu1 %v10041_v53  ;;  %8893 = vmatprep.subr.bf16.mxu0 %v10042_v22 }
 0x396   : > { %vm3394_vm8 = vcmp.ge.f32.partialorder %v3347_v14, 0.0  ;;  %v3406_v17 = vmul.f32 0.01, %v3347_v14  ;;  %v9669_v18 = vpop.f32.mrb[6].mxu1  ;;  %8915 = vmatprep.subr.bf16.mxu1 %v10043_v61 }
 0x397   : > { %v3420_v20 = vsel %vm3396_vm6, %v9668_v36, %v3408_v13  ;;  %vm3397_vm9 = vcmp.ge.f32.partialorder %v9669_v18, 0.0  ;;  %v3409_v21 = vmul.f32 0.01, %v9669_v18  ;;  %v3350_v25 = vpop.f32.mrb[7].mxu1  ;;  %v3599_v26 = vld [vmem:[#allocation3 + $0x10] sm:$0x1] }
 0x398   : > { %3432 = vst.msk [vmem:[#allocation3 + $0x30] sm:$0xff] %vm333_vm0, %v3420_v20  ;;  %v3418_v27 = vsel %vm3394_vm8, %v3347_v14, %v3406_v17  ;;  %vm3395_vm10 = vcmp.ge.f32.partialorder %v3350_v25, 0.0  ;;  %v3407_v30 = vmul.f32 0.01, %v3350_v25  ;;  %v3489_v33 = vld [vmem:[#allocation3 + $0x4] sm:$0x1]  ;;  %8894 = vmatpush3.bf16.msra.mxu0 %v10044_v11 }
 0x399   : > { %3600 = vst.msk [vmem:[#allocation4 + $0x7] sm:$0x1] %vm11070_vm7, %v3599_v26  ;;  %v3421_v35 = vsel %vm3397_vm9, %v9669_v18, %v3409_v21  ;;  %v8343_v38 = vld.sshfl [vmem:[#allocation3 + $0x5] sm:$0x1 pattern:$0x75316420] }
 0x39a   : > { %3430 = vst.msk [vmem:[#allocation3 + $0x20] sm:$0xff] %vm333_vm0, %v3418_v27  ;;  %v3438_v39 = vld [vmem:[#allocation3] sm:$0x1]  ;;  %3433 = vst.msk [vmem:[#allocation3 + $0x38] sm:$0xff] %vm333_vm0, %v3421_v35  ;;  %v3419_v40 = vsel %vm3395_vm10, %v3350_v25, %v3407_v30  ;;  %v3506_v41 = vrot.slane %v8343_v38, %v11078_v19  ;;  %v3511_v46 = vld [vmem:[#allocation3 + $0x6] sm:$0x1] }
 0x39b   : > { %3490 = vst.msk [vmem:[#allocation4 + $0x2] sm:$0x1] %vm11070_vm7, %v3489_v33  ;;  %v8341_v42 = vld.sshfl [vmem:[#allocation3 + $0x1] sm:$0x1 pattern:$0x75316420] }
 0x39c   : > { %3443 = vst.msk [vmem:[#allocation4] sm:$0x1] %vm11070_vm7, %v3438_v39  ;;  %v3459_v49 = vrot.slane %v8341_v42, %v11078_v19  ;;  %v8344_v50 = vld.sshfl [vmem:[#allocation3 + $0x7] sm:$0x1 pattern:$0x75316420]  ;;  %3507 = vrot.lane.b32.xlu1 %v3506_v41, %s10399_s25 }
 0x39d   : > { %3431 = vst.msk [vmem:[#allocation3 + $0x28] sm:$0xff] %vm333_vm0, %v3419_v40  ;;  %v3467_v52 = vld [vmem:[#allocation3 + $0x2] sm:$0x1]  ;;  %v9672_v54 = vpop.f32.mrb[8].mxu1  ;;  %v3555_v56 = vld [vmem:[#allocation3 + $0xa] sm:$0x1]  ;;  %v3528_v59 = vrot.slane %v8344_v50, %v11078_v19 }
 0x39e   : > { %3512 = vst.msk [vmem:[#allocation4 + $0x3] sm:$0x1] %vm11070_vm7, %v3511_v46  ;;  %v8342_v28 = vld.sshfl [vmem:[#allocation3 + $0x3] sm:$0x1 pattern:$0x75316420]  ;;  %3460 = vrot.lane.b32.xlu0 %v3459_v49, %s10399_s25 }
 0x39f   : > { %3468 = vst.msk [vmem:[#allocation4 + $0x1] sm:$0x1] %vm11070_vm7, %v3467_v52  ;;  %vm3400_vm11 = vcmp.ge.f32.partialorder %v9672_v54, 0.0  ;;  %v3412_v31 = vmul.f32 0.01, %v9672_v54  ;;  %v3363_v55 = vpop.f32.mrb[9].mxu1  ;;  %v3484_v0 = vrot.slane %v8342_v28, %v11078_v19 }
 0x3a0   : > { %vm3398_vm12 = vcmp.ge.f32.partialorder %v3363_v55, 0.0  ;;  %v3410_v58 = vmul.f32 0.01, %v3363_v55  ;;  %v9673_v37 = vpop.f32.mrb[10].mxu1  ;;  %3556 = vst.msk [vmem:[#allocation4 + $0x5] sm:$0x1] %vm11070_vm7, %v3555_v56  ;;  %3529 = vrot.lane.b32.xlu1 %v3528_v59, %s10399_s25 }
 0x3a1   : > { %v3533_v60 = vld [vmem:[#allocation3 + $0x8] sm:$0x1]  ;;  %v3424_v62 = vsel %vm3400_vm11, %v9672_v54, %v3412_v31  ;;  %vm3401_vm13 = vcmp.ge.f32.partialorder %v9673_v37, 0.0  ;;  %v3413_v63 = vmul.f32 0.01, %v9673_v37  ;;  %v3366_v1 = vpop.f32.mrb[11].mxu1 }
 0x3a2   : > { %3534 = vst.msk [vmem:[#allocation4 + $0x4] sm:$0x1] %vm11070_vm7, %v3533_v60  ;;  %v3422_v4 = vsel %vm3398_vm12, %v3363_v55, %v3410_v58  ;;  %vm3399_vm14 = vcmp.ge.f32.partialorder %v3366_v1, 0.0  ;;  %v3411_v5 = vmul.f32 0.01, %v3366_v1  ;;  %3485 = vrot.lane.b32.xlu0 %v3484_v0, %s10399_s25  ;;  %v10045_v13 = vld [vmem:[%s12427_s3 + $0xb0] sm:$0xff]  }
 0x3a3   : > { %3436 = vst.msk [vmem:[#allocation3 + $0x50] sm:$0xff] %vm333_vm0, %v3424_v62  ;;  %v3577_v6 = vld [vmem:[#allocation3 + $0xe] sm:$0x1]  ;;  %3434 = vst.msk [vmem:[#allocation3 + $0x40] sm:$0xff] %vm333_vm0, %v3422_v4  ;;  %v3425_v8 = vsel %vm3401_vm13, %v9673_v37, %v3413_v63  ;;  %v3643_v10 = vld [vmem:[#allocation3 + $0x14] sm:$0x1]  ;;  %8916 = vmatpush3.bf16.msra.mxu1 %v10045_v13 }
 0x3a4   : > { %v8346_v9 = vld.sshfl [vmem:[#allocation3 + $0xd] sm:$0x1 pattern:$0x75316420]  ;;  %3578 = vst.msk [vmem:[#allocation4 + $0x6] sm:$0x1] %vm11070_vm7, %v3577_v6  ;;  %v3423_v44 = vsel %vm3399_vm14, %v3366_v1, %v3411_v5 }
 0x3a5   : > { %3437 = vst.msk [vmem:[#allocation3 + $0x58] sm:$0xff] %vm333_vm0, %v3425_v8  ;;  %v3572_v45 = vrot.slane %v8346_v9, %v11078_v19  ;;  %v8345_v48 = vld.sshfl [vmem:[#allocation3 + $0x9] sm:$0x1 pattern:$0x75316420]  ;;  %3435 = vst.msk [vmem:[#allocation3 + $0x48] sm:$0xff] %vm333_vm0, %v3423_v44 }
 0x3a6   : > { %v3550_v23 = vrot.slane %v8345_v48, %v11078_v19  ;;  %v8348_v24 = vld.sshfl [vmem:[#allocation3 + $0x11] sm:$0x1 pattern:$0x75316420]  ;;  %3644 = vst.msk [vmem:[#allocation4 + $0x9] sm:$0x1] %vm11070_vm7, %v3643_v10 }
 0x3a7   : > { %3573 = vrot.lane.b32.xlu1 %v3572_v45, %s10399_s25  ;;  %v8347_v57 = vld.sshfl [vmem:[#allocation3 + $0xf] sm:$0x1 pattern:$0x75316420]  ;;  %v3621_v36 = vld [vmem:[#allocation3 + $0x12] sm:$0x1]  ;;  %v3616_v12 = vrot.slane %v8348_v24, %v11078_v19 }
 0x3a8   : > { %3551 = vrot.lane.b32.xlu0 %v3550_v23, %s10399_s25  ;;  %3622 = vst.msk [vmem:[#allocation4 + $0x8] sm:$0x1] %vm11070_vm7, %v3621_v36  ;;  %v10046_v14 = vld [vmem:[%s12427_s3 + $0x78] sm:$0xff]   ;;  %v3594_v16 = vrot.slane %v8347_v57, %v11078_v19  ;;  %v3665_v21 = vld [vmem:[#allocation3 + $0x16] sm:$0x1]  ;;  %v10050_v42 = vld [vmem:[%s12427_s3 + $0x140] sm:$0xff]  }
 0x3a9   : > { %v8350_v17 = vld.sshfl [vmem:[#allocation3 + $0x15] sm:$0x1 pattern:$0x75316420]  ;;  %v3687_v18 = vld [vmem:[#allocation3 + $0x1a] sm:$0x1]  ;;  %8895 = vmatprep.subr.bf16.mxu0 %v10046_v14 }
 0x3aa   : > { %v8349_v20 = vld.sshfl [vmem:[#allocation3 + $0x13] sm:$0x1 pattern:$0x75316420]  ;;  %3688 = vst.msk [vmem:[#allocation4 + $0xb] sm:$0x1] %vm11070_vm7, %v3687_v18  ;;  %v3660_v26 = vrot.slane %v8350_v17, %v11078_v19 }
 0x3ab   : > { %3617 = vrot.lane.b32.xlu1 %v3616_v12, %s10399_s25  ;;  %3666 = vst.msk [vmem:[#allocation4 + $0xa] sm:$0x1] %vm11070_vm7, %v3665_v21  ;;  %v10047_v27 = vld [vmem:[%s12427_s3 + $0xf8] sm:$0xff]   ;;  %v3638_v33 = vrot.slane %v8349_v20, %v11078_v19  ;;  %v10051_v50 = vld [vmem:[%s12427_s3 + $0x1c0] sm:$0xff]   ;;  %v3907_v60 = vld [vmem:[#allocation3 + $0x30] sm:$0x1] }
 0x3ac   : > { %v4281_v25 = vld [vmem:[#allocation3 + $0x58] sm:$0x1]  ;;  %3595 = vrot.lane.b32.xlu0 %v3594_v16, %s10399_s25  ;;  %v8352_v34 = vld.sshfl [vmem:[#allocation3 + $0x1b] sm:$0x1 pattern:$0x75316420]  ;;  %8917 = vmatprep.subr.bf16.mxu1 %v10047_v27 }
 0x3ad   : > { %4282 = vst.msk [vmem:[#allocation4 + $0x26] sm:$0x1] %vm11070_vm7, %v4281_v25  ;;  %v10048_v30 = vld [vmem:[%s12427_s3 + $0x38] sm:$0xff]   ;;  %v3704_v41 = vrot.slane %v8352_v34, %v11078_v19  ;;  %v3775_v31 = vld [vmem:[#allocation3 + $0x22] sm:$0x1] }
 0x3ae   : > { %v10049_v35 = vld [vmem:[%s12427_s3 + $0xb8] sm:$0xff]   ;;  %v8351_v38 = vld.sshfl [vmem:[#allocation3 + $0x17] sm:$0x1 pattern:$0x75316420]  ;;  %8896 = vmatpush3.bf16.msra.mxu0 %v10048_v30 }
 0x3af   : > { %3661 = vrot.lane.b32.xlu1 %v3660_v26, %s10399_s25  ;;  %v3731_v39 = vld [vmem:[#allocation3 + $0x1e] sm:$0x1]  ;;  %v3709_v40 = vld [vmem:[#allocation3 + $0x1c] sm:$0x1]  ;;  %8918 = vmatpush3.bf16.msra.mxu1 %v10049_v35  ;;  %v3682_v46 = vrot.slane %v8351_v38, %v11078_v19  ;;  %3776 = vst.msk [vmem:[#allocation4 + $0xf] sm:$0x1] %vm11070_vm7, %v3775_v31 }
 0x3b0   : > { %3639 = vrot.lane.b32.xlu0 %v3638_v33, %s10399_s25  ;;  %3732 = vst.msk [vmem:[#allocation4 + $0xd] sm:$0x1] %vm11070_vm7, %v3731_v39  ;;  %3710 = vst.msk [vmem:[#allocation4 + $0xc] sm:$0x1] %vm11070_vm7, %v3709_v40  ;;  %8925 = vmatprep.subr.bf16.mxu0 %v10050_v42  ;;  %v3753_v56 = vld [vmem:[#allocation3 + $0x20] sm:$0x1] }
 0x3b1   : > { %v8354_v49 = vld.sshfl [vmem:[#allocation3 + $0x1f] sm:$0x1 pattern:$0x75316420]  ;;  %8947 = vmatprep.subr.bf16.mxu1 %v10051_v50  ;;  %3754 = vst.msk [vmem:[#allocation4 + $0xe] sm:$0x1] %vm11070_vm7, %v3753_v56 }
 0x3b2   : > { %v8353_v52 = vld.sshfl [vmem:[#allocation3 + $0x1d] sm:$0x1 pattern:$0x75316420]  ;;  %v3748_v54 = vrot.slane %v8354_v49, %v11078_v19  ;;  %3908 = vst.msk [vmem:[#allocation4 + $0x15] sm:$0x1] %vm11070_vm7, %v3907_v60 }
 0x3b3   : > { %3705 = vrot.lane.b32.xlu1 %v3704_v41, %s10399_s25  ;;  %v3726_v28 = vrot.slane %v8353_v52, %v11078_v19  ;;  %v8356_v29 = vld.sshfl [vmem:[#allocation3 + $0x23] sm:$0x1 pattern:$0x75316420]  ;;  %v3797_v63 = vld [vmem:[#allocation3 + $0x24] sm:$0x1] }
 0x3b4   : > { %3683 = vrot.lane.b32.xlu0 %v3682_v46, %s10399_s25  ;;  %v8355_v55 = vld.sshfl [vmem:[#allocation3 + $0x21] sm:$0x1 pattern:$0x75316420]  ;;  %v3792_v58 = vrot.slane %v8356_v29, %v11078_v19  ;;  %3798 = vst.msk [vmem:[#allocation4 + $0x10] sm:$0x1] %vm11070_vm7, %v3797_v63 }
 0x3b5   : > { %v3770_v37 = vrot.slane %v8355_v55, %v11078_v19  ;;  %v8362_v59 = vld.sshfl [vmem:[#allocation3 + $0x31] sm:$0x1 pattern:$0x75316420]  ;;  %v3841_v3 = vld [vmem:[#allocation3 + $0x2a] sm:$0x1] }
 0x3b6   : > { %v8357_v62 = vld.sshfl [vmem:[#allocation3 + $0x27] sm:$0x1 pattern:$0x75316420]  ;;  %v3924_v0 = vrot.slane %v8362_v59, %v11078_v19  ;;  %3842 = vst.msk [vmem:[#allocation4 + $0x12] sm:$0x1] %vm11070_vm7, %v3841_v3 }
 0x3b7   : > { %3749 = vrot.lane.b32.xlu1 %v3748_v54, %s10399_s25  ;;  %v3814_v1 = vrot.slane %v8357_v62, %v11078_v19  ;;  %v8358_v2 = vld.sshfl [vmem:[#allocation3 + $0x29] sm:$0x1 pattern:$0x75316420]  ;;  %v3819_v5 = vld [vmem:[#allocation3 + $0x28] sm:$0x1] }
 0x3b8   : > { %3727 = vrot.lane.b32.xlu0 %v3726_v28, %s10399_s25  ;;  %v8359_v4 = vld.sshfl [vmem:[#allocation3 + $0x2b] sm:$0x1 pattern:$0x75316420]  ;;  %3820 = vst.msk [vmem:[#allocation4 + $0x11] sm:$0x1] %vm11070_vm7, %v3819_v5  ;;  %v3836_v6 = vrot.slane %v8358_v2, %v11078_v19 }
 0x3b9   : > { %v3858_v7 = vrot.slane %v8359_v4, %v11078_v19  ;;  %v8360_v8 = vld.sshfl [vmem:[#allocation3 + $0x2d] sm:$0x1 pattern:$0x75316420]  ;;  %v3885_v9 = vld [vmem:[#allocation3 + $0x2e] sm:$0x1] }
 0x3ba   : > { %v8361_v47 = vld.sshfl [vmem:[#allocation3 + $0x2f] sm:$0x1 pattern:$0x75316420]  ;;  %3886 = vst.msk [vmem:[#allocation4 + $0x14] sm:$0x1] %vm11070_vm7, %v3885_v9  ;;  %v3880_v44 = vrot.slane %v8360_v8, %v11078_v19 }
 0x3bb   : > { %3793 = vrot.lane.b32.xlu1 %v3792_v58, %s10399_s25  ;;  %v3863_v51 = vld [vmem:[#allocation3 + $0x2c] sm:$0x1]  ;;  %v8364_v45 = vld.sshfl [vmem:[#allocation3 + $0x37] sm:$0x1 pattern:$0x75316420]  ;;  %v3902_v48 = vrot.slane %v8361_v47, %v11078_v19 }
 0x3bc   : > { %3771 = vrot.lane.b32.xlu0 %v3770_v37, %s10399_s25  ;;  %3864 = vst.msk [vmem:[#allocation4 + $0x13] sm:$0x1] %vm11070_vm7, %v3863_v51  ;;  %v3929_v53 = vld [vmem:[#allocation3 + $0x34] sm:$0x1]  ;;  %v3951_v22 = vld [vmem:[#allocation3 + $0x36] sm:$0x1]  ;;  %v3968_v57 = vrot.slane %v8364_v45, %v11078_v19 }
 0x3bd   : > { %v8363_v23 = vld.sshfl [vmem:[#allocation3 + $0x35] sm:$0x1 pattern:$0x75316420]  ;;  %3930 = vst.msk [vmem:[#allocation4 + $0x16] sm:$0x1] %vm11070_vm7, %v3929_v53 }
 0x3be   : > { %3952 = vst.msk [vmem:[#allocation4 + $0x17] sm:$0x1] %vm11070_vm7, %v3951_v22  ;;  %v3973_v24 = vld [vmem:[#allocation3 + $0x38] sm:$0x1]  ;;  %v3995_v10 = vld [vmem:[#allocation3 + $0x3a] sm:$0x1]  ;;  %v3946_v61 = vrot.slane %v8363_v23, %v11078_v19 }
 0x3bf   : > { %3925 = vrot.lane.b32.xlu1 %v3924_v0, %s10399_s25  ;;  %3974 = vst.msk [vmem:[#allocation4 + $0x18] sm:$0x1] %vm11070_vm7, %v3973_v24  ;;  %3996 = vst.msk [vmem:[#allocation4 + $0x19] sm:$0x1] %vm11070_vm7, %v3995_v10  ;;  %v4017_v36 = vld [vmem:[#allocation3 + $0x3c] sm:$0x1] }
 0x3c0   : > { %3815 = vrot.lane.b32.xlu0 %v3814_v1, %s10399_s25  ;;  %v8366_v11 = vld.sshfl [vmem:[#allocation3 + $0x3b] sm:$0x1 pattern:$0x75316420]  ;;  %4018 = vst.msk [vmem:[#allocation4 + $0x1a] sm:$0x1] %vm11070_vm7, %v4017_v36 }
 0x3c1   : > { %v4039_v12 = vld [vmem:[#allocation3 + $0x3e] sm:$0x1]  ;;  %v8365_v13 = vld.sshfl [vmem:[#allocation3 + $0x39] sm:$0x1 pattern:$0x75316420]  ;;  %v4012_v17 = vrot.slane %v8366_v11, %v11078_v19 }
 0x3c2   : > { %4040 = vst.msk [vmem:[#allocation4 + $0x1b] sm:$0x1] %vm11070_vm7, %v4039_v12  ;;  %v4061_v14 = vld [vmem:[#allocation3 + $0x42] sm:$0x1]  ;;  %v4083_v16 = vld [vmem:[#allocation3 + $0x44] sm:$0x1]  ;;  %v3990_v21 = vrot.slane %v8365_v13, %v11078_v19 }
 0x3c3   : > { %3837 = vrot.lane.b32.xlu1 %v3836_v6, %s10399_s25  ;;  %4062 = vst.msk [vmem:[#allocation4 + $0x1c] sm:$0x1] %vm11070_vm7, %v4061_v14  ;;  %v8368_v18 = vld.sshfl [vmem:[#allocation3 + $0x41] sm:$0x1 pattern:$0x75316420] }
 0x3c4   : > { %3859 = vrot.lane.b32.xlu0 %v3858_v7, %s10399_s25  ;;  %4084 = vst.msk [vmem:[#allocation4 + $0x1d] sm:$0x1] %vm11070_vm7, %v4083_v16  ;;  %v4105_v20 = vld [vmem:[#allocation3 + $0x46] sm:$0x1]  ;;  %v4127_v25 = vld [vmem:[#allocation3 + $0x48] sm:$0x1]  ;;  %v4056_v38 = vrot.slane %v8368_v18, %v11078_v19 }
 0x3c5   : > { %4106 = vst.msk [vmem:[#allocation4 + $0x1e] sm:$0x1] %vm11070_vm7, %v4105_v20  ;;  %v4193_v26 = vld [vmem:[#allocation3 + $0x50] sm:$0x1]  ;;  %v4215_v27 = vld [vmem:[#allocation3 + $0x52] sm:$0x1] }
 0x3c6   : > { %v8367_v30 = vld.sshfl [vmem:[#allocation3 + $0x3d] sm:$0x1 pattern:$0x75316420]  ;;  %4128 = vst.msk [vmem:[#allocation4 + $0x1f] sm:$0x1] %vm11070_vm7, %v4127_v25 }
 0x3c7   : > { %3881 = vrot.lane.b32.xlu1 %v3880_v44, %s10399_s25  ;;  %4194 = vst.msk [vmem:[#allocation4 + $0x22] sm:$0x1] %vm11070_vm7, %v4193_v26  ;;  %4216 = vst.msk [vmem:[#allocation4 + $0x23] sm:$0x1] %vm11070_vm7, %v4215_v27  ;;  %v4149_v33 = vld [vmem:[#allocation3 + $0x4a] sm:$0x1]  ;;  %v4034_v40 = vrot.slane %v8367_v30, %v11078_v19 }
 0x3c8   : > { %3903 = vrot.lane.b32.xlu0 %v3902_v48, %s10399_s25  ;;  %v4171_v34 = vld [vmem:[#allocation3 + $0x4e] sm:$0x1]  ;;  %v4237_v35 = vld [vmem:[#allocation3 + $0x54] sm:$0x1]  ;;  %4150 = vst.msk [vmem:[#allocation4 + $0x20] sm:$0x1] %vm11070_vm7, %v4149_v33 }
 0x3c9   : > { %4172 = vst.msk [vmem:[#allocation4 + $0x21] sm:$0x1] %vm11070_vm7, %v4171_v34  ;;  %4238 = vst.msk [vmem:[#allocation4 + $0x24] sm:$0x1] %vm11070_vm7, %v4237_v35  ;;  %v4259_v39 = vld [vmem:[#allocation3 + $0x56] sm:$0x1] }
 0x3ca   : > { %v8370_v41 = vld.sshfl [vmem:[#allocation3 + $0x45] sm:$0x1 pattern:$0x75316420]  ;;  %4260 = vst.msk [vmem:[#allocation4 + $0x25] sm:$0x1] %vm11070_vm7, %v4259_v39 }
 0x3cb   : > { %3969 = vrot.lane.b32.xlu1 %v3968_v57, %s10399_s25  ;;  %v8369_v42 = vld.sshfl [vmem:[#allocation3 + $0x43] sm:$0x1 pattern:$0x75316420]  ;;  %v4100_v46 = vrot.slane %v8370_v41, %v11078_v19  ;;  %v11324_v47 = vsub.s32 1, %v11057_v32  ;;  %v11327_v51 = vsub.s32 3, %v11057_v32 }
 0x3cc   : > { %3947 = vrot.lane.b32.xlu0 %v3946_v61, %s10399_s25  ;;  %v4078_v49 = vrot.slane %v8369_v42, %v11078_v19  ;;  %v8372_v50 = vld.sshfl [vmem:[#allocation3 + $0x49] sm:$0x1 pattern:$0x75316420]  ;;  %v11330_v44 = vsub.s32 0, %v11057_v32  ;;  %v11333_v45 = vsub.s32 2, %v11057_v32 }
 0x3cd   : > { %v8371_v52 = vld.sshfl [vmem:[#allocation3 + $0x47] sm:$0x1 pattern:$0x75316420]  ;;  %v4144_v54 = vrot.slane %v8372_v50, %v11078_v19  ;;  %v11336_v48 = vsub.s32 5, %v11057_v32  ;;  %v11339_v53 = vsub.s32 7, %v11057_v32 }
 0x3ce   : > { %v4122_v15 = vrot.slane %v8371_v52, %v11078_v19  ;;  %v8376_v28 = vld.sshfl [vmem:[#allocation3 + $0x53] sm:$0x1 pattern:$0x75316420]  ;;  %v10052_v20 = vld [vmem:[%s12427_s3 + $0x100] sm:$0xff]   ;;  %v10054_v26 = vld [vmem:[%s12427_s3 + $0x148] sm:$0xff]  }
 0x3cf   : > { %4013 = vrot.lane.b32.xlu1 %v4012_v17, %s10399_s25  ;;  %v8375_v29 = vld.sshfl [vmem:[#allocation3 + $0x51] sm:$0x1 pattern:$0x75316420]  ;;  %v4232_v31 = vrot.slane %v8376_v28, %v11078_v19  ;;  %v10055_v27 = vld [vmem:[%s12427_s3 + $0x1c8] sm:$0xff]   ;;  %v10062_v52 = vld [vmem:[%s12427_s3 + $0x158] sm:$0xff]  }
 0x3d0   : > { %3991 = vrot.lane.b32.xlu0 %v3990_v21, %s10399_s25  ;;  %v4210_v55 = vrot.slane %v8375_v29, %v11078_v19  ;;  %v8374_v56 = vld.sshfl [vmem:[#allocation3 + $0x4f] sm:$0x1 pattern:$0x75316420]  ;;  %v10053_v21 = vld [vmem:[%s12427_s3 + $0x180] sm:$0xff]   ;;  %v10059_v41 = vld [vmem:[%s12427_s3 + $0x1d0] sm:$0xff]  }
 0x3d1   : > { %v8373_v58 = vld.sshfl [vmem:[#allocation3 + $0x4b] sm:$0x1 pattern:$0x75316420]  ;;  %v4188_v37 = vrot.slane %v8374_v56, %v11078_v19  ;;  %v10064_v28 = vld [vmem:[%s12427_s3 + $0x118] sm:$0xff]   ;;  %v10067_v56 = vld [vmem:[%s12427_s3 + $0x1e0] sm:$0xff]  }
 0x3d2   : > { %v4166_v59 = vrot.slane %v8373_v58, %v11078_v19  ;;  %v8378_v60 = vld.sshfl [vmem:[#allocation3 + $0x57] sm:$0x1 pattern:$0x75316420]  ;;  %v10056_v35 = vld [vmem:[%s12427_s3 + $0x108] sm:$0xff]   ;;  %v10065_v29 = vld [vmem:[%s12427_s3 + $0x198] sm:$0xff]  }
 0x3d3   : > { %4057 = vrot.lane.b32.xlu1 %v4056_v38, %s10399_s25  ;;  %v8377_v62 = vld.sshfl [vmem:[#allocation3 + $0x55] sm:$0x1 pattern:$0x75316420]  ;;  %v4276_v63 = vrot.slane %v8378_v60, %v11078_v19  ;;  %v10057_v38 = vld [vmem:[%s12427_s3 + $0x188] sm:$0xff]   ;;  %v11422_v58 = vsub.s32 6, %v11057_v32 }
 0x3d4   : > { %4035 = vrot.lane.b32.xlu0 %v4034_v40, %s10399_s25  ;;  %v4254_v0 = vrot.slane %v8377_v62, %v11078_v19  ;;  %v10058_v40 = vld [vmem:[%s12427_s3 + $0x150] sm:$0xff]   ;;  %v10068_v62 = vld [vmem:[%s12427_s3 + $0x120] sm:$0xff]   ;;  %vm7958_vm7 = vcmask 24576  }
 0x3d5   : > { %v10106_v1 = vld [vmem:[%s12427_s3 + $0x270] sm:$0xff]  }
 0x3d7   : > { %4101 = vrot.lane.b32.xlu1 %v4100_v46, %s10399_s25  ;;  %v10060_v46 = vld [vmem:[%s12427_s3 + $0x110] sm:$0xff]  }
 0x3d8   : > { %4079 = vrot.lane.b32.xlu0 %v4078_v49, %s10399_s25  ;;  %v10061_v49 = vld [vmem:[%s12427_s3 + $0x190] sm:$0xff]  }
 0x3db   : > { %4145 = vrot.lane.b32.xlu1 %v4144_v54, %s10399_s25  ;;  %v10063_v54 = vld [vmem:[%s12427_s3 + $0x1d8] sm:$0xff]  }
 0x3dc   : > { %4123 = vrot.lane.b32.xlu0 %v4122_v15, %s10399_s25 }
 0x3df   : > { %4233 = vrot.lane.b32.xlu1 %v4232_v31, %s10399_s25 }
 0x3e0   : > { %4211 = vrot.lane.b32.xlu0 %v4210_v55, %s10399_s25  ;;  %v10066_v55 = vld [vmem:[%s12427_s3 + $0x160] sm:$0xff]  }
 0x3e3   : > { %4189 = vrot.lane.b32.xlu1 %v4188_v37, %s10399_s25 }
 0x3e4   : > { %4167 = vrot.lane.b32.xlu0 %v4166_v59, %s10399_s25 }
 0x3e7   : > { %4277 = vrot.lane.b32.xlu1 %v4276_v63, %s10399_s25  ;;  %v10069_v63 = vld [vmem:[%s12427_s3 + $0x1a0] sm:$0xff]  }
 0x3e8   : > { %4255 = vrot.lane.b32.xlu0 %v4254_v0, %s10399_s25  ;;  %s12382_s25 = scalar_lea.hbm %s12433_s9, %s8698_s17 }
 0x40e   : > { %v3508_v2 = vpop.permute.xlu1 %3507 }
 0x40f   : > { %3510 = vst.msk [vmem:[#allocation4 + $0x2] sm:$0x1] %vm11299_vm1, %v3508_v2  ;;  %v10070_v2 = vld [vmem:[%s12427_s3 + $0x168] sm:$0xff]  }
 0x410   : > { %v3461_v3 = vpop.permute.xlu0 %3460 }
 0x411   : > { %3466 = vst.msk [vmem:[#allocation4] sm:$0x1] %vm11299_vm1, %v3461_v3  ;;  %v10071_v3 = vld [vmem:[%s12427_s3 + $0x1e8] sm:$0xff]  }
 0x412   : > { %v3530_v19 = vpop.permute.xlu1 %3529 }
 0x413   : > { %3532 = vst.msk [vmem:[#allocation4 + $0x3] sm:$0x1] %vm11299_vm1, %v3530_v19 }
 0x414   : > { %v3486_v4 = vpop.permute.xlu0 %3485 }
 0x415   : > { %3488 = vst.msk [vmem:[#allocation4 + $0x1] sm:$0x1] %vm11299_vm1, %v3486_v4  ;;  %v10072_v4 = vld [vmem:[%s12427_s3 + $0x128] sm:$0xff]  }
 0x419   : > { %v3574_v43 = vpop.permute.xlu1 %3573 }
 0x41a   : > { %3576 = vst.msk [vmem:[#allocation4 + $0x5] sm:$0x1] %vm11299_vm1, %v3574_v43  ;;  %v3552_v5 = vpop.permute.xlu0 %3551  ;;  %v10073_v43 = vld [vmem:[%s12427_s3 + $0x1a8] sm:$0xff]  }
 0x41b   : > { %3554 = vst.msk [vmem:[#allocation4 + $0x4] sm:$0x1] %vm11299_vm1, %v3552_v5 }
 0x41d   : > { %v3618_v6 = vpop.permute.xlu1 %3617 }
 0x41e   : > { %3620 = vst.msk [vmem:[#allocation4 + $0x7] sm:$0x1] %vm11299_vm1, %v3618_v6  ;;  %v3596_v7 = vpop.permute.xlu0 %3595  ;;  %v10074_v6 = vld [vmem:[%s12427_s3 + $0x170] sm:$0xff]  }
 0x41f   : > { %3598 = vst.msk [vmem:[#allocation4 + $0x6] sm:$0x1] %vm11299_vm1, %v3596_v7  ;;  %v10075_v7 = vld [vmem:[%s12427_s3 + $0x1f0] sm:$0xff]  }
 0x421   : > { %v3662_v8 = vpop.permute.xlu1 %3661 }
 0x422   : > { %3664 = vst.msk [vmem:[#allocation4 + $0x9] sm:$0x1] %vm11299_vm1, %v3662_v8  ;;  %v3640_v9 = vpop.permute.xlu0 %3639 }
 0x423   : > { %3642 = vst.msk [vmem:[#allocation4 + $0x8] sm:$0x1] %vm11299_vm1, %v3640_v9  ;;  %v10076_v9 = vld [vmem:[%s12427_s3 + $0x130] sm:$0xff]  }
 0x425   : > { %v3706_v22 = vpop.permute.xlu1 %3705 }
 0x426   : > { %3708 = vst.msk [vmem:[#allocation4 + $0xb] sm:$0x1] %vm11299_vm1, %v3706_v22  ;;  %v3684_v23 = vpop.permute.xlu0 %3683  ;;  %v11343_v24 = vld [vmem:[#allocation4] sm:$0xff]  ;;  %v10077_v22 = vld [vmem:[%s12427_s3 + $0x1b0] sm:$0xff]  }
 0x427   : > { %3686 = vst.msk [vmem:[#allocation4 + $0xa] sm:$0x1] %vm11299_vm1, %v3684_v23  ;;  %v4300_v10 = vrot.slane %v11343_v24, %v11324_v47  ;;  %v4308_v57 = vrot.slane %v11343_v24, %v11327_v51  ;;  %v4296_v36 = vrot.slane %v11343_v24, %v11330_v44  ;;  %v4304_v61 = vrot.slane %v11343_v24, %v11333_v45 }
 0x428   : > { %v4316_v11 = vrot.slane %v11343_v24, %v11336_v48  ;;  %v4324_v12 = vrot.slane %v11343_v24, %v11339_v53 }
 0x429   : > { %v3750_v13 = vpop.permute.xlu1 %3749  ;;  %v4489_v14 = vpack.c.bf16 %v4300_v10, %v4300_v10  ;;  %v4491_v16 = vpack.c.bf16 %v4308_v57, %v4308_v57  ;;  %v4488_v17 = vpack.c.bf16 %v4296_v36, %v4296_v36  ;;  %v4490_v18 = vpack.c.bf16 %v4304_v61, %v4304_v61  ;;  %v10078_v10 = vld [vmem:[%s12427_s3 + $0x178] sm:$0xff]  }
 0x42a   : > { %3752 = vst.msk [vmem:[#allocation4 + $0xd] sm:$0x1] %vm11299_vm1, %v3750_v13  ;;  %v3728_v25 = vpop.permute.xlu0 %3727  ;;  %v4493_v30 = vpack.c.bf16 %v4316_v11, %v4316_v11  ;;  %v4495_v33 = vpack.c.bf16 %v4324_v12, %v4324_v12  ;;  %v10079_v57 = vld [vmem:[%s12427_s3 + $0x1f8] sm:$0xff]   ;;  %v11479_v36 = vsub.s32 4, %v11057_v32 }
 0x42b   : > { %3730 = vst.msk [vmem:[#allocation4 + $0xc] sm:$0x1] %vm11299_vm1, %v3728_v25  ;;  %7027 = vmatprep.mubr.bf16.mxu0 %v4489_v14  ;;  %7067 = vmatprep.mubr.bf16.mxu1 %v4491_v16  ;;  %v10080_v11 = vld [vmem:[%s12427_s3 + $0x138] sm:$0xff]   ;;  %v4320_v14 = vrot.slane %v11343_v24, %v11422_v58  ;;  %v10082_v16 = vld [vmem:[%s12427_s3 + $0x240] sm:$0xff]  }
 0x42c   : > { %7028 = vmatmul.mubr.bf16.vlgmr.msra.gmra.mrb[12].mxu0 %v4488_v17  ;;  %7068 = vmatmul.mubr.bf16.vlgmr.msra.gmra.mrb[12].mxu1 %v4490_v18  ;;  %v10081_v12 = vld [vmem:[%s12427_s3 + $0x1b8] sm:$0xff]   ;;  %v4312_v32 = vrot.slane %v11343_v24, %v11479_v36  ;;  %v10083_v17 = vld [vmem:[%s12427_s3 + $0x2c0] sm:$0xff]  }
 0x42d   : > { %8926 = vmatpush3.bf16.msra.mxu0 %v10052_v20  ;;  %8948 = vmatpush3.bf16.msra.mxu1 %v10053_v21  ;;  %v3794_v34 = vpop.permute.xlu1 %3793  ;;  %v10084_v21 = vld [vmem:[%s12427_s3 + $0x200] sm:$0xff]  }
 0x42e   : > { %7107 = vmatprep.mubr.bf16.mxu0 %v4493_v30  ;;  %7147 = vmatprep.mubr.bf16.mxu1 %v4495_v33  ;;  %3796 = vst.msk [vmem:[#allocation4 + $0xf] sm:$0x1] %vm11299_vm1, %v3794_v34  ;;  %v3772_v39 = vpop.permute.xlu0 %3771  ;;  %v10085_v30 = vld [vmem:[%s12427_s3 + $0x280] sm:$0xff]   ;;  %v10086_v34 = vld [vmem:[%s12427_s3 + $0x248] sm:$0xff]  }
 0x42f   : > { %3774 = vst.msk [vmem:[#allocation4 + $0xe] sm:$0x1] %vm11299_vm1, %v3772_v39  ;;  %8927 = vmatprep.subr.bf16.mxu0 %v10054_v26  ;;  %8949 = vmatprep.subr.bf16.mxu1 %v10055_v27  ;;  %v4492_v26 = vpack.c.bf16 %v4312_v32, %v4312_v32  ;;  %v4494_v27 = vpack.c.bf16 %v4320_v14, %v4320_v14  ;;  %v10116_v14 = vld [vmem:[%s12427_s3 + $0x300] sm:$0xff]  }
 0x431   : > { %8928 = vmatpush3.bf16.msra.mxu0 %v10056_v35  ;;  %8950 = vmatpush3.bf16.msra.mxu1 %v10057_v38  ;;  %v3926_v42 = vpop.permute.xlu1 %3925  ;;  %v10087_v35 = vld [vmem:[%s12427_s3 + $0x2c8] sm:$0xff]  }
 0x432   : > { %3928 = vst.msk [vmem:[#allocation4 + $0x15] sm:$0x1] %vm11299_vm1, %v3926_v42  ;;  %v3816_v50 = vpop.permute.xlu0 %3815  ;;  %8929 = vmatprep.subr.bf16.mxu0 %v10058_v40  ;;  %8951 = vmatprep.subr.bf16.mxu1 %v10059_v41  ;;  %v10088_v40 = vld [vmem:[%s12427_s3 + $0x208] sm:$0xff]  }
 0x433   : > { %3818 = vst.msk [vmem:[#allocation4 + $0x10] sm:$0x1] %vm11299_vm1, %v3816_v50  ;;  %v10089_v42 = vld [vmem:[%s12427_s3 + $0x288] sm:$0xff]  }
 0x435   : > { %8930 = vmatpush3.bf16.msra.mxu0 %v10060_v46  ;;  %8952 = vmatpush3.bf16.msra.mxu1 %v10061_v49  ;;  %v3838_v15 = vpop.permute.xlu1 %3837  ;;  %v10090_v46 = vld [vmem:[%s12427_s3 + $0x250] sm:$0xff]  }
 0x436   : > { %v3860_v31 = vpop.permute.xlu0 %3859  ;;  %3840 = vst.msk [vmem:[#allocation4 + $0x11] sm:$0x1] %vm11299_vm1, %v3838_v15  ;;  %8931 = vmatprep.subr.bf16.mxu0 %v10062_v52  ;;  %8953 = vmatprep.subr.bf16.mxu1 %v10063_v54  ;;  %v11424_v37 = vld [vmem:[#allocation4 + $0x8] sm:$0xff]  ;;  %v10091_v49 = vld [vmem:[%s12427_s3 + $0x2d0] sm:$0xff]  }
 0x437   : > { %3862 = vst.msk [vmem:[#allocation4 + $0x12] sm:$0x1] %vm11299_vm1, %v3860_v31  ;;  %v11430_v59 = vrot.slane %v11424_v37, %v11422_v58  ;;  %v4332_v18 = vrot.slane %v11424_v37, %v11324_v47  ;;  %v4340_v20 = vrot.slane %v11424_v37, %v11327_v51  ;;  %v10092_v52 = vld [vmem:[%s12427_s3 + $0x210] sm:$0xff]   ;;  %v4348_v32 = vrot.slane %v11424_v37, %v11336_v48 }
 0x438   : > { %v10093_v15 = vld [vmem:[%s12427_s3 + $0x290] sm:$0xff]  }
 0x439   : > { %8932 = vmatpush3.bf16.msra.mxu0 %v10064_v28  ;;  %8954 = vmatpush3.bf16.msra.mxu1 %v10065_v29  ;;  %v3882_v60 = vpop.permute.xlu1 %3881  ;;  %v4497_v33 = vpack.c.bf16 %v4332_v18, %v4332_v18  ;;  %v4499_v38 = vpack.c.bf16 %v4340_v20, %v4340_v20  ;;  %v10094_v28 = vld [vmem:[%s12427_s3 + $0x258] sm:$0xff]   ;;  %v10117_v18 = vld [vmem:[%s12427_s3 + $0x380] sm:$0xff]  }
 0x43a   : > { %v3904_v0 = vpop.permute.xlu0 %3903  ;;  %3884 = vst.msk [vmem:[#allocation4 + $0x13] sm:$0x1] %vm11299_vm1, %v3882_v60  ;;  %8933 = vmatprep.subr.bf16.mxu0 %v10066_v55  ;;  %8955 = vmatprep.subr.bf16.mxu1 %v10067_v56  ;;  %v10095_v29 = vld [vmem:[%s12427_s3 + $0x2d8] sm:$0xff]  }
 0x43b   : > { %3906 = vst.msk [vmem:[#allocation4 + $0x14] sm:$0x1] %vm11299_vm1, %v3904_v0  ;;  %v10096_v55 = vld [vmem:[%s12427_s3 + $0x218] sm:$0xff]  }
 0x43c   : > { %v10097_v60 = vld [vmem:[%s12427_s3 + $0x298] sm:$0xff]  }
 0x43d   : > { %8934 = vmatpush3.bf16.msra.mxu0 %v10068_v62  ;;  %8956 = vmatpush3.bf16.msra.mxu1 %v10069_v63  ;;  %v3970_v19 = vpop.permute.xlu1 %3969  ;;  %v10098_v62 = vld [vmem:[%s12427_s3 + $0x260] sm:$0xff]  }
 0x43e   : > { %v3948_v5 = vpop.permute.xlu0 %3947  ;;  %3972 = vst.msk [vmem:[#allocation4 + $0x17] sm:$0x1] %vm11299_vm1, %v3970_v19  ;;  %8935 = vmatprep.subr.bf16.mxu0 %v10070_v2  ;;  %8957 = vmatprep.subr.bf16.mxu1 %v10071_v3  ;;  %v10099_v63 = vld [vmem:[%s12427_s3 + $0x2e0] sm:$0xff]  }
 0x43f   : > { %3950 = vst.msk [vmem:[#allocation4 + $0x16] sm:$0x1] %vm11299_vm1, %v3948_v5  ;;  %v10100_v2 = vld [vmem:[%s12427_s3 + $0x220] sm:$0xff]   ;;  %v10104_v5 = vld [vmem:[%s12427_s3 + $0x228] sm:$0xff]  }
 0x440   : > { %v10101_v19 = vld [vmem:[%s12427_s3 + $0x2a0] sm:$0xff]  }
 0x441   : > { %8936 = vmatpush3.bf16.msra.mxu0 %v10072_v4  ;;  %8958 = vmatpush3.bf16.msra.mxu1 %v10073_v43  ;;  %v4014_v8 = vpop.permute.xlu1 %4013  ;;  %v10102_v4 = vld [vmem:[%s12427_s3 + $0x268] sm:$0xff]  }
 0x442   : > { %v3992_v23 = vpop.permute.xlu0 %3991  ;;  %4016 = vst.msk [vmem:[#allocation4 + $0x19] sm:$0x1] %vm11299_vm1, %v4014_v8  ;;  %8937 = vmatprep.subr.bf16.mxu0 %v10074_v6  ;;  %8959 = vmatprep.subr.bf16.mxu1 %v10075_v7  ;;  %v10103_v43 = vld [vmem:[%s12427_s3 + $0x2e8] sm:$0xff]   ;;  %v10107_v7 = vld [vmem:[%s12427_s3 + $0x2f0] sm:$0xff]  }
 0x443   : > { %3994 = vst.msk [vmem:[#allocation4 + $0x18] sm:$0x1] %vm11299_vm1, %v3992_v23  ;;  %v10105_v6 = vld [vmem:[%s12427_s3 + $0x2a8] sm:$0xff]   ;;  %v10108_v8 = vld [vmem:[%s12427_s3 + $0x230] sm:$0xff]   ;;  %v10111_v23 = vld [vmem:[%s12427_s3 + $0x2f8] sm:$0xff]  }
 0x445   : > { %8938 = vmatpush3.bf16.msra.mxu0 %v10076_v9  ;;  %8960 = vmatpush3.bf16.msra.mxu1 %v10077_v22  ;;  %v4058_v61 = vpop.permute.xlu1 %4057  ;;  %v10109_v9 = vld [vmem:[%s12427_s3 + $0x2b0] sm:$0xff]   ;;  %v10110_v22 = vld [vmem:[%s12427_s3 + $0x278] sm:$0xff]  }
 0x446   : > { %v4036_v13 = vpop.permute.xlu0 %4035  ;;  %4060 = vst.msk [vmem:[#allocation4 + $0x1b] sm:$0x1] %vm11299_vm1, %v4058_v61  ;;  %8939 = vmatprep.subr.bf16.mxu0 %v10078_v10  ;;  %8961 = vmatprep.subr.bf16.mxu1 %v10079_v57  ;;  %v10112_v10 = vld [vmem:[%s12427_s3 + $0x238] sm:$0xff]   ;;  %v4328_v61 = vrot.slane %v11424_v37, %v11330_v44 }
 0x447   : > { %4038 = vst.msk [vmem:[#allocation4 + $0x1a] sm:$0x1] %vm11299_vm1, %v4036_v13  ;;  %v10113_v57 = vld [vmem:[%s12427_s3 + $0x2b8] sm:$0xff]   ;;  %v10115_v13 = vld [vmem:[%s12427_s3 + $0x3c0] sm:$0xff]  }
 0x449   : > { %8940 = vmatpush3.bf16.msra.mxu0 %v10080_v11  ;;  %8962 = vmatpush3.bf16.msra.mxu1 %v10081_v12  ;;  %v4102_v24 = vpop.permute.xlu1 %4101  ;;  %v10114_v11 = vld [vmem:[%s12427_s3 + $0x340] sm:$0xff]   ;;  %v4336_v12 = vrot.slane %v11424_v37, %v11333_v45 }
 0x44a   : > { %v4080_v25 = vpop.permute.xlu0 %4079  ;;  %4104 = vst.msk [vmem:[#allocation4 + $0x1d] sm:$0x1] %vm11299_vm1, %v4102_v24  ;;  %8969 = vmatprep.subr.bf16.mxu0 %v10082_v16  ;;  %8991 = vmatprep.subr.bf16.mxu1 %v10083_v17  ;;  %v4356_v16 = vrot.slane %v11424_v37, %v11339_v53  ;;  %v4496_v17 = vpack.c.bf16 %v4328_v61, %v4328_v61  ;;  %v10118_v24 = vld [vmem:[%s12427_s3 + $0x348] sm:$0xff]   ;;  %v10154_v61 = vld [vmem:[%s12427_s3 + $0x450] sm:$0xff]  }
 0x44b   : > { %4082 = vst.msk [vmem:[#allocation4 + $0x1c] sm:$0x1] %vm11299_vm1, %v4080_v25  ;;  %v4498_v20 = vpack.c.bf16 %v4336_v12, %v4336_v12  ;;  %v10119_v25 = vld [vmem:[%s12427_s3 + $0x3c8] sm:$0xff]   ;;  %v10156_v12 = vld [vmem:[%s12427_s3 + $0x410] sm:$0xff]  }
 0x44c   : > { %7108 = vmatmul.mubr.bf16.vlgmr.msra.gmra.mrb[16].mxu0 %v4492_v26  ;;  %7148 = vmatmul.mubr.bf16.vlgmr.msra.gmra.mrb[16].mxu1 %v4494_v27  ;;  %v4503_v26 = vpack.c.bf16 %v4356_v16, %v4356_v16  ;;  %v10120_v27 = vld [vmem:[%s12427_s3 + $0x308] sm:$0xff]   ;;  %v10160_v16 = vld [vmem:[%s12427_s3 + $0x418] sm:$0xff]  }
 0x44d   : > { %8970 = vmatpush3.bf16.msra.mxu0 %v10084_v21  ;;  %7187 = vmatprep.mubr.bf16.mxu0 %v4497_v33  ;;  %v4146_v39 = vpop.permute.xlu1 %4145  ;;  %v4501_v21 = vpack.c.bf16 %v4348_v32, %v4348_v32  ;;  %v10122_v33 = vld [vmem:[%s12427_s3 + $0x350] sm:$0xff]   ;;  %v10158_v32 = vld [vmem:[%s12427_s3 + $0x458] sm:$0xff]  }
 0x44e   : > { %8992 = vmatpush3.bf16.msra.mxu1 %v10085_v30  ;;  %7227 = vmatprep.mubr.bf16.mxu1 %v4499_v38  ;;  %v4124_v41 = vpop.permute.xlu0 %4123  ;;  %4148 = vst.msk [vmem:[#allocation4 + $0x1f] sm:$0x1] %vm11299_vm1, %v4146_v39  ;;  %v10121_v30 = vld [vmem:[%s12427_s3 + $0x388] sm:$0xff]   ;;  %v10125_v38 = vld [vmem:[%s12427_s3 + $0x390] sm:$0xff]   ;;  %v10126_v39 = vld [vmem:[%s12427_s3 + $0x358] sm:$0xff]  }
 0x44f   : > { %4126 = vst.msk [vmem:[#allocation4 + $0x1e] sm:$0x1] %vm11299_vm1, %v4124_v41  ;;  %8971 = vmatprep.subr.bf16.mxu0 %v10086_v34  ;;  %8993 = vmatprep.subr.bf16.mxu1 %v10087_v35  ;;  %v10123_v34 = vld [vmem:[%s12427_s3 + $0x3d0] sm:$0xff]   ;;  %v10128_v41 = vld [vmem:[%s12427_s3 + $0x318] sm:$0xff]  }
 0x450   : > { %v10124_v35 = vld [vmem:[%s12427_s3 + $0x310] sm:$0xff]  }
 0x451   : > { %8972 = vmatpush3.bf16.msra.mxu0 %v10088_v40  ;;  %v4234_v50 = vpop.permute.xlu1 %4233  ;;  %v10127_v40 = vld [vmem:[%s12427_s3 + $0x3d8] sm:$0xff]  }
 0x452   : > { %8994 = vmatpush3.bf16.msra.mxu1 %v10089_v42  ;;  %v4212_v54 = vpop.permute.xlu0 %4211  ;;  %4236 = vst.msk [vmem:[#allocation4 + $0x23] sm:$0x1] %vm11299_vm1, %v4234_v50  ;;  %8973 = vmatprep.subr.bf16.mxu0 %v10090_v46  ;;  %v10129_v42 = vld [vmem:[%s12427_s3 + $0x398] sm:$0xff]   ;;  %v10130_v46 = vld [vmem:[%s12427_s3 + $0x360] sm:$0xff]  }
 0x453   : > { %4214 = vst.msk [vmem:[#allocation4 + $0x22] sm:$0x1] %vm11299_vm1, %v4212_v54  ;;  %8995 = vmatprep.subr.bf16.mxu1 %v10091_v49  ;;  %v10131_v49 = vld [vmem:[%s12427_s3 + $0x3e0] sm:$0xff]   ;;  %v10134_v54 = vld [vmem:[%s12427_s3 + $0x368] sm:$0xff]  }
 0x454   : > { %v10132_v50 = vld [vmem:[%s12427_s3 + $0x320] sm:$0xff]  }
 0x455   : > { %8974 = vmatpush3.bf16.msra.mxu0 %v10092_v52  ;;  %v4190_v31 = vpop.permute.xlu1 %4189  ;;  %v10133_v52 = vld [vmem:[%s12427_s3 + $0x3a0] sm:$0xff]  }
 0x456   : > { %8996 = vmatpush3.bf16.msra.mxu1 %v10093_v15  ;;  %v4168_v56 = vpop.permute.xlu0 %4167  ;;  %4192 = vst.msk [vmem:[#allocation4 + $0x21] sm:$0x1] %vm11299_vm1, %v4190_v31  ;;  %8975 = vmatprep.subr.bf16.mxu0 %v10094_v28  ;;  %v10135_v15 = vld [vmem:[%s12427_s3 + $0x3e8] sm:$0xff]   ;;  %v10138_v31 = vld [vmem:[%s12427_s3 + $0x370] sm:$0xff]  }
 0x457   : > { %4170 = vst.msk [vmem:[#allocation4 + $0x20] sm:$0x1] %vm11299_vm1, %v4168_v56  ;;  %8997 = vmatprep.subr.bf16.mxu1 %v10095_v29  ;;  %v10136_v28 = vld [vmem:[%s12427_s3 + $0x328] sm:$0xff]   ;;  %v10140_v56 = vld [vmem:[%s12427_s3 + $0x330] sm:$0xff]  }
 0x458   : > { %v10137_v29 = vld [vmem:[%s12427_s3 + $0x3a8] sm:$0xff]  }
 0x459   : > { %8976 = vmatpush3.bf16.msra.mxu0 %v10096_v55  ;;  %v4278_v0 = vpop.permute.xlu1 %4277  ;;  %v10139_v55 = vld [vmem:[%s12427_s3 + $0x3f0] sm:$0xff]  }
 0x45a   : > { %8998 = vmatpush3.bf16.msra.mxu1 %v10097_v60  ;;  %v4256_v3 = vpop.permute.xlu0 %4255  ;;  %4280 = vst.msk [vmem:[#allocation4 + $0x25] sm:$0x1] %vm11299_vm1, %v4278_v0  ;;  %8977 = vmatprep.subr.bf16.mxu0 %v10098_v62  ;;  %v10141_v60 = vld [vmem:[%s12427_s3 + $0x3b0] sm:$0xff]   ;;  %v10142_v62 = vld [vmem:[%s12427_s3 + $0x378] sm:$0xff]  }
 0x45b   : > { %4258 = vst.msk [vmem:[#allocation4 + $0x24] sm:$0x1] %vm11299_vm1, %v4256_v3  ;;  %8999 = vmatprep.subr.bf16.mxu1 %v10099_v63  ;;  %v10143_v63 = vld [vmem:[%s12427_s3 + $0x3f8] sm:$0xff]  }
 0x45c   : > { %v10144_v0 = vld [vmem:[%s12427_s3 + $0x338] sm:$0xff]  }
 0x45d   : > { %8978 = vmatpush3.bf16.msra.mxu0 %v10100_v2  ;;  %v11718_v2 = vld [vmem:[#allocation4 + $0x10] sm:$0xff]  ;;  %v10145_v3 = vld [vmem:[%s12427_s3 + $0x3b8] sm:$0xff]  }
 0x45e   : > { %9000 = vmatpush3.bf16.msra.mxu1 %v10101_v19  ;;  %8979 = vmatprep.subr.bf16.mxu0 %v10102_v4  ;;  %v4344_v19 = vrot.slane %v11424_v37, %v11479_v36  ;;  %v10146_v4 = vld [vmem:[%s12427_s3 + $0x440] sm:$0xff]   ;;  %v4372_v37 = vrot.slane %v11718_v2, %v11327_v51 }
 0x45f   : > { %9001 = vmatprep.subr.bf16.mxu1 %v10103_v43  ;;  %v10147_v43 = vld [vmem:[%s12427_s3 + $0x4c0] sm:$0xff]  }
 0x461   : > { %8980 = vmatpush3.bf16.msra.mxu0 %v10104_v5  ;;  %v4364_v5 = vrot.slane %v11718_v2, %v11324_v47 }
 0x462   : > { %9002 = vmatpush3.bf16.msra.mxu1 %v10105_v6  ;;  %8981 = vmatprep.subr.bf16.mxu0 %v10106_v1  ;;  %v10148_v6 = vld [vmem:[%s12427_s3 + $0x400] sm:$0xff]   ;;  %v4500_v1 = vpack.c.bf16 %v4344_v19, %v4344_v19  ;;  %v10186_v19 = vld [vmem:[%s12427_s3 + $0x550] sm:$0xff]  }
 0x463   : > { %9003 = vmatprep.subr.bf16.mxu1 %v10107_v7  ;;  %v10149_v7 = vld [vmem:[%s12427_s3 + $0x480] sm:$0xff]  }
 0x465   : > { %8982 = vmatpush3.bf16.msra.mxu0 %v10108_v8  ;;  %v4502_v8 = vpack.c.bf16 %v11430_v59, %v11430_v59  ;;  %v10153_v59 = vld [vmem:[%s12427_s3 + $0x488] sm:$0xff]  }
 0x466   : > { %9004 = vmatpush3.bf16.msra.mxu1 %v10109_v9  ;;  %8983 = vmatprep.subr.bf16.mxu0 %v10110_v22  ;;  %v10150_v9 = vld [vmem:[%s12427_s3 + $0x448] sm:$0xff]   ;;  %v4505_v22 = vpack.c.bf16 %v4364_v5, %v4364_v5  ;;  %v10189_v5 = vld [vmem:[%s12427_s3 + $0x590] sm:$0xff]  }
 0x467   : > { %9005 = vmatprep.subr.bf16.mxu1 %v10111_v23  ;;  %v10151_v23 = vld [vmem:[%s12427_s3 + $0x4c8] sm:$0xff]  }
 0x469   : > { %8984 = vmatpush3.bf16.msra.mxu0 %v10112_v10  ;;  %v4507_v10 = vpack.c.bf16 %v4372_v37, %v4372_v37  ;;  %v10191_v37 = vld [vmem:[%s12427_s3 + $0x5d8] sm:$0xff]  }
 0x46a   : > { %9006 = vmatpush3.bf16.msra.mxu1 %v10113_v57  ;;  %9013 = vmatprep.subr.bf16.mxu0 %v10114_v11  ;;  %v10152_v57 = vld [vmem:[%s12427_s3 + $0x408] sm:$0xff]   ;;  %v10155_v11 = vld [vmem:[%s12427_s3 + $0x4d0] sm:$0xff]  }
 0x46b   : > { %9035 = vmatprep.subr.bf16.mxu1 %v10115_v13  ;;  %v10157_v13 = vld [vmem:[%s12427_s3 + $0x490] sm:$0xff]  }
 0x46c   : > { %7188 = vmatmul.mubr.bf16.vlgmr.msra.gmra.mrb[20].mxu0 %v4496_v17  ;;  %v10161_v17 = vld [vmem:[%s12427_s3 + $0x498] sm:$0xff]  }
 0x46d   : > { %7228 = vmatmul.mubr.bf16.vlgmr.msra.gmra.mrb[20].mxu1 %v4498_v20  ;;  %9014 = vmatpush3.bf16.msra.mxu0 %v10116_v14  ;;  %v10159_v14 = vld [vmem:[%s12427_s3 + $0x4d8] sm:$0xff]   ;;  %v10163_v20 = vld [vmem:[%s12427_s3 + $0x4e0] sm:$0xff]  }
 0x46e   : > { %7267 = vmatprep.mubr.bf16.mxu0 %v4501_v21  ;;  %9036 = vmatpush3.bf16.msra.mxu1 %v10117_v18  ;;  %v10162_v18 = vld [vmem:[%s12427_s3 + $0x460] sm:$0xff]  }
 0x46f   : > { %7307 = vmatprep.mubr.bf16.mxu1 %v4503_v26  ;;  %9015 = vmatprep.subr.bf16.mxu0 %v10118_v24  ;;  %v10164_v24 = vld [vmem:[%s12427_s3 + $0x420] sm:$0xff]   ;;  %v10167_v26 = vld [vmem:[%s12427_s3 + $0x4e8] sm:$0xff]  }
 0x470   : > { %9037 = vmatprep.subr.bf16.mxu1 %v10119_v25  ;;  %v10165_v21 = vld [vmem:[%s12427_s3 + $0x4a0] sm:$0xff]   ;;  %v10166_v25 = vld [vmem:[%s12427_s3 + $0x468] sm:$0xff]  }
 0x471   : > { %9016 = vmatpush3.bf16.msra.mxu0 %v10120_v27  ;;  %v10168_v27 = vld [vmem:[%s12427_s3 + $0x428] sm:$0xff]  }
 0x472   : > { %9038 = vmatpush3.bf16.msra.mxu1 %v10121_v30  ;;  %9017 = vmatprep.subr.bf16.mxu0 %v10122_v33  ;;  %v10169_v30 = vld [vmem:[%s12427_s3 + $0x4a8] sm:$0xff]   ;;  %v10170_v33 = vld [vmem:[%s12427_s3 + $0x470] sm:$0xff]  }
 0x473   : > { %9039 = vmatprep.subr.bf16.mxu1 %v10123_v34  ;;  %v10171_v34 = vld [vmem:[%s12427_s3 + $0x4f0] sm:$0xff]  }
 0x475   : > { %9018 = vmatpush3.bf16.msra.mxu0 %v10124_v35  ;;  %v10172_v35 = vld [vmem:[%s12427_s3 + $0x430] sm:$0xff]  }
 0x476   : > { %9040 = vmatpush3.bf16.msra.mxu1 %v10125_v38  ;;  %9019 = vmatprep.subr.bf16.mxu0 %v10126_v39  ;;  %v10173_v38 = vld [vmem:[%s12427_s3 + $0x4b0] sm:$0xff]   ;;  %v10174_v39 = vld [vmem:[%s12427_s3 + $0x478] sm:$0xff]  }
 0x477   : > { %9041 = vmatprep.subr.bf16.mxu1 %v10127_v40  ;;  %v10175_v40 = vld [vmem:[%s12427_s3 + $0x4f8] sm:$0xff]  }
 0x479   : > { %9020 = vmatpush3.bf16.msra.mxu0 %v10128_v41  ;;  %v10176_v41 = vld [vmem:[%s12427_s3 + $0x438] sm:$0xff]  }
 0x47a   : > { %9042 = vmatpush3.bf16.msra.mxu1 %v10129_v42  ;;  %9021 = vmatprep.subr.bf16.mxu0 %v10130_v46  ;;  %v10177_v42 = vld [vmem:[%s12427_s3 + $0x4b8] sm:$0xff]   ;;  %v4360_v46 = vrot.slane %v11718_v2, %v11330_v44 }
 0x47b   : > { %9043 = vmatprep.subr.bf16.mxu1 %v10131_v49  ;;  %v10178_v49 = vld [vmem:[%s12427_s3 + $0x540] sm:$0xff]  }
 0x47d   : > { %9022 = vmatpush3.bf16.msra.mxu0 %v10132_v50  ;;  %v4368_v50 = vrot.slane %v11718_v2, %v11333_v45 }
 0x47e   : > { %9044 = vmatpush3.bf16.msra.mxu1 %v10133_v52  ;;  %9023 = vmatprep.subr.bf16.mxu0 %v10134_v54  ;;  %v10179_v52 = vld [vmem:[%s12427_s3 + $0x5c0] sm:$0xff]   ;;  %v4380_v54 = vrot.slane %v11718_v2, %v11336_v48 }
 0x47f   : > { %9045 = vmatprep.subr.bf16.mxu1 %v10135_v15  ;;  %v10180_v15 = vld [vmem:[%s12427_s3 + $0x500] sm:$0xff]  }
 0x481   : > { %9024 = vmatpush3.bf16.msra.mxu0 %v10136_v28  ;;  %v4388_v28 = vrot.slane %v11718_v2, %v11339_v53 }
 0x482   : > { %9046 = vmatpush3.bf16.msra.mxu1 %v10137_v29  ;;  %9025 = vmatprep.subr.bf16.mxu0 %v10138_v31  ;;  %v4504_v29 = vpack.c.bf16 %v4360_v46, %v4360_v46  ;;  %v10181_v31 = vld [vmem:[%s12427_s3 + $0x580] sm:$0xff]   ;;  %v10217_v46 = vld [vmem:[%s12427_s3 + $0x688] sm:$0xff]  }
 0x483   : > { %9047 = vmatprep.subr.bf16.mxu1 %v10139_v55  ;;  %v4506_v55 = vpack.c.bf16 %v4368_v50, %v4368_v50  ;;  %v10219_v50 = vld [vmem:[%s12427_s3 + $0x6d0] sm:$0xff]  }
 0x485   : > { %9026 = vmatpush3.bf16.msra.mxu0 %v10140_v56  ;;  %v10182_v56 = vld [vmem:[%s12427_s3 + $0x548] sm:$0xff]  }
 0x486   : > { %9048 = vmatpush3.bf16.msra.mxu1 %v10141_v60  ;;  %9027 = vmatprep.subr.bf16.mxu0 %v10142_v62  ;;  %v4509_v60 = vpack.c.bf16 %v4380_v54, %v4380_v54  ;;  %v10183_v62 = vld [vmem:[%s12427_s3 + $0x5c8] sm:$0xff]   ;;  %v10221_v54 = vld [vmem:[%s12427_s3 + $0x690] sm:$0xff]  }
 0x487   : > { %9049 = vmatprep.subr.bf16.mxu1 %v10143_v63  ;;  %v4511_v63 = vpack.c.bf16 %v4388_v28, %v4388_v28  ;;  %v10223_v28 = vld [vmem:[%s12427_s3 + $0x6d8] sm:$0xff]  }
 0x489   : > { %9028 = vmatpush3.bf16.msra.mxu0 %v10144_v0  ;;  %v10184_v0 = vld [vmem:[%s12427_s3 + $0x508] sm:$0xff]  }
 0x48a   : > { %9050 = vmatpush3.bf16.msra.mxu1 %v10145_v3  ;;  %9057 = vmatprep.subr.bf16.mxu0 %v10146_v4  ;;  %v10185_v3 = vld [vmem:[%s12427_s3 + $0x588] sm:$0xff]   ;;  %v10187_v4 = vld [vmem:[%s12427_s3 + $0x5d0] sm:$0xff]  }
 0x48b   : > { %9079 = vmatprep.subr.bf16.mxu1 %v10147_v43  ;;  %v10188_v43 = vld [vmem:[%s12427_s3 + $0x510] sm:$0xff]  }
 0x48c   : > { %7268 = vmatmul.mubr.bf16.vlgmr.msra.gmra.mrb[24].mxu0 %v4500_v1  ;;  %v10192_v1 = vld [vmem:[%s12427_s3 + $0x518] sm:$0xff]  }
 0x48d   : > { %7308 = vmatmul.mubr.bf16.vlgmr.msra.gmra.mrb[24].mxu1 %v4502_v8  ;;  %9058 = vmatpush3.bf16.msra.mxu0 %v10148_v6  ;;  %v10190_v6 = vld [vmem:[%s12427_s3 + $0x558] sm:$0xff]   ;;  %v10194_v8 = vld [vmem:[%s12427_s3 + $0x560] sm:$0xff]  }
 0x48e   : > { %7347 = vmatprep.mubr.bf16.mxu0 %v4505_v22  ;;  %9080 = vmatpush3.bf16.msra.mxu1 %v10149_v7  ;;  %v10193_v7 = vld [vmem:[%s12427_s3 + $0x598] sm:$0xff]   ;;  %v10196_v22 = vld [vmem:[%s12427_s3 + $0x520] sm:$0xff]  }
 0x48f   : > { %7387 = vmatprep.mubr.bf16.mxu1 %v4507_v10  ;;  %9059 = vmatprep.subr.bf16.mxu0 %v10150_v9  ;;  %v10195_v9 = vld [vmem:[%s12427_s3 + $0x5e0] sm:$0xff]   ;;  %v10198_v10 = vld [vmem:[%s12427_s3 + $0x568] sm:$0xff]  }
 0x490   : > { %9081 = vmatprep.subr.bf16.mxu1 %v10151_v23  ;;  %v10197_v23 = vld [vmem:[%s12427_s3 + $0x5a0] sm:$0xff]  }
 0x491   : > { %9060 = vmatpush3.bf16.msra.mxu0 %v10152_v57  ;;  %v10199_v57 = vld [vmem:[%s12427_s3 + $0x5e8] sm:$0xff]  }
 0x492   : > { %9082 = vmatpush3.bf16.msra.mxu1 %v10153_v59  ;;  %9061 = vmatprep.subr.bf16.mxu0 %v10154_v61  ;;  %v10200_v59 = vld [vmem:[%s12427_s3 + $0x528] sm:$0xff]  }
 0x493   : > { %9083 = vmatprep.subr.bf16.mxu1 %v10155_v11  ;;  %v10201_v61 = vld [vmem:[%s12427_s3 + $0x5a8] sm:$0xff]   ;;  %v10202_v11 = vld [vmem:[%s12427_s3 + $0x570] sm:$0xff]  }
 0x495   : > { %9062 = vmatpush3.bf16.msra.mxu0 %v10156_v12  ;;  %v10203_v12 = vld [vmem:[%s12427_s3 + $0x5f0] sm:$0xff]  }
 0x496   : > { %9084 = vmatpush3.bf16.msra.mxu1 %v10157_v13  ;;  %9063 = vmatprep.subr.bf16.mxu0 %v10158_v32  ;;  %v10204_v13 = vld [vmem:[%s12427_s3 + $0x530] sm:$0xff]  }
 0x497   : > { %9085 = vmatprep.subr.bf16.mxu1 %v10159_v14  ;;  %v10205_v32 = vld [vmem:[%s12427_s3 + $0x5b0] sm:$0xff]   ;;  %v10206_v14 = vld [vmem:[%s12427_s3 + $0x578] sm:$0xff]  }
 0x499   : > { %9064 = vmatpush3.bf16.msra.mxu0 %v10160_v16  ;;  %v10207_v16 = vld [vmem:[%s12427_s3 + $0x5f8] sm:$0xff]  }
 0x49a   : > { %9086 = vmatpush3.bf16.msra.mxu1 %v10161_v17  ;;  %9065 = vmatprep.subr.bf16.mxu0 %v10162_v18  ;;  %v10208_v17 = vld [vmem:[%s12427_s3 + $0x538] sm:$0xff]  }
 0x49b   : > { %9087 = vmatprep.subr.bf16.mxu1 %v10163_v20  ;;  %v11928_v18 = vld [vmem:[#allocation4 + $0x18] sm:$0xff] }
 0x49c   : > { %v10209_v20 = vld [vmem:[%s12427_s3 + $0x5b8] sm:$0xff]  }
 0x49d   : > { %9066 = vmatpush3.bf16.msra.mxu0 %v10164_v24  ;;  %v4376_v24 = vrot.slane %v11718_v2, %v11479_v36 }
 0x49e   : > { %9088 = vmatpush3.bf16.msra.mxu1 %v10165_v21  ;;  %9067 = vmatprep.subr.bf16.mxu0 %v10166_v25  ;;  %v10210_v21 = vld [vmem:[%s12427_s3 + $0x640] sm:$0xff]   ;;  %v4384_v25 = vrot.slane %v11718_v2, %v11422_v58 }
 0x49f   : > { %9089 = vmatprep.subr.bf16.mxu1 %v10167_v26  ;;  %v10211_v26 = vld [vmem:[%s12427_s3 + $0x6c0] sm:$0xff]  }
 0x4a0   : > { %v10213_v2 = vld [vmem:[%s12427_s3 + $0x680] sm:$0xff]  }
 0x4a1   : > { %9068 = vmatpush3.bf16.msra.mxu0 %v10168_v27  ;;  %v4396_v27 = vrot.slane %v11928_v18, %v11324_v47 }
 0x4a2   : > { %9090 = vmatpush3.bf16.msra.mxu1 %v10169_v30  ;;  %9069 = vmatprep.subr.bf16.mxu0 %v10170_v33  ;;  %v10212_v30 = vld [vmem:[%s12427_s3 + $0x600] sm:$0xff]   ;;  %v4404_v33 = vrot.slane %v11928_v18, %v11327_v51 }
 0x4a3   : > { %9091 = vmatprep.subr.bf16.mxu1 %v10171_v34  ;;  %v4508_v34 = vpack.c.bf16 %v4376_v24, %v4376_v24  ;;  %v10250_v24 = vld [vmem:[%s12427_s3 + $0x750] sm:$0xff]  }
 0x4a5   : > { %9070 = vmatpush3.bf16.msra.mxu0 %v10172_v35  ;;  %v4510_v35 = vpack.c.bf16 %v4384_v25, %v4384_v25  ;;  %v10252_v25 = vld [vmem:[%s12427_s3 + $0x710] sm:$0xff]  }
 0x4a6   : > { %9092 = vmatpush3.bf16.msra.mxu1 %v10173_v38  ;;  %9071 = vmatprep.subr.bf16.mxu0 %v10174_v39  ;;  %v10214_v38 = vld [vmem:[%s12427_s3 + $0x648] sm:$0xff]   ;;  %v4513_v39 = vpack.c.bf16 %v4396_v27, %v4396_v27  ;;  %v10254_v27 = vld [vmem:[%s12427_s3 + $0x758] sm:$0xff]  }
 0x4a7   : > { %9093 = vmatprep.subr.bf16.mxu1 %v10175_v40  ;;  %v10215_v40 = vld [vmem:[%s12427_s3 + $0x6c8] sm:$0xff]  }
 0x4a9   : > { %9072 = vmatpush3.bf16.msra.mxu0 %v10176_v41  ;;  %v4515_v41 = vpack.c.bf16 %v4404_v33, %v4404_v33  ;;  %v10256_v33 = vld [vmem:[%s12427_s3 + $0x718] sm:$0xff]  }
 0x4aa   : > { %9094 = vmatpush3.bf16.msra.mxu1 %v10177_v42  ;;  %9101 = vmatprep.subr.bf16.mxu0 %v10178_v49  ;;  %v10216_v42 = vld [vmem:[%s12427_s3 + $0x608] sm:$0xff]   ;;  %v10218_v49 = vld [vmem:[%s12427_s3 + $0x650] sm:$0xff]  }
 0x4ab   : > { %9123 = vmatprep.subr.bf16.mxu1 %v10179_v52  ;;  %v10220_v52 = vld [vmem:[%s12427_s3 + $0x610] sm:$0xff]  }
 0x4ac   : > { %7348 = vmatmul.mubr.bf16.vlgmr.msra.gmra.mrb[28].mxu0 %v4504_v29  ;;  %v10224_v29 = vld [vmem:[%s12427_s3 + $0x618] sm:$0xff]  }
 0x4ad   : > { %7388 = vmatmul.mubr.bf16.vlgmr.msra.gmra.mrb[28].mxu1 %v4506_v55  ;;  %9102 = vmatpush3.bf16.msra.mxu0 %v10180_v15  ;;  %v10222_v15 = vld [vmem:[%s12427_s3 + $0x658] sm:$0xff]   ;;  %v10226_v55 = vld [vmem:[%s12427_s3 + $0x660] sm:$0xff]  }
 0x4ae   : > { %7427 = vmatprep.mubr.bf16.mxu0 %v4509_v60  ;;  %9124 = vmatpush3.bf16.msra.mxu1 %v10181_v31  ;;  %v10225_v31 = vld [vmem:[%s12427_s3 + $0x698] sm:$0xff]   ;;  %v10228_v60 = vld [vmem:[%s12427_s3 + $0x620] sm:$0xff]  }
 0x4af   : > { %7467 = vmatprep.mubr.bf16.mxu1 %v4511_v63  ;;  %9103 = vmatprep.subr.bf16.mxu0 %v10182_v56  ;;  %v10227_v56 = vld [vmem:[%s12427_s3 + $0x6e0] sm:$0xff]   ;;  %v10230_v63 = vld [vmem:[%s12427_s3 + $0x668] sm:$0xff]  }
 0x4b0   : > { %9125 = vmatprep.subr.bf16.mxu1 %v10183_v62  ;;  %v10229_v62 = vld [vmem:[%s12427_s3 + $0x6a0] sm:$0xff]  }
 0x4b1   : > { %9104 = vmatpush3.bf16.msra.mxu0 %v10184_v0  ;;  %v10231_v0 = vld [vmem:[%s12427_s3 + $0x6e8] sm:$0xff]  }
 0x4b2   : > { %9126 = vmatpush3.bf16.msra.mxu1 %v10185_v3  ;;  %9105 = vmatprep.subr.bf16.mxu0 %v10186_v19  ;;  %v10232_v3 = vld [vmem:[%s12427_s3 + $0x628] sm:$0xff]  }
 0x4b3   : > { %9127 = vmatprep.subr.bf16.mxu1 %v10187_v4  ;;  %v10233_v19 = vld [vmem:[%s12427_s3 + $0x6a8] sm:$0xff]   ;;  %v10234_v4 = vld [vmem:[%s12427_s3 + $0x670] sm:$0xff]  }
 0x4b5   : > { %9106 = vmatpush3.bf16.msra.mxu0 %v10188_v43  ;;  %v10235_v43 = vld [vmem:[%s12427_s3 + $0x6f0] sm:$0xff]  }
 0x4b6   : > { %9128 = vmatpush3.bf16.msra.mxu1 %v10189_v5  ;;  %9107 = vmatprep.subr.bf16.mxu0 %v10190_v6  ;;  %v10236_v5 = vld [vmem:[%s12427_s3 + $0x630] sm:$0xff]  }
 0x4b7   : > { %9129 = vmatprep.subr.bf16.mxu1 %v10191_v37  ;;  %v10237_v6 = vld [vmem:[%s12427_s3 + $0x6b0] sm:$0xff]   ;;  %v10238_v37 = vld [vmem:[%s12427_s3 + $0x678] sm:$0xff]  }
 0x4b9   : > { %9108 = vmatpush3.bf16.msra.mxu0 %v10192_v1  ;;  %v10239_v1 = vld [vmem:[%s12427_s3 + $0x6f8] sm:$0xff]  }
 0x4ba   : > { %9130 = vmatpush3.bf16.msra.mxu1 %v10193_v7  ;;  %9109 = vmatprep.subr.bf16.mxu0 %v10194_v8  ;;  %v10240_v7 = vld [vmem:[%s12427_s3 + $0x638] sm:$0xff]  }
 0x4bb   : > { %9131 = vmatprep.subr.bf16.mxu1 %v10195_v9  ;;  %v10241_v8 = vld [vmem:[%s12427_s3 + $0x6b8] sm:$0xff]   ;;  %v4392_v9 = vrot.slane %v11928_v18, %v11330_v44 }
 0x4bd   : > { %9110 = vmatpush3.bf16.msra.mxu0 %v10196_v22  ;;  %v10242_v22 = vld [vmem:[%s12427_s3 + $0x740] sm:$0xff]  }
 0x4be   : > { %9132 = vmatpush3.bf16.msra.mxu1 %v10197_v23  ;;  %9111 = vmatprep.subr.bf16.mxu0 %v10198_v10  ;;  %v4400_v23 = vrot.slane %v11928_v18, %v11333_v45  ;;  %v10243_v10 = vld [vmem:[%s12427_s3 + $0x7c0] sm:$0xff]  }
 0x4bf   : > { %9133 = vmatprep.subr.bf16.mxu1 %v10199_v57  ;;  %v4412_v57 = vrot.slane %v11928_v18, %v11336_v48 }
 0x4c1   : > { %9112 = vmatpush3.bf16.msra.mxu0 %v10200_v59  ;;  %v10244_v59 = vld [vmem:[%s12427_s3 + $0x700] sm:$0xff]  }
 0x4c2   : > { %9134 = vmatpush3.bf16.msra.mxu1 %v10201_v61  ;;  %9113 = vmatprep.subr.bf16.mxu0 %v10202_v11  ;;  %v4420_v61 = vrot.slane %v11928_v18, %v11339_v53  ;;  %v4512_v11 = vpack.c.bf16 %v4392_v9, %v4392_v9  ;;  %v4416_v9 = vrot.slane %v11928_v18, %v11422_v58 }
 0x4c3   : > { %9135 = vmatprep.subr.bf16.mxu1 %v10203_v12  ;;  %v10245_v12 = vld [vmem:[%s12427_s3 + $0x780] sm:$0xff]  }
 0x4c4   : > { %v4519_v53 = vpack.c.bf16 %v4420_v61, %v4420_v61  ;;  %v4518_v61 = vpack.c.bf16 %v4416_v9, %v4416_v9  ;;  %v10310_v9 = vld [vmem:[%s12427_s3 + $0x908] sm:$0xff]  }
 0x4c5   : > { %9114 = vmatpush3.bf16.msra.mxu0 %v10204_v13  ;;  %v4514_v13 = vpack.c.bf16 %v4400_v23, %v4400_v23 }
 0x4c6   : > { %9136 = vmatpush3.bf16.msra.mxu1 %v10205_v32  ;;  %9115 = vmatprep.subr.bf16.mxu0 %v10206_v14  ;;  %v10246_v32 = vld [vmem:[%s12427_s3 + $0x748] sm:$0xff]   ;;  %v4517_v14 = vpack.c.bf16 %v4412_v57, %v4412_v57 }
 0x4c7   : > { %9137 = vmatprep.subr.bf16.mxu1 %v10207_v16  ;;  %v10247_v16 = vld [vmem:[%s12427_s3 + $0x7c8] sm:$0xff]  }
 0x4c9   : > { %9116 = vmatpush3.bf16.msra.mxu0 %v10208_v17  ;;  %v10248_v17 = vld [vmem:[%s12427_s3 + $0x708] sm:$0xff]  }
 0x4ca   : > { %9138 = vmatpush3.bf16.msra.mxu1 %v10209_v20  ;;  %9145 = vmatprep.subr.bf16.mxu0 %v10210_v21  ;;  %v10249_v20 = vld [vmem:[%s12427_s3 + $0x788] sm:$0xff]   ;;  %v10251_v21 = vld [vmem:[%s12427_s3 + $0x7d0] sm:$0xff]  }
 0x4cb   : > { %9167 = vmatprep.subr.bf16.mxu1 %v10211_v26  ;;  %v10253_v26 = vld [vmem:[%s12427_s3 + $0x790] sm:$0xff]  }
 0x4cc   : > { %7428 = vmatmul.mubr.bf16.vlgmr.msra.gmra.mrb[32].mxu0 %v4508_v34  ;;  %v10257_v34 = vld [vmem:[%s12427_s3 + $0x798] sm:$0xff]  }
 0x4cd   : > { %7468 = vmatmul.mubr.bf16.vlgmr.msra.gmra.mrb[32].mxu1 %v4510_v35  ;;  %9146 = vmatpush3.bf16.msra.mxu0 %v10212_v30  ;;  %v10255_v30 = vld [vmem:[%s12427_s3 + $0x7d8] sm:$0xff]   ;;  %v10259_v35 = vld [vmem:[%s12427_s3 + $0x7e0] sm:$0xff]  }
 0x4ce   : > { %7507 = vmatprep.mubr.bf16.mxu0 %v4513_v39  ;;  %9168 = vmatpush3.bf16.msra.mxu1 %v10213_v2  ;;  %v10258_v2 = vld [vmem:[%s12427_s3 + $0x760] sm:$0xff]  }
 0x4cf   : > { %7547 = vmatprep.mubr.bf16.mxu1 %v4515_v41  ;;  %9147 = vmatprep.subr.bf16.mxu0 %v10214_v38  ;;  %v10260_v38 = vld [vmem:[%s12427_s3 + $0x720] sm:$0xff]   ;;  %v10263_v41 = vld [vmem:[%s12427_s3 + $0x7e8] sm:$0xff]  }
 0x4d0   : > { %9169 = vmatprep.subr.bf16.mxu1 %v10215_v40  ;;  %v10261_v39 = vld [vmem:[%s12427_s3 + $0x7a0] sm:$0xff]   ;;  %v10262_v40 = vld [vmem:[%s12427_s3 + $0x768] sm:$0xff]  }
 0x4d1   : > { %9148 = vmatpush3.bf16.msra.mxu0 %v10216_v42  ;;  %v10264_v42 = vld [vmem:[%s12427_s3 + $0x728] sm:$0xff]  }
 0x4d2   : > { %9170 = vmatpush3.bf16.msra.mxu1 %v10217_v46  ;;  %9149 = vmatprep.subr.bf16.mxu0 %v10218_v49  ;;  %v10265_v46 = vld [vmem:[%s12427_s3 + $0x7a8] sm:$0xff]   ;;  %v10266_v49 = vld [vmem:[%s12427_s3 + $0x770] sm:$0xff]  }
 0x4d3   : > { %9171 = vmatprep.subr.bf16.mxu1 %v10219_v50 }
 0x4d5   : > { %9150 = vmatpush3.bf16.msra.mxu0 %v10220_v52 }
 0x4d6   : > { %9172 = vmatpush3.bf16.msra.mxu1 %v10221_v54  ;;  %9151 = vmatprep.subr.bf16.mxu0 %v10222_v15  ;;  %v10267_v54 = vld [vmem:[%s12427_s3 + $0x7f0] sm:$0xff]   ;;  %v5143_v15 = vld [vmem:[%s12428_s4] sm:$0x1] }
 0x4d7   : > { %9173 = vmatprep.subr.bf16.mxu1 %v10223_v28 }
 0x4d9   : > { %9152 = vmatpush3.bf16.msra.mxu0 %v10224_v29 }
 0x4da   : > { %9174 = vmatpush3.bf16.msra.mxu1 %v10225_v31  ;;  %9153 = vmatprep.subr.bf16.mxu0 %v10226_v55 }
 0x4db   : > { %9175 = vmatprep.subr.bf16.mxu1 %v10227_v56 }
 0x4dd   : > { %9154 = vmatpush3.bf16.msra.mxu0 %v10228_v60 }
 0x4de   : > { %9176 = vmatpush3.bf16.msra.mxu1 %v10229_v62  ;;  %9155 = vmatprep.subr.bf16.mxu0 %v10230_v63  ;;  %v10268_v62 = vld [vmem:[%s12427_s3 + $0x730] sm:$0xff]  }
 0x4df   : > { %9177 = vmatprep.subr.bf16.mxu1 %v10231_v0 }
 0x4e1   : > { %9156 = vmatpush3.bf16.msra.mxu0 %v10232_v3  ;;  %v10269_v3 = vld [vmem:[%s12427_s3 + $0x7b0] sm:$0xff]  }
 0x4e2   : > { %9178 = vmatpush3.bf16.msra.mxu1 %v10233_v19  ;;  %9157 = vmatprep.subr.bf16.mxu0 %v10234_v4  ;;  %v10270_v19 = vld [vmem:[%s12427_s3 + $0x778] sm:$0xff]  }
 0x4e3   : > { %9179 = vmatprep.subr.bf16.mxu1 %v10235_v43  ;;  %v10271_v43 = vld [vmem:[%s12427_s3 + $0x7f8] sm:$0xff]  }
 0x4e5   : > { %9158 = vmatpush3.bf16.msra.mxu0 %v10236_v5 }
 0x4e6   : > { %9180 = vmatpush3.bf16.msra.mxu1 %v10237_v6  ;;  %9159 = vmatprep.subr.bf16.mxu0 %v10238_v37  ;;  %v10272_v6 = vld [vmem:[%s12427_s3 + $0x738] sm:$0xff]   ;;  %v12143_v37 = vld [vmem:[#allocation4 + $0x20] sm:$0x7f] }
 0x4e7   : > { %9181 = vmatprep.subr.bf16.mxu1 %v10239_v1  ;;  %v10273_v1 = vld [vmem:[%s12427_s3 + $0x7b8] sm:$0xff]   ;;  %v4428_v23 = vrot.slane %v12143_v37, %v11324_v47  ;;  %v4436_v57 = vrot.slane %v12143_v37, %v11327_v51  ;;  %v10278_v47 = vld [vmem:[%s12427_s3 + $0x848] sm:$0xff]  }
 0x4e9   : > { %9160 = vmatpush3.bf16.msra.mxu0 %v10240_v7  ;;  %v4408_v7 = vrot.slane %v11928_v18, %v11479_v36  ;;  %v10277_v18 = vld [vmem:[%s12427_s3 + $0x880] sm:$0xff]   ;;  %v4523_v51 = vpack.c.bf16 %v4436_v57, %v4436_v57  ;;  %v10314_v57 = vld [vmem:[%s12427_s3 + $0x990] sm:$0xff]  }
 0x4ea   : > { %9182 = vmatpush3.bf16.msra.mxu1 %v10241_v8  ;;  %9189 = vmatprep.subr.bf16.mxu0 %v10242_v22  ;;  %v10274_v8 = vld [vmem:[%s12427_s3 + $0x840] sm:$0xff]  }
 0x4eb   : > { %9211 = vmatprep.subr.bf16.mxu1 %v10243_v10  ;;  %v10275_v22 = vld [vmem:[%s12427_s3 + $0x8c0] sm:$0xff]  }
 0x4ec   : > { %7508 = vmatmul.mubr.bf16.vlgmr.msra.gmra.mrb[36].mxu0 %v4512_v11  ;;  %v10276_v10 = vld [vmem:[%s12427_s3 + $0x800] sm:$0xff]   ;;  %v4521_v11 = vpack.c.bf16 %v4428_v23, %v4428_v23  ;;  %v10312_v23 = vld [vmem:[%s12427_s3 + $0x950] sm:$0xff]  }
 0x4ed   : > { %7548 = vmatmul.mubr.bf16.vlgmr.msra.gmra.mrb[36].mxu1 %v4514_v13  ;;  %9190 = vmatpush3.bf16.msra.mxu0 %v10244_v59  ;;  %v4516_v59 = vpack.c.bf16 %v4408_v7, %v4408_v7  ;;  %v10280_v13 = vld [vmem:[%s12427_s3 + $0x808] sm:$0xff]  }
 0x4ee   : > { %7587 = vmatprep.mubr.bf16.mxu0 %v4517_v14  ;;  %9212 = vmatpush3.bf16.msra.mxu1 %v10245_v12  ;;  %v10279_v12 = vld [vmem:[%s12427_s3 + $0x8c8] sm:$0xff]   ;;  %v10282_v14 = vld [vmem:[%s12427_s3 + $0x850] sm:$0xff]  }
 0x4ef   : > { %7627 = vmatprep.mubr.bf16.mxu1 %v4519_v53  ;;  %9191 = vmatprep.subr.bf16.mxu0 %v10246_v32  ;;  %v10281_v32 = vld [vmem:[%s12427_s3 + $0x888] sm:$0xff]   ;;  %v10284_v53 = vld [vmem:[%s12427_s3 + $0x810] sm:$0xff]  }
 0x4f0   : > { %9213 = vmatprep.subr.bf16.mxu1 %v10247_v16  ;;  %v10283_v16 = vld [vmem:[%s12427_s3 + $0x8d0] sm:$0xff]  }
 0x4f1   : > { %9192 = vmatpush3.bf16.msra.mxu0 %v10248_v17  ;;  %v10285_v17 = vld [vmem:[%s12427_s3 + $0x890] sm:$0xff]  }
 0x4f2   : > { %9214 = vmatpush3.bf16.msra.mxu1 %v10249_v20  ;;  %9193 = vmatprep.subr.bf16.mxu0 %v10250_v24  ;;  %v10286_v20 = vld [vmem:[%s12427_s3 + $0x858] sm:$0xff]  }
 0x4f3   : > { %9215 = vmatprep.subr.bf16.mxu1 %v10251_v21  ;;  %v10287_v24 = vld [vmem:[%s12427_s3 + $0x8d8] sm:$0xff]  }
 0x4f4   : > { %v10288_v21 = vld [vmem:[%s12427_s3 + $0x818] sm:$0xff]  }
 0x4f5   : > { %9194 = vmatpush3.bf16.msra.mxu0 %v10252_v25  ;;  %v10289_v25 = vld [vmem:[%s12427_s3 + $0x898] sm:$0xff]  }
 0x4f6   : > { %9216 = vmatpush3.bf16.msra.mxu1 %v10253_v26  ;;  %9195 = vmatprep.subr.bf16.mxu0 %v10254_v27  ;;  %v10290_v26 = vld [vmem:[%s12427_s3 + $0x860] sm:$0xff]  }
 0x4f7   : > { %9217 = vmatprep.subr.bf16.mxu1 %v10255_v30  ;;  %v10291_v27 = vld [vmem:[%s12427_s3 + $0x8e0] sm:$0xff]  }
 0x4f8   : > { %v10292_v30 = vld [vmem:[%s12427_s3 + $0x820] sm:$0xff]  }
 0x4f9   : > { %9196 = vmatpush3.bf16.msra.mxu0 %v10256_v33  ;;  %v10293_v33 = vld [vmem:[%s12427_s3 + $0x8a0] sm:$0xff]  }
 0x4fa   : > { %9218 = vmatpush3.bf16.msra.mxu1 %v10257_v34  ;;  %9197 = vmatprep.subr.bf16.mxu0 %v10258_v2  ;;  %v10294_v34 = vld [vmem:[%s12427_s3 + $0x868] sm:$0xff]  }
 0x4fb   : > { %9219 = vmatprep.subr.bf16.mxu1 %v10259_v35  ;;  %v10295_v2 = vld [vmem:[%s12427_s3 + $0x8e8] sm:$0xff]  }
 0x4fc   : > { %v10296_v35 = vld [vmem:[%s12427_s3 + $0x828] sm:$0xff]  }
 0x4fd   : > { %9198 = vmatpush3.bf16.msra.mxu0 %v10260_v38  ;;  %v10297_v38 = vld [vmem:[%s12427_s3 + $0x8a8] sm:$0xff]  }
 0x4fe   : > { %9220 = vmatpush3.bf16.msra.mxu1 %v10261_v39  ;;  %9199 = vmatprep.subr.bf16.mxu0 %v10262_v40  ;;  %v10298_v39 = vld [vmem:[%s12427_s3 + $0x870] sm:$0xff]  }
 0x4ff   : > { %v8897_v50 = vpop.f32.mrb[12].mxu0  ;;  %v8919_v52 = vpop.f32.mrb[12].mxu1  ;;  %9221 = vmatprep.subr.bf16.mxu1 %v10263_v41 }
 0x500   : > { %v8898_v28 = vpop.f32.mrb[13].mxu0  ;;  %v8920_v29 = vpop.f32.mrb[13].mxu1 }
 0x501   : > { %v8899_v31 = vadd.f32 %v8898_v28, %v8897_v50  ;;  %v8921_v55 = vadd.f32 %v8920_v29, %v8919_v52  ;;  %9200 = vmatpush3.bf16.msra.mxu0 %v10264_v42  ;;  %v8900_v56 = vpop.f32.mrb[14].mxu0  ;;  %v8922_v60 = vpop.f32.mrb[14].mxu1  ;;  %v10299_v42 = vld [vmem:[%s12427_s3 + $0x8f0] sm:$0xff]  }
 0x502   : > { %9222 = vmatpush3.bf16.msra.mxu1 %v10265_v46  ;;  %v8901_v63 = vpop.f32.mrb[15].mxu0  ;;  %v8923_v0 = vpop.f32.mrb[15].mxu1  ;;  %9201 = vmatprep.subr.bf16.mxu0 %v10266_v49  ;;  %v10300_v28 = vld [vmem:[%s12427_s3 + $0x830] sm:$0xff]   ;;  %v10302_v56 = vld [vmem:[%s12427_s3 + $0x878] sm:$0xff]  }
 0x503   : > { %v7030_v4 = vadd.f32 %v8899_v31, %v5143_v15  ;;  %9223 = vmatprep.subr.bf16.mxu1 %v10267_v54  ;;  %v10304_v0 = vld [vmem:[%s12427_s3 + $0x838] sm:$0xff]  }
 0x505   : > { %v12138_v5 = vadd.f32 %v8921_v55, %v7030_v4  ;;  %9202 = vmatpush3.bf16.msra.mxu0 %v10268_v62  ;;  %v10301_v55 = vld [vmem:[%s12427_s3 + $0x8b0] sm:$0xff]   ;;  %v10303_v62 = vld [vmem:[%s12427_s3 + $0x8f8] sm:$0xff]   ;;  %v10306_v4 = vld [vmem:[%s12427_s3 + $0x940] sm:$0xff]  }
 0x506   : > { %9224 = vmatpush3.bf16.msra.mxu1 %v10269_v3  ;;  %9203 = vmatprep.subr.bf16.mxu0 %v10270_v19  ;;  %v10305_v3 = vld [vmem:[%s12427_s3 + $0x8b8] sm:$0xff]   ;;  %v4424_v19 = vrot.slane %v12143_v37, %v11330_v44  ;;  %v10308_v44 = vld [vmem:[%s12427_s3 + $0x980] sm:$0xff]  }
 0x507   : > { %9225 = vmatprep.subr.bf16.mxu1 %v10271_v43  ;;  %v4432_v43 = vrot.slane %v12143_v37, %v11333_v45  ;;  %v10309_v45 = vld [vmem:[%s12427_s3 + $0x948] sm:$0xff]  }
 0x509   : > { %9204 = vmatpush3.bf16.msra.mxu0 %v10272_v6  ;;  %v10307_v6 = vld [vmem:[%s12427_s3 + $0x900] sm:$0xff]   ;;  %v4522_v7 = vpack.c.bf16 %v4432_v43, %v4432_v43 }
 0x50a   : > { %9226 = vmatpush3.bf16.msra.mxu1 %v10273_v1  ;;  %9233 = vmatprep.subr.bf16.mxu0 %v10274_v8  ;;  %v4520_v1 = vpack.c.bf16 %v4424_v19, %v4424_v19  ;;  %v10400_v8 = vmov 0.0  }
 0x50b   : > { %9255 = vmatprep.subr.bf16.mxu1 %v10275_v22  ;;  %v10311_v22 = vld [vmem:[%s12427_s3 + $0x988] sm:$0xff]  }
 0x50c   : > { %7588 = vmatmul.mubr.bf16.vlgmr.msra.gmra.mrb[40].mxu0 %v4516_v59  ;;  %v10315_v59 = vld [vmem:[%s12427_s3 + $0x958] sm:$0xff]  }
 0x50d   : > { %7628 = vmatmul.mubr.bf16.vlgmr.msra.gmra.mrb[40].mxu1 %v4518_v61  ;;  %9234 = vmatpush3.bf16.msra.mxu0 %v10276_v10  ;;  %v10313_v10 = vld [vmem:[%s12427_s3 + $0x910] sm:$0xff]   ;;  %v10317_v61 = vld [vmem:[%s12427_s3 + $0x998] sm:$0xff]  }
 0x50e   : > { %7667 = vmatprep.mubr.bf16.mxu0 %v4521_v11  ;;  %9256 = vmatpush3.bf16.msra.mxu1 %v10277_v18  ;;  %v10316_v18 = vld [vmem:[%s12427_s3 + $0x918] sm:$0xff]   ;;  %v4448_v11 = vrot.slane %v12143_v37, %v11422_v58  ;;  %v10321_v58 = vld [vmem:[%s12427_s3 + $0x928] sm:$0xff]  }
 0x50f   : > { %7707 = vmatprep.mubr.bf16.mxu1 %v4523_v51  ;;  %9235 = vmatprep.subr.bf16.mxu0 %v10278_v47  ;;  %v10318_v47 = vld [vmem:[%s12427_s3 + $0x960] sm:$0xff]   ;;  %v10320_v51 = vld [vmem:[%s12427_s3 + $0x968] sm:$0xff]  }
 0x510   : > { %9257 = vmatprep.subr.bf16.mxu1 %v10279_v12  ;;  %v10319_v12 = vld [vmem:[%s12427_s3 + $0x920] sm:$0xff]  }
 0x511   : > { %9236 = vmatpush3.bf16.msra.mxu0 %v10280_v13  ;;  %v4526_v13 = vpack.c.bf16 %v4448_v11, %v4448_v11  ;;  %v10331_v11 = vld [vmem:[%s12431_s7 + $0x8] sm:$0xff]  }
 0x512   : > { %9258 = vmatpush3.bf16.msra.mxu1 %v10281_v32  ;;  %9237 = vmatprep.subr.bf16.mxu0 %v10282_v14  ;;  %v10322_v32 = vld [vmem:[%s12427_s3 + $0x970] sm:$0xff]  }
 0x513   : > { %9259 = vmatprep.subr.bf16.mxu1 %v10283_v16 }
 0x515   : > { %9238 = vmatpush3.bf16.msra.mxu0 %v10284_v53 }
 0x516   : > { %9260 = vmatpush3.bf16.msra.mxu1 %v10285_v17  ;;  %9239 = vmatprep.subr.bf16.mxu0 %v10286_v20 }
 0x517   : > { %9261 = vmatprep.subr.bf16.mxu1 %v10287_v24 }
 0x519   : > { %9240 = vmatpush3.bf16.msra.mxu0 %v10288_v21  ;;  %v10323_v21 = vld [vmem:[%s12427_s3 + $0x930] sm:$0xff]  }
 0x51a   : > { %9262 = vmatpush3.bf16.msra.mxu1 %v10289_v25  ;;  %9241 = vmatprep.subr.bf16.mxu0 %v10290_v26 }
 0x51b   : > { %9263 = vmatprep.subr.bf16.mxu1 %v10291_v27 }
 0x51d   : > { %9242 = vmatpush3.bf16.msra.mxu0 %v10292_v30  ;;  %v10324_v30 = vld [vmem:[%s12427_s3 + $0x978] sm:$0xff]  }
 0x51e   : > { %9264 = vmatpush3.bf16.msra.mxu1 %v10293_v33  ;;  %9243 = vmatprep.subr.bf16.mxu0 %v10294_v34 }
 0x51f   : > { %v8941_v40 = vpop.f32.mrb[16].mxu0  ;;  %v8963_v41 = vpop.f32.mrb[16].mxu1  ;;  %9265 = vmatprep.subr.bf16.mxu1 %v10295_v2 }
 0x520   : > { %v8942_v46 = vpop.f32.mrb[17].mxu0  ;;  %v8964_v49 = vpop.f32.mrb[17].mxu1 }
 0x521   : > { %v8943_v50 = vadd.f32 %v8942_v46, %v8941_v40  ;;  %v8965_v52 = vadd.f32 %v8964_v49, %v8963_v41  ;;  %v8944_v54 = vpop.f32.mrb[18].mxu0  ;;  %v8966_v15 = vpop.f32.mrb[18].mxu1  ;;  %9244 = vmatpush3.bf16.msra.mxu0 %v10296_v35  ;;  %v10325_v35 = vld [vmem:[%s12427_s3 + $0x938] sm:$0xff]  }
 0x522   : > { %9266 = vmatpush3.bf16.msra.mxu1 %v10297_v38  ;;  %v8945_v29 = vpop.f32.mrb[19].mxu0  ;;  %v8967_v31 = vpop.f32.mrb[19].mxu1  ;;  %9245 = vmatprep.subr.bf16.mxu0 %v10298_v39  ;;  %v4440_v38 = vrot.slane %v12143_v37, %v11479_v36 }
 0x523   : > { %v7110_v60 = vadd.f32 %v8943_v50, %v12138_v5  ;;  %9267 = vmatprep.subr.bf16.mxu1 %v10299_v42  ;;  %v4444_v5 = vrot.slane %v12143_v37, %v11336_v48 }
 0x524   : > { %v4524_v39 = vpack.c.bf16 %v4440_v38, %v4440_v38 }
 0x525   : > { %v12247_v63 = vadd.f32 %v8965_v52, %v7110_v60  ;;  %9246 = vmatpush3.bf16.msra.mxu0 %v10300_v28  ;;  %v4525_v48 = vpack.c.bf16 %v4444_v5, %v4444_v5  ;;  %v10326_v5 = vld [vmem:[%s12429_s5] sm:$0xff]  }
 0x526   : > { %9268 = vmatpush3.bf16.msra.mxu1 %v10301_v55  ;;  %9247 = vmatprep.subr.bf16.mxu0 %v10302_v56 }
 0x527   : > { %9269 = vmatprep.subr.bf16.mxu1 %v10303_v62 }
 0x529   : > { %9248 = vmatpush3.bf16.msra.mxu0 %v10304_v0 }
 0x52a   : > { %9270 = vmatpush3.bf16.msra.mxu1 %v10305_v3  ;;  %9277 = vmatprep.subr.bf16.mxu0 %v10306_v4 }
 0x52b   : > { %9674 = vmatprep.subr.bf16.mxu1 %v10400_v8 }
 0x52c   : > { %7668 = vmatmul.mubr.bf16.vlgmr.msra.gmra.mrb[44].mxu0 %v4520_v1 }
 0x52d   : > { %7708 = vmatmul.mubr.bf16.vlgmr.msra.gmra.mrb[44].mxu1 %v4522_v7  ;;  %9278 = vmatpush3.bf16.msra.mxu0 %v10307_v6 }
 0x52e   : > { %7747 = vmatprep.mubr.bf16.mxu0 %v4525_v48  ;;  %9675 = vmatpush3.bf16.msra.mxu1 %v10308_v44 }
 0x52f   : > { %9279 = vmatprep.subr.bf16.mxu0 %v10309_v45  ;;  %9676 = vmatprep.subr.bf16.mxu1 %v10400_v8 }
 0x530   : > { %9682 = vmatprep.mubr.msk.bf16.mxu1 %vm10401_vm2, %v10400_v8 }
 0x531   : > { %9280 = vmatpush3.bf16.msra.mxu0 %v10310_v9 }
 0x532   : > { %9677 = vmatpush3.bf16.msra.mxu1 %v10311_v22  ;;  %9281 = vmatprep.subr.bf16.mxu0 %v10312_v23 }
 0x533   : > { %9678 = vmatprep.subr.bf16.mxu1 %v10400_v8 }
 0x535   : > { %9282 = vmatpush3.bf16.msra.mxu0 %v10313_v10 }
 0x536   : > { %9679 = vmatpush3.bf16.msra.mxu1 %v10314_v57  ;;  %9283 = vmatprep.subr.bf16.mxu0 %v10315_v59 }
 0x537   : > { %9680 = vmatprep.subr.bf16.mxu1 %v10400_v8 }
 0x539   : > { %9284 = vmatpush3.bf16.msra.mxu0 %v10316_v18  ;;  %v10327_v18 = vld [vmem:[%s12429_s5 + $0x8] sm:$0xff]  }
 0x53a   : > { %9681 = vmatpush3.bf16.msra.mxu1 %v10317_v61  ;;  %9285 = vmatprep.subr.bf16.mxu0 %v10318_v47  ;;  %v10328_v61 = vld [vmem:[%s12429_s5 + $0x10] sm:$0xff]   ;;  %v10330_v47 = vld [vmem:[%s12431_s7] sm:$0xff]  }
 0x53b   : > { %9686 = vmatprep.subr.bf16.mxu1 %v10400_v8 }
 0x53d   : > { %9683 = vmatmul.mubr.msk.bf16.vlgmr.msra.gmra.mrb[48].mxu1 %vm333_vm0, %v4526_v13  ;;  %9286 = vmatpush3.bf16.msra.mxu0 %v10319_v12  ;;  %v10329_v12 = vld [vmem:[%s12429_s5 + $0x18] sm:$0xff]  }
 0x53e   : > { %9287 = vmatprep.subr.bf16.mxu0 %v10320_v51  ;;  %9694 = vmatprep.mubr.msk.bf16.mxu1 %vm10401_vm2, %v10400_v8 }
 0x53f   : > { %v8985_v14 = vpop.f32.mrb[20].mxu0  ;;  %9687 = vmatpush3.bf16.msra.mxu1 %v10326_v5 }
 0x540   : > { %v9007_v16 = vpop.f32.mrb[20].mxu1  ;;  %v8986_v53 = vpop.f32.mrb[21].mxu0  ;;  %9688 = vmatprep.subr.bf16.mxu1 %v10400_v8 }
 0x541   : > { %v8987_v17 = vadd.f32 %v8986_v53, %v8985_v14  ;;  %v9008_v20 = vpop.f32.mrb[21].mxu1  ;;  %v8988_v24 = vpop.f32.mrb[22].mxu0  ;;  %9288 = vmatpush3.bf16.msra.mxu0 %v10321_v58 }
 0x542   : > { %v9009_v25 = vadd.f32 %v9008_v20, %v9007_v16  ;;  %v9010_v26 = vpop.f32.mrb[22].mxu1  ;;  %v8989_v27 = vpop.f32.mrb[23].mxu0  ;;  %9289 = vmatprep.subr.bf16.mxu0 %v10322_v32 }
 0x543   : > { %v7190_v33 = vadd.f32 %v8987_v17, %v12247_v63  ;;  %v9011_v34 = vpop.f32.mrb[23].mxu1  ;;  %9689 = vmatpush3.bf16.msra.mxu1 %v10327_v18 }
 0x544   : > { %9690 = vmatprep.subr.bf16.mxu1 %v10400_v8 }
 0x545   : > { %v7230_v2 = vadd.f32 %v9009_v25, %v7190_v33  ;;  %9290 = vmatpush3.bf16.msra.mxu0 %v10323_v21 }
 0x546   : > { %9291 = vmatprep.subr.bf16.mxu0 %v10324_v30 }
 0x547   : > { %9691 = vmatpush3.bf16.msra.mxu1 %v10328_v61 }
 0x548   : > { %9692 = vmatprep.subr.bf16.mxu1 %v10400_v8 }
 0x549   : > { %9292 = vmatpush3.bf16.msra.mxu0 %v10325_v35 }
 0x54a   : > { %9698 = vmatprep.subr.bf16.mxu0 %v10400_v8 }
 0x54b   : > { %9693 = vmatpush3.bf16.msra.mxu1 %v10329_v12 }
 0x54c   : > { %7748 = vmatmul.mubr.bf16.vlgmr.msra.gmra.mrb[48].mxu0 %v4524_v39 }
 0x54d   : > { %9706 = vmatprep.mubr.msk.bf16.mxu0 %vm10401_vm2, %v10400_v8  ;;  %9699 = vmatpush3.bf16.msra.mxu0 %v10330_v47 }
 0x54e   : > { %9700 = vmatprep.subr.bf16.mxu0 %v10400_v8 }
 0x551   : > { %9701 = vmatpush3.bf16.msra.mxu0 %v10331_v11 }
 0x552   : > { %9702 = vmatprep.subr.bf16.mxu0 %v10400_v8 }
 0x55f   : > { %v9029_v40 = vpop.f32.mrb[24].mxu0 }
 0x560   : > { %v9051_v41 = vpop.f32.mrb[24].mxu1  ;;  %v9030_v42 = vpop.f32.mrb[25].mxu0 }
 0x561   : > { %v9031_v46 = vadd.f32 %v9030_v42, %v9029_v40  ;;  %v9052_v49 = vpop.f32.mrb[25].mxu1  ;;  %v9032_v50 = vpop.f32.mrb[26].mxu0 }
 0x562   : > { %v9053_v52 = vadd.f32 %v9052_v49, %v9051_v41  ;;  %v9054_v54 = vpop.f32.mrb[26].mxu1  ;;  %v9033_v15 = vpop.f32.mrb[27].mxu0 }
 0x563   : > { %v7270_v28 = vadd.f32 %v9031_v46, %v7230_v2  ;;  %v9055_v29 = vpop.f32.mrb[27].mxu1 }
 0x565   : > { %v7310_v36 = vadd.f32 %v9053_v52, %v7270_v28 }
 0x57f   : > { %v9073_v37 = vpop.f32.mrb[28].mxu0 }
 0x580   : > { %v9095_v31 = vpop.f32.mrb[28].mxu1  ;;  %v9074_v55 = vpop.f32.mrb[29].mxu0 }
 0x581   : > { %v9075_v56 = vadd.f32 %v9074_v55, %v9073_v37  ;;  %v9096_v60 = vpop.f32.mrb[29].mxu1  ;;  %v9076_v62 = vpop.f32.mrb[30].mxu0 }
 0x582   : > { %v9097_v63 = vadd.f32 %v9096_v60, %v9095_v31  ;;  %v9098_v0 = vpop.f32.mrb[30].mxu1  ;;  %v9077_v3 = vpop.f32.mrb[31].mxu0 }
 0x583   : > { %v7350_v19 = vadd.f32 %v9075_v56, %v7310_v36  ;;  %v9099_v4 = vpop.f32.mrb[31].mxu1 }
 0x585   : > { %v7390_v43 = vadd.f32 %v9097_v63, %v7350_v19 }
 0x59f   : > { %v9117_v6 = vpop.f32.mrb[32].mxu0 }
 0x5a0   : > { %v9139_v1 = vpop.f32.mrb[32].mxu1  ;;  %v9118_v44 = vpop.f32.mrb[33].mxu0 }
 0x5a1   : > { %v9119_v7 = vadd.f32 %v9118_v44, %v9117_v6  ;;  %v9140_v45 = vpop.f32.mrb[33].mxu1  ;;  %v9120_v48 = vpop.f32.mrb[34].mxu0 }
 0x5a2   : > { %v9141_v9 = vadd.f32 %v9140_v45, %v9139_v1  ;;  %v9142_v22 = vpop.f32.mrb[34].mxu1  ;;  %v9121_v23 = vpop.f32.mrb[35].mxu0  ;;  %v10332_v45 = vld [vmem:[%s12431_s7 + $0x10] sm:$0xff]   ;;  %v10333_v48 = vld [vmem:[%s12431_s7 + $0x18] sm:$0xff]  }
 0x5a3   : > { %v7430_v10 = vadd.f32 %v9119_v7, %v7390_v43  ;;  %v9143_v57 = vpop.f32.mrb[35].mxu1  ;;  %9703 = vmatpush3.bf16.msra.mxu0 %v10332_v45 }
 0x5a4   : > { %9704 = vmatprep.subr.bf16.mxu0 %v10400_v8  ;;  %v7887_v8 = vld [vmem:[%s12432_s8] sm:$0x1] }
 0x5a5   : > { %v7470_v59 = vadd.f32 %v9141_v9, %v7430_v10  ;;  %v7807_v9 = vld [vmem:[%s12430_s6] sm:$0x1] }
 0x5a7   : > { %9705 = vmatpush3.bf16.msra.mxu0 %v10333_v48 }
 0x5bf   : > { %v9161_v51 = vpop.f32.mrb[36].mxu0 }
 0x5c0   : > { %v9183_v13 = vpop.f32.mrb[36].mxu1  ;;  %v9162_v58 = vpop.f32.mrb[37].mxu0 }
 0x5c1   : > { %v9163_v32 = vadd.f32 %v9162_v58, %v9161_v51  ;;  %v9184_v14 = vpop.f32.mrb[37].mxu1  ;;  %v9164_v16 = vpop.f32.mrb[38].mxu0 }
 0x5c2   : > { %v9185_v53 = vadd.f32 %v9184_v14, %v9183_v13  ;;  %v9186_v17 = vpop.f32.mrb[38].mxu1  ;;  %v9165_v20 = vpop.f32.mrb[39].mxu0 }
 0x5c3   : > { %v7510_v24 = vadd.f32 %v9163_v32, %v7470_v59  ;;  %v9187_v21 = vpop.f32.mrb[39].mxu1 }
 0x5c5   : > { %v7550_v25 = vadd.f32 %v9185_v53, %v7510_v24 }
 0x5df   : > { %v9205_v26 = vpop.f32.mrb[40].mxu0 }
 0x5e0   : > { %v9227_v27 = vpop.f32.mrb[40].mxu1  ;;  %v9206_v30 = vpop.f32.mrb[41].mxu0 }
 0x5e1   : > { %v9207_v33 = vadd.f32 %v9206_v30, %v9205_v26  ;;  %v9228_v34 = vpop.f32.mrb[41].mxu1  ;;  %v9208_v2 = vpop.f32.mrb[42].mxu0 }
 0x5e2   : > { %v9229_v35 = vadd.f32 %v9228_v34, %v9227_v27  ;;  %v9230_v38 = vpop.f32.mrb[42].mxu1  ;;  %v9209_v39 = vpop.f32.mrb[43].mxu0 }
 0x5e3   : > { %v7590_v40 = vadd.f32 %v9207_v33, %v7550_v25  ;;  %v9231_v41 = vpop.f32.mrb[43].mxu1 }
 0x5e5   : > { %v7630_v42 = vadd.f32 %v9229_v35, %v7590_v40 }
 0x5ff   : > { %v9249_v46 = vpop.f32.mrb[44].mxu0 }
 0x600   : > { %v9271_v49 = vpop.f32.mrb[44].mxu1  ;;  %v9250_v50 = vpop.f32.mrb[45].mxu0 }
 0x601   : > { %v9251_v52 = vadd.f32 %v9250_v50, %v9249_v46  ;;  %v9272_v54 = vpop.f32.mrb[45].mxu1  ;;  %v9252_v15 = vpop.f32.mrb[46].mxu0 }
 0x602   : > { %v9273_v28 = vadd.f32 %v9272_v54, %v9271_v49  ;;  %v9274_v29 = vpop.f32.mrb[46].mxu1  ;;  %v9253_v36 = vpop.f32.mrb[47].mxu0 }
 0x603   : > { %v7670_v37 = vadd.f32 %v9251_v52, %v7630_v42  ;;  %v9275_v31 = vpop.f32.mrb[47].mxu1 }
 0x605   : > { %v7710_v55 = vadd.f32 %v9273_v28, %v7670_v37 }
 0x610   : > { %v7789_v56 = vpop.f32.mrb[48].mxu1 }
 0x611   : > { %v9684_v60 = vpop.f32.mrb[49].mxu1 }
 0x612   : > { %v7792_v62 = vpop.f32.mrb[50].mxu1 }
 0x613   : > { %v9685_v63 = vpop.f32.mrb[51].mxu1 }
 0x61f   : > { %v9293_v0 = vpop.f32.mrb[48].mxu0 }
 0x620   : > { %v9294_v3 = vpop.f32.mrb[49].mxu0 }
 0x621   : > { %v9295_v19 = vadd.f32 %v9294_v3, %v9293_v0  ;;  %v9296_v4 = vpop.f32.mrb[50].mxu0 }
 0x622   : > { %v9297_v43 = vpop.f32.mrb[51].mxu0 }
 0x623   : > { %v7750_v5 = vadd.f32 %v9295_v19, %v7710_v55 }
 0x625   : > { %v7790_v6 = vadd.f32 %v7789_v56, %v7750_v5 }
 0x627   : > { %vm7795_vm3 = vcmp.ge.f32.partialorder %v7790_v6, 0.0  ;;  %v7796_v1 = vmul.f32 0.01, %v7790_v6 }
 0x629   : > { %v7797_v44 = vsel %vm7795_vm3, %v7790_v6, %v7796_v1 }
 0x62a   : > { %v7798_v7 = vpack.c.bf16 %v7797_v44, %v7797_v44 }
 0x62c   : > { %9695 = vmatmul.mubr.msk.bf16.vlgmr.msra.gmra.mrb[52].mxu1 %vm333_vm0, %v7798_v7 }
 0x6ff   : > { %v7869_v22 = vpop.f32.mrb[52].mxu1 }
 0x700   : > { %v7870_v23 = vadd.f32 %v7869_v22, %v7807_v9  ;;  %v9696_v10 = vpop.f32.mrb[53].mxu1 }
 0x701   : > { %v7872_v57 = vpop.f32.mrb[54].mxu1 }
 0x702   : > { %vm7875_vm5 = vcmp.ge.f32.partialorder %v7870_v23, 0.0  ;;  %v7876_v59 = vmul.f32 0.01, %v7870_v23  ;;  %v9697_v18 = vpop.f32.mrb[55].mxu1 }
 0x704   : > { %v7877_v61 = vsel %vm7875_vm5, %v7870_v23, %v7876_v59 }
 0x705   : > { %v7878_v47 = vpack.c.bf16 %v7877_v61, %v7877_v61 }
 0x707   : > { %9707 = vmatmul.mubr.msk.bf16.vlgmr.msra.gmra.mrb[52].mxu0 %vm333_vm0, %v7878_v47 }
 0x7da   : > { %v7949_v11 = vpop.f32.mrb[52].mxu0 }
 0x7db   : > { %v7950_v12 = vadd.f32 %v7949_v11, %v7887_v8  ;;  %v9708_v51 = vpop.f32.mrb[53].mxu0 }
 0x7dc   : > { %v7952_v13 = vpop.f32.mrb[54].mxu0 }
 0x7dd   : > { %vm7955_vm6 = vcmp.ge.f32.partialorder %v7950_v12, 0.0  ;;  %v7956_v58 = vmul.f32 0.01, %v7950_v12  ;;  %v9709_v32 = vpop.f32.mrb[55].mxu0 }
 0x7df   : > { %v7957_v14 = vsel %vm7955_vm6, %v7950_v12, %v7956_v58 }
 0x7e0   : > { %7959 = vst.msk [vmem:[%s324_s22] sm:$0x1] %vm7958_vm7, %v7957_v14 }
 0x7e1   : > { %10347 = shalt.err (!%p10344_p3)
}
 0x7e2   : > { %s10348_s29 = scalar_lea.hbm %s12382_s25, 16  ;;  %s10352_s22 = scalar_lea.hbm %s12433_s9, 32 }
 0x7e3   : > { %p10349_p4 = scmp.ne.s32.totalorder %s12382_s25, %s10348_s29  ;;  %p10353_p9 = scmp.lt.u32.totalorder %s12382_s25, %s12433_s9 }
 0x7e4   : > { %p10354_p10 = scmp.lt.u32.totalorder %s10352_s22, %s10348_s29  ;;  %p10356_p12 = scmp.lt.u32.totalorder %s10348_s29, %s12382_s25 }
 0x7e5   : > { %p10350_p7 = pnand %p10349_p4, %p10491_p5 }
 0x7e6   : > { %p10355_p11 = por %p10354_p10, %p10353_p9 }
 0x7e7   : > { %p10351_p8 = pneg %p10350_p7 }
 0x7e8   : > { %p10357_p13 = por %p10356_p12, %p10355_p11 }
 0x7ea   : > { %p10358_p0 = pnand %p10357_p13, %p10351_p8 }
 0x7ec   : > { %10361 = shalt.err (!%p10358_p0)
}
 0x7ed   : > { %9903 = dma.vmem_to_hbm [thread:$0]  (%p10491_p5), %s12384_s23, 16, %s12382_s25, %s7961_s13  }
 0x7ee PF: > { %p9909_p1 = scmp.ge.s32.totalorder %s10396_s12, 2  ;;  %s7985_s27 = sand.u32 1, %s10384_s30  }
 0x7ef   : > { %s7986_s28 = scalar_lea.sflag [#allocation6], %s7985_s27 }
 0x7f0   : > { %p9906_p2 = pnand %p9909_p1, %p10495_p6 }
 0x7f2   : > { %10379 = dma.done.wait (!%p9906_p2), %s7986_s28, 16  }
 0x7f3   : > { %10381 = vsyncadd (!%p9906_p2), %s7986_s28, 4294967280  ;;  %p19_p3 = scmp.ge.s32.totalorder %s10478_s15, 4   ;;  %s12440_s30 = smov %s10388_s10 }
 0x7f4   : > { %s12441_s10 = smov %s10392_s11  ;;  %s12442_s11 = smov %s10489_s18 }
 0x7f5   : > { %s12443_s12 = smov %s10478_s15  ;;  %21 = sbr.rel (!%p19_p3) target bundleno = 3 (0x3), region = 107 }
 0x7fc   :  { %7990 = vsyncpa [#allocation6], 1 }
 0x7fd   :  { %7992 = vsyncpa [#allocation6 + $0x1], 1 }

</bundles_post_ra>
